<compile_context>
chip_gen: v7x
topology: tpu7x:2x2x1
jax: 0.10.0
libtpu: 0.0.40
codegen_flags: <defaults>
</compile_context>

<pallas_src>
import functools

import numpy as np
import jax
import jax.numpy as jnp
from jax import lax
from jax.experimental import pallas as pl
from jax.experimental.pallas import tpu as pltpu


_PROJ_CFG = {2: (6, 2, 2), 4: (8, 4, 2), 8: (12, 8, 2), 16: (20, 16, 2)}


# ----------------------- fused DenseProjection kernel -----------------------

def _dense_projection_kernel(
        x_ref,                        # (1, H, W, Cin)
        wb_ref, bb_ref, ab_ref,       # (Cin, C), (1, C), (1, C)
        w1_ref, b1_ref, a1_ref,       # (9*C, 4C), (1, 4C), (1, 4C)
        w2_ref, b2_ref, a2_ref,       # (9*4C, C), (1, C), (1, C)
        w3_ref, b3_ref, a3_ref,       # (9*C, 4C), (1, 4C), (1, 4C)
        o_ref,                        # (1, H*W, 4C)  phase-packed output
        xb_pad, a0_pad, e_pad,        # VMEM scratch (zero-ring padded)
        *, H, W, Cin, C):
    M = H * W
    C4 = 4 * C

    def prelu(z, alpha_row):
        return jnp.where(z >= 0.0, z, alpha_row * z)

    def taps_matmul(src_pad_ref, w_ref, k, ncols):
        """sum over the 9 (3x3) taps of  src[tap] (M, k) @ w[tap] (k, ncols)."""
        acc = None
        for dy in range(3):
            for dx in range(3):
                t = dy * 3 + dx
                tap = src_pad_ref[dy:dy + H, dx:dx + W, :].reshape(M, k)
                d = jnp.dot(tap, w_ref[t * k:(t + 1) * k, :],
                            preferred_element_type=jnp.float32)
                acc = d if acc is None else acc + d
        return acc

    # Re-zero the padded scratch every grid step: keeps the zero ring valid and
    # is safe under "parallel" grid semantics (no step-0-only init).
    xb_pad[...] = jnp.zeros_like(xb_pad)
    a0_pad[...] = jnp.zeros_like(a0_pad)
    e_pad[...] = jnp.zeros_like(e_pad)

    # ---- bottleneck: 1x1 conv + PReLU --------------------------------------
    x2d = x_ref[...].reshape(M, Cin)
    zb = jnp.dot(x2d, wb_ref[...], preferred_element_type=jnp.float32) + bb_ref[...]
    xb2d = prelu(zb, ab_ref[...])                               # (M, C)
    xb_pad[1:H + 1, 1:W + 1, :] = xb2d.reshape(H, W, C)

    # ---- conv_1: ConvTranspose2d(6,2,2) + PReLU, sub-pixel form ------------
    # All 4 output phases share the same 3x3 taps of xb; phase weights are
    # concatenated along the output-channel axis -> one (M, 4C) result.
    z1 = taps_matmul(xb_pad, w1_ref, C, C4) + b1_ref[...]
    a0_all = prelu(z1, a1_ref[...])                             # (M, 4C)
    a0_pad[1:H + 1, 1:W + 1, :] = a0_all.reshape(H, W, C4)

    # ---- conv_2: Conv2d(6,2,2) + PReLU over the (implicitly interleaved) a0
    # Decomposed over the 4 input phases of a0 (kept channel-packed), so K per
    # tap is 4C and a0 never has to be interleaved back to 2H x 2W.
    z2 = taps_matmul(a0_pad, w2_ref, C4, C) + b2_ref[...]
    b0 = prelu(z2, a2_ref[...])                                 # (M, C)

    # ---- e = b0 - xb (residual subtract, fused) ----------------------------
    e2d = b0 - xb2d
    e_pad[1:H + 1, 1:W + 1, :] = e2d.reshape(H, W, C)

    # ---- conv_3: ConvTranspose2d(6,2,2) + PReLU, then out = a0 + a1 --------
    z3 = taps_matmul(e_pad, w3_ref, C, C4) + b3_ref[...]
    a1_all = prelu(z3, a3_ref[...])                             # (M, 4C)
    o_ref[0, :, :] = a0_all + a1_all                            # phase-packed


# ----------------------- wrapper-side weight transforms ----------------------

def _convT_phase_weights(w_iohw):
    """ConvTranspose2d weight (Cin, Cout, 6, 6) -> (9*Cin, 4*Cout).

    Output phase (py, px), tap (dy, dx) in {0,1,2}^2 uses kernel element
    (4 - 2*dy + py, 4 - 2*dx + px); phases are concatenated along output
    channels in order ph = 2*py + px.
    """
    taps = []
    for dy in range(3):
        for dx in range(3):
            cols = [w_iohw[:, :, 4 - 2 * dy + py, 4 - 2 * dx + px]
                    for py in range(2) for px in range(2)]       # (Cin, Cout)
            taps.append(jnp.concatenate(cols, axis=1))           # (Cin, 4*Cout)
    return jnp.concatenate(taps, axis=0)                         # (9*Cin, 4*Cout)


def _conv_phase_weights(w_oihw):
    """Conv2d weight (Cout, Cin, 6, 6), stride 2 -> (9*4*Cin, Cout).

    Tap (ty, tx) against input phase (py, px) uses kernel element
    (2*ty + py, 2*tx + px); the 4 input phases are stacked along K in order
    ph = 2*py + px, matching the channel-packed a0 buffer.
    """
    taps = []
    for ty in range(3):
        for tx in range(3):
            rows = [jnp.transpose(w_oihw[:, :, 2 * ty + py, 2 * tx + px])
                    for py in range(2) for px in range(2)]       # (Cin, Cout)
            taps.append(jnp.concatenate(rows, axis=0))           # (4*Cin, Cout)
    return jnp.concatenate(taps, axis=0)                         # (9*4*Cin, Cout)


# --------------------------- DenseProjection forward -------------------------

def dense_projection_forward(x_nchw, params, scale=2):
    """Pallas forward of DenseProjection(up=True, bottleneck=True). x is NCHW."""
    # TODO(synk): only scale=2 (k=6, s=2, p=2) is lowered via the sub-pixel
    # decomposition; scales 4/8/16 and the up=False / bottleneck=False module
    # variants are not implemented here.
    assert scale == 2
    N, Cin, H, W = x_nchw.shape
    C = params["bb"].shape[0]                     # nr
    M, C4 = H * W, 4 * params["bb"].shape[0]

    x = jnp.transpose(x_nchw, (0, 2, 3, 1)).astype(jnp.float32)   # NHWC

    wb = params["wb"].reshape(C, Cin).T.astype(jnp.float32)        # (Cin, C)
    w1 = _convT_phase_weights(params["w1"]).astype(jnp.float32)    # (9C, 4C)
    w2 = _conv_phase_weights(params["w2"]).astype(jnp.float32)     # (36C, C)
    w3 = _convT_phase_weights(params["w3"]).astype(jnp.float32)    # (9C, 4C)

    row = lambda v: v.reshape(1, -1).astype(jnp.float32)
    tile4 = lambda v: jnp.tile(v.reshape(1, -1), (1, 4)).astype(jnp.float32)
    bb, ab = row(params["bb"]), row(params["ab"])
    b2, a2 = row(params["b2"]), row(params["a2"])
    b1, a1 = tile4(params["b1"]), tile4(params["a1"])
    b3, a3 = tile4(params["b3"]), tile4(params["a3"])

    kernel = functools.partial(_dense_projection_kernel, H=H, W=W, Cin=Cin, C=C)
    full = lambda a: pl.BlockSpec(a.shape, lambda n: (0,) * a.ndim)

    out = pl.pallas_call(
        kernel,
        out_shape=jax.ShapeDtypeStruct((N, M, C4), jnp.float32),
        grid=(N,),
        in_specs=[
            pl.BlockSpec((1, H, W, Cin), lambda n: (n, 0, 0, 0)),
            full(wb), full(bb), full(ab),
            full(w1), full(b1), full(a1),
            full(w2), full(b2), full(a2),
            full(w3), full(b3), full(a3),
        ],
        out_specs=pl.BlockSpec((1, M, C4), lambda n: (n, 0, 0)),
        scratch_shapes=[
            pltpu.VMEM((H + 2, W + 2, C), jnp.float32),    # xb  (zero ring)
            pltpu.VMEM((H + 2, W + 2, C4), jnp.float32),   # a0  (4 phases packed)
            pltpu.VMEM((H + 2, W + 2, C), jnp.float32),    # e   (zero ring)
        ],
        compiler_params=pltpu.CompilerParams(
            dimension_semantics=("parallel",)),
    )(x, wb, bb, ab, w1, b1, a1, w2, b2, a2, w3, b3, a3)

    # De-interleave the phase-packed output: out[n, h*W + w, (2*py+px)*C + c]
    # -> NHWC (N, 2H, 2W, C) -> NCHW.
    y = out.reshape(N, H, W, 2, 2, C)
    y = jnp.transpose(y, (0, 1, 3, 2, 4, 5)).reshape(N, 2 * H, 2 * W, C)
    return jnp.transpose(y, (0, 3, 1, 2))


# -------------------------------- XLA reference -------------------------------

def ref_forward(x_nchw, params, scale=2):
    k, s, p = _PROJ_CFG[scale]
    dn = ("NCHW", "OIHW", "NCHW")

    def prelu(z, a):
        return jnp.where(z >= 0.0, z, a.reshape(1, -1, 1, 1) * z)

    def conv(x, w, b, stride, pad):
        y = lax.conv_general_dilated(x, w, (stride, stride),
                                     [(pad, pad), (pad, pad)],
                                     dimension_numbers=dn)
        return y + b.reshape(1, -1, 1, 1)

    def convT(x, w_iohw, b, stride, pad):
        w = jnp.transpose(jnp.flip(w_iohw, (2, 3)), (1, 0, 2, 3))   # -> OIHW
        pe = w_iohw.shape[2] - 1 - pad
        y = lax.conv_general_dilated(x, w, (1, 1), [(pe, pe), (pe, pe)],
                                     lhs_dilation=(stride, stride),
                                     dimension_numbers=dn)
        return y + b.reshape(1, -1, 1, 1)

    xb = prelu(conv(x_nchw, params["wb"], params["bb"], 1, 0), params["ab"])
    a0 = prelu(convT(xb, params["w1"], params["b1"], s, p), params["a1"])
    b0 = prelu(conv(a0, params["w2"], params["b2"], s, p), params["a2"])
    e = b0 - xb
    a1 = prelu(convT(e, params["w3"], params["b3"], s, p), params["a3"])
    return a0 + a1


# ------------------------------------ main ------------------------------------

if __name__ == "__main__":
    key = jax.random.PRNGKey(0)
    N, Cin, H, W = 2, 4, 16, 16          # NCHW, like the PyTorch module
    nr, scale = 8, 2
    ks = _PROJ_CFG[scale][0]

    keys = jax.random.split(key, 10)
    x = jax.random.normal(keys[0], (N, Cin, H, W), jnp.float32)

    def rnd(k, shape, s=0.1):
        return s * jax.random.normal(k, shape, jnp.float32)

    params = dict(
        # bottleneck: Conv2d(in_channels, nr, 1) + PReLU(nr)
        wb=rnd(keys[1], (nr, Cin, 1, 1)), bb=rnd(keys[2], (nr,)),
        ab=jnp.full((nr,), 0.25, jnp.float32),
        # conv_1: ConvTranspose2d(nr, nr, 6, 2, 2) + PReLU(nr)
        w1=rnd(keys[3], (nr, nr, ks, ks)), b1=rnd(keys[4], (nr,)),
        a1=jnp.full((nr,), 0.25, jnp.float32),
        # conv_2: Conv2d(nr, nr, 6, 2, 2) + PReLU(nr)
        w2=rnd(keys[5], (nr, nr, ks, ks)), b2=rnd(keys[6], (nr,)),
        a2=jnp.full((nr,), 0.25, jnp.float32),
        # conv_3: ConvTranspose2d(nr, nr, 6, 2, 2) + PReLU(nr)
        w3=rnd(keys[7], (nr, nr, ks, ks)), b3=rnd(keys[8], (nr,)),
        a3=jnp.full((nr,), 0.25, jnp.float32),
    )

    out = jax.jit(lambda xx: dense_projection_forward(xx, params, scale))(x)
    out = jax.block_until_ready(out)
    assert out.shape == (N, nr, H * scale, W * scale), out.shape

    ref = jax.block_until_ready(ref_forward(x, params, scale))
    np.testing.assert_allclose(np.asarray(out), np.asarray(ref),
                               rtol=2e-3, atol=2e-3)

    print("KERNEL_OK")
</pallas_src>

<mosaic_0001>
module attributes {stable_mosaic.version = 11 : i64} {
  func.func @_dense_projection_kernel(%arg0: i32, %arg1: memref<1x16x16x4xf32, #tpu.memory_space<vmem>>, %arg2: memref<4x8xf32, #tpu.memory_space<vmem>>, %arg3: memref<1x8xf32, #tpu.memory_space<vmem>>, %arg4: memref<1x8xf32, #tpu.memory_space<vmem>>, %arg5: memref<72x32xf32, #tpu.memory_space<vmem>>, %arg6: memref<1x32xf32, #tpu.memory_space<vmem>>, %arg7: memref<1x32xf32, #tpu.memory_space<vmem>>, %arg8: memref<288x8xf32, #tpu.memory_space<vmem>>, %arg9: memref<1x8xf32, #tpu.memory_space<vmem>>, %arg10: memref<1x8xf32, #tpu.memory_space<vmem>>, %arg11: memref<72x32xf32, #tpu.memory_space<vmem>>, %arg12: memref<1x32xf32, #tpu.memory_space<vmem>>, %arg13: memref<1x32xf32, #tpu.memory_space<vmem>>, %arg14: memref<1x256x32xf32, #tpu.memory_space<vmem>>, %arg15: memref<18x18x8xf32, #tpu.memory_space<vmem>>, %arg16: memref<18x18x32xf32, #tpu.memory_space<vmem>>, %arg17: memref<18x18x8xf32, #tpu.memory_space<vmem>>) attributes {dimension_semantics = [#tpu.dimension_semantics<parallel>], iteration_bounds = array<i64: 2>, scalar_prefetch = 0 : i64, scratch_operands = 3 : i64, tpu.core_type = #tpu.core_type<tc>, window_params = [{transform_indices = @transform_0, window_bounds = array<i64: 1, 16, 16, 4>}, {pipeline_mode = #tpu.pipeline_mode<synchronous>, transform_indices = @transform_1, window_bounds = array<i64: 4, 8>}, {pipeline_mode = #tpu.pipeline_mode<synchronous>, transform_indices = @transform_2, window_bounds = array<i64: 1, 8>}, {pipeline_mode = #tpu.pipeline_mode<synchronous>, transform_indices = @transform_3, window_bounds = array<i64: 1, 8>}, {pipeline_mode = #tpu.pipeline_mode<synchronous>, transform_indices = @transform_4, window_bounds = array<i64: 72, 32>}, {pipeline_mode = #tpu.pipeline_mode<synchronous>, transform_indices = @transform_5, window_bounds = array<i64: 1, 32>}, {pipeline_mode = #tpu.pipeline_mode<synchronous>, transform_indices = @transform_6, window_bounds = array<i64: 1, 32>}, {pipeline_mode = #tpu.pipeline_mode<synchronous>, transform_indices = @transform_7, window_bounds = array<i64: 288, 8>}, {pipeline_mode = #tpu.pipeline_mode<synchronous>, transform_indices = @transform_8, window_bounds = array<i64: 1, 8>}, {pipeline_mode = #tpu.pipeline_mode<synchronous>, transform_indices = @transform_9, window_bounds = array<i64: 1, 8>}, {pipeline_mode = #tpu.pipeline_mode<synchronous>, transform_indices = @transform_10, window_bounds = array<i64: 72, 32>}, {pipeline_mode = #tpu.pipeline_mode<synchronous>, transform_indices = @transform_11, window_bounds = array<i64: 1, 32>}, {pipeline_mode = #tpu.pipeline_mode<synchronous>, transform_indices = @transform_12, window_bounds = array<i64: 1, 32>}, {transform_indices = @transform_13, window_bounds = array<i64: 1, 256, 32>}]} {
    %cst = arith.constant 0.000000e+00 : f32
    %0 = vector.broadcast %cst : f32 to vector<18x18x8xf32>
    %c0 = arith.constant 0 : index
    %c0_0 = arith.constant 0 : index
    %c0_1 = arith.constant 0 : index
    %1 = vector.load %arg15[%c0, %c0_0, %c0_1] : memref<18x18x8xf32, #tpu.memory_space<vmem>>, vector<18x18x8xf32>
    tpu.vector_store %arg15[%c0, %c0_0, %c0_1], %0 {strides = array<i32>} : memref<18x18x8xf32, #tpu.memory_space<vmem>>, vector<18x18x8xf32>,
    %cst_2 = arith.constant 0.000000e+00 : f32
    %2 = vector.broadcast %cst_2 : f32 to vector<18x18x32xf32>
    %c0_3 = arith.constant 0 : index
    %c0_4 = arith.constant 0 : index
    %c0_5 = arith.constant 0 : index
    %3 = vector.load %arg16[%c0_3, %c0_4, %c0_5] : memref<18x18x32xf32, #tpu.memory_space<vmem>>, vector<18x18x32xf32>
    tpu.vector_store %arg16[%c0_3, %c0_4, %c0_5], %2 {strides = array<i32>} : memref<18x18x32xf32, #tpu.memory_space<vmem>>, vector<18x18x32xf32>,
    %cst_6 = arith.constant 0.000000e+00 : f32
    %4 = vector.broadcast %cst_6 : f32 to vector<18x18x8xf32>
    %c0_7 = arith.constant 0 : index
    %c0_8 = arith.constant 0 : index
    %c0_9 = arith.constant 0 : index
    %5 = vector.load %arg17[%c0_7, %c0_8, %c0_9] : memref<18x18x8xf32, #tpu.memory_space<vmem>>, vector<18x18x8xf32>
    tpu.vector_store %arg17[%c0_7, %c0_8, %c0_9], %4 {strides = array<i32>} : memref<18x18x8xf32, #tpu.memory_space<vmem>>, vector<18x18x8xf32>,
    %c0_10 = arith.constant 0 : index
    %c0_11 = arith.constant 0 : index
    %c0_12 = arith.constant 0 : index
    %c0_13 = arith.constant 0 : index
    %6 = vector.load %arg1[%c0_10, %c0_11, %c0_12, %c0_13] : memref<1x16x16x4xf32, #tpu.memory_space<vmem>>, vector<1x16x16x4xf32>
    %7 = vector.shape_cast %6 : vector<1x16x16x4xf32> to vector<256x4xf32>
    %c0_14 = arith.constant 0 : index
    %c0_15 = arith.constant 0 : index
    %8 = vector.load %arg2[%c0_14, %c0_15] : memref<4x8xf32, #tpu.memory_space<vmem>>, vector<4x8xf32>
    %cst_16 = arith.constant dense<0.000000e+00> : vector<256x8xf32>
    %9 = tpu.matmul %7, %8, %cst_16 {dimension_numbers = #tpu.dot_dimension_numbers<[1], [0], [0], [1], [0, 0, 1, 1], [], []>} : vector<256x4xf32>, vector<4x8xf32>, vector<256x8xf32> -> vector<256x8xf32>
    %c0_17 = arith.constant 0 : index
    %c0_18 = arith.constant 0 : index
    %10 = vector.load %arg3[%c0_17, %c0_18] : memref<1x8xf32, #tpu.memory_space<vmem>>, vector<1x8xf32>
    %11 = vector.broadcast %10 : vector<1x8xf32> to vector<256x8xf32>
    %12 = arith.addf %9, %11 : vector<256x8xf32>
    %c0_19 = arith.constant 0 : index
    %c0_20 = arith.constant 0 : index
    %13 = vector.load %arg4[%c0_19, %c0_20] : memref<1x8xf32, #tpu.memory_space<vmem>>, vector<1x8xf32>
    %cst_21 = arith.constant 0.000000e+00 : f32
    %14 = vector.broadcast %cst_21 : f32 to vector<256x8xf32>
    %15 = arith.cmpf oge, %12, %14 : vector<256x8xf32>
    %16 = vector.broadcast %13 : vector<1x8xf32> to vector<256x8xf32>
    %17 = arith.mulf %16, %12 : vector<256x8xf32>
    %18 = arith.select %15, %12, %17 : vector<256x8xi1>, vector<256x8xf32>
    %19 = vector.shape_cast %18 : vector<256x8xf32> to vector<16x16x8xf32>
    %c1 = arith.constant 1 : index
    %c1_22 = arith.constant 1 : index
    %c0_23 = arith.constant 0 : index
    %20 = vector.load %arg15[%c1, %c1_22, %c0_23] : memref<18x18x8xf32, #tpu.memory_space<vmem>>, vector<16x16x8xf32>
    tpu.vector_store %arg15[%c1, %c1_22, %c0_23], %19 {strides = array<i32>} : memref<18x18x8xf32, #tpu.memory_space<vmem>>, vector<16x16x8xf32>,
    %c0_24 = arith.constant 0 : index
    %c0_25 = arith.constant 0 : index
    %c0_26 = arith.constant 0 : index
    %21 = vector.load %arg15[%c0_24, %c0_25, %c0_26] : memref<18x18x8xf32, #tpu.memory_space<vmem>>, vector<16x16x8xf32>
    %22 = vector.shape_cast %21 : vector<16x16x8xf32> to vector<256x8xf32>
    %c0_27 = arith.constant 0 : index
    %c0_28 = arith.constant 0 : index
    %23 = vector.load %arg5[%c0_27, %c0_28] : memref<72x32xf32, #tpu.memory_space<vmem>>, vector<8x32xf32>
    %cst_29 = arith.constant dense<0.000000e+00> : vector<256x32xf32>
    %24 = tpu.matmul %22, %23, %cst_29 {dimension_numbers = #tpu.dot_dimension_numbers<[1], [0], [0], [1], [0, 0, 1, 1], [], []>} : vector<256x8xf32>, vector<8x32xf32>, vector<256x32xf32> -> vector<256x32xf32>
    %c0_30 = arith.constant 0 : index
    %c1_31 = arith.constant 1 : index
    %c0_32 = arith.constant 0 : index
    %25 = vector.load %arg15[%c0_30, %c1_31, %c0_32] : memref<18x18x8xf32, #tpu.memory_space<vmem>>, vector<16x16x8xf32>
    %26 = vector.shape_cast %25 : vector<16x16x8xf32> to vector<256x8xf32>
    %c8 = arith.constant 8 : index
    %c0_33 = arith.constant 0 : index
    %27 = vector.load %arg5[%c8, %c0_33] : memref<72x32xf32, #tpu.memory_space<vmem>>, vector<8x32xf32>
    %cst_34 = arith.constant dense<0.000000e+00> : vector<256x32xf32>
    %28 = tpu.matmul %26, %27, %cst_34 {dimension_numbers = #tpu.dot_dimension_numbers<[1], [0], [0], [1], [0, 0, 1, 1], [], []>} : vector<256x8xf32>, vector<8x32xf32>, vector<256x32xf32> -> vector<256x32xf32>
    %29 = arith.addf %24, %28 : vector<256x32xf32>
    %c0_35 = arith.constant 0 : index
    %c2 = arith.constant 2 : index
    %c0_36 = arith.constant 0 : index
    %30 = vector.load %arg15[%c0_35, %c2, %c0_36] : memref<18x18x8xf32, #tpu.memory_space<vmem>>, vector<16x16x8xf32>
    %31 = vector.shape_cast %30 : vector<16x16x8xf32> to vector<256x8xf32>
    %c16 = arith.constant 16 : index
    %c0_37 = arith.constant 0 : index
    %32 = vector.load %arg5[%c16, %c0_37] : memref<72x32xf32, #tpu.memory_space<vmem>>, vector<8x32xf32>
    %cst_38 = arith.constant dense<0.000000e+00> : vector<256x32xf32>
    %33 = tpu.matmul %31, %32, %cst_38 {dimension_numbers = #tpu.dot_dimension_numbers<[1], [0], [0], [1], [0, 0, 1, 1], [], []>} : vector<256x8xf32>, vector<8x32xf32>, vector<256x32xf32> -> vector<256x32xf32>
    %34 = arith.addf %29, %33 : vector<256x32xf32>
    %c1_39 = arith.constant 1 : index
    %c0_40 = arith.constant 0 : index
    %c0_41 = arith.constant 0 : index
    %35 = vector.load %arg15[%c1_39, %c0_40, %c0_41] : memref<18x18x8xf32, #tpu.memory_space<vmem>>, vector<16x16x8xf32>
    %36 = vector.shape_cast %35 : vector<16x16x8xf32> to vector<256x8xf32>
    %c24 = arith.constant 24 : index
    %c0_42 = arith.constant 0 : index
    %37 = vector.load %arg5[%c24, %c0_42] : memref<72x32xf32, #tpu.memory_space<vmem>>, vector<8x32xf32>
    %cst_43 = arith.constant dense<0.000000e+00> : vector<256x32xf32>
    %38 = tpu.matmul %36, %37, %cst_43 {dimension_numbers = #tpu.dot_dimension_numbers<[1], [0], [0], [1], [0, 0, 1, 1], [], []>} : vector<256x8xf32>, vector<8x32xf32>, vector<256x32xf32> -> vector<256x32xf32>
    %39 = arith.addf %34, %38 : vector<256x32xf32>
    %c1_44 = arith.constant 1 : index
    %c1_45 = arith.constant 1 : index
    %c0_46 = arith.constant 0 : index
    %40 = vector.load %arg15[%c1_44, %c1_45, %c0_46] : memref<18x18x8xf32, #tpu.memory_space<vmem>>, vector<16x16x8xf32>
    %41 = vector.shape_cast %40 : vector<16x16x8xf32> to vector<256x8xf32>
    %c32 = arith.constant 32 : index
    %c0_47 = arith.constant 0 : index
    %42 = vector.load %arg5[%c32, %c0_47] : memref<72x32xf32, #tpu.memory_space<vmem>>, vector<8x32xf32>
    %cst_48 = arith.constant dense<0.000000e+00> : vector<256x32xf32>
    %43 = tpu.matmul %41, %42, %cst_48 {dimension_numbers = #tpu.dot_dimension_numbers<[1], [0], [0], [1], [0, 0, 1, 1], [], []>} : vector<256x8xf32>, vector<8x32xf32>, vector<256x32xf32> -> vector<256x32xf32>
    %44 = arith.addf %39, %43 : vector<256x32xf32>
    %c1_49 = arith.constant 1 : index
    %c2_50 = arith.constant 2 : index
    %c0_51 = arith.constant 0 : index
    %45 = vector.load %arg15[%c1_49, %c2_50, %c0_51] : memref<18x18x8xf32, #tpu.memory_space<vmem>>, vector<16x16x8xf32>
    %46 = vector.shape_cast %45 : vector<16x16x8xf32> to vector<256x8xf32>
    %c40 = arith.constant 40 : index
    %c0_52 = arith.constant 0 : index
    %47 = vector.load %arg5[%c40, %c0_52] : memref<72x32xf32, #tpu.memory_space<vmem>>, vector<8x32xf32>
    %cst_53 = arith.constant dense<0.000000e+00> : vector<256x32xf32>
    %48 = tpu.matmul %46, %47, %cst_53 {dimension_numbers = #tpu.dot_dimension_numbers<[1], [0], [0], [1], [0, 0, 1, 1], [], []>} : vector<256x8xf32>, vector<8x32xf32>, vector<256x32xf32> -> vector<256x32xf32>
    %49 = arith.addf %44, %48 : vector<256x32xf32>
    %c2_54 = arith.constant 2 : index
    %c0_55 = arith.constant 0 : index
    %c0_56 = arith.constant 0 : index
    %50 = vector.load %arg15[%c2_54, %c0_55, %c0_56] : memref<18x18x8xf32, #tpu.memory_space<vmem>>, vector<16x16x8xf32>
    %51 = vector.shape_cast %50 : vector<16x16x8xf32> to vector<256x8xf32>
    %c48 = arith.constant 48 : index
    %c0_57 = arith.constant 0 : index
    %52 = vector.load %arg5[%c48, %c0_57] : memref<72x32xf32, #tpu.memory_space<vmem>>, vector<8x32xf32>
    %cst_58 = arith.constant dense<0.000000e+00> : vector<256x32xf32>
    %53 = tpu.matmul %51, %52, %cst_58 {dimension_numbers = #tpu.dot_dimension_numbers<[1], [0], [0], [1], [0, 0, 1, 1], [], []>} : vector<256x8xf32>, vector<8x32xf32>, vector<256x32xf32> -> vector<256x32xf32>
    %54 = arith.addf %49, %53 : vector<256x32xf32>
    %c2_59 = arith.constant 2 : index
    %c1_60 = arith.constant 1 : index
    %c0_61 = arith.constant 0 : index
    %55 = vector.load %arg15[%c2_59, %c1_60, %c0_61] : memref<18x18x8xf32, #tpu.memory_space<vmem>>, vector<16x16x8xf32>
    %56 = vector.shape_cast %55 : vector<16x16x8xf32> to vector<256x8xf32>
    %c56 = arith.constant 56 : index
    %c0_62 = arith.constant 0 : index
    %57 = vector.load %arg5[%c56, %c0_62] : memref<72x32xf32, #tpu.memory_space<vmem>>, vector<8x32xf32>
    %cst_63 = arith.constant dense<0.000000e+00> : vector<256x32xf32>
    %58 = tpu.matmul %56, %57, %cst_63 {dimension_numbers = #tpu.dot_dimension_numbers<[1], [0], [0], [1], [0, 0, 1, 1], [], []>} : vector<256x8xf32>, vector<8x32xf32>, vector<256x32xf32> -> vector<256x32xf32>
    %59 = arith.addf %54, %58 : vector<256x32xf32>
    %c2_64 = arith.constant 2 : index
    %c2_65 = arith.constant 2 : index
    %c0_66 = arith.constant 0 : index
    %60 = vector.load %arg15[%c2_64, %c2_65, %c0_66] : memref<18x18x8xf32, #tpu.memory_space<vmem>>, vector<16x16x8xf32>
    %61 = vector.shape_cast %60 : vector<16x16x8xf32> to vector<256x8xf32>
    %c64 = arith.constant 64 : index
    %c0_67 = arith.constant 0 : index
    %62 = vector.load %arg5[%c64, %c0_67] : memref<72x32xf32, #tpu.memory_space<vmem>>, vector<8x32xf32>
    %cst_68 = arith.constant dense<0.000000e+00> : vector<256x32xf32>
    %63 = tpu.matmul %61, %62, %cst_68 {dimension_numbers = #tpu.dot_dimension_numbers<[1], [0], [0], [1], [0, 0, 1, 1], [], []>} : vector<256x8xf32>, vector<8x32xf32>, vector<256x32xf32> -> vector<256x32xf32>
    %64 = arith.addf %59, %63 : vector<256x32xf32>
    %c0_69 = arith.constant 0 : index
    %c0_70 = arith.constant 0 : index
    %65 = vector.load %arg6[%c0_69, %c0_70] : memref<1x32xf32, #tpu.memory_space<vmem>>, vector<1x32xf32>
    %66 = vector.broadcast %65 : vector<1x32xf32> to vector<256x32xf32>
    %67 = arith.addf %64, %66 : vector<256x32xf32>
    %c0_71 = arith.constant 0 : index
    %c0_72 = arith.constant 0 : index
    %68 = vector.load %arg7[%c0_71, %c0_72] : memref<1x32xf32, #tpu.memory_space<vmem>>, vector<1x32xf32>
    %cst_73 = arith.constant 0.000000e+00 : f32
    %69 = vector.broadcast %cst_73 : f32 to vector<256x32xf32>
    %70 = arith.cmpf oge, %67, %69 : vector<256x32xf32>
    %71 = vector.broadcast %68 : vector<1x32xf32> to vector<256x32xf32>
    %72 = arith.mulf %71, %67 : vector<256x32xf32>
    %73 = arith.select %70, %67, %72 : vector<256x32xi1>, vector<256x32xf32>
    %74 = vector.shape_cast %73 : vector<256x32xf32> to vector<16x16x32xf32>
    %c1_74 = arith.constant 1 : index
    %c1_75 = arith.constant 1 : index
    %c0_76 = arith.constant 0 : index
    %75 = vector.load %arg16[%c1_74, %c1_75, %c0_76] : memref<18x18x32xf32, #tpu.memory_space<vmem>>, vector<16x16x32xf32>
    tpu.vector_store %arg16[%c1_74, %c1_75, %c0_76], %74 {strides = array<i32>} : memref<18x18x32xf32, #tpu.memory_space<vmem>>, vector<16x16x32xf32>,
    %c0_77 = arith.constant 0 : index
    %c0_78 = arith.constant 0 : index
    %c0_79 = arith.constant 0 : index
    %76 = vector.load %arg16[%c0_77, %c0_78, %c0_79] : memref<18x18x32xf32, #tpu.memory_space<vmem>>, vector<16x16x32xf32>
    %77 = vector.shape_cast %76 : vector<16x16x32xf32> to vector<256x32xf32>
    %c0_80 = arith.constant 0 : index
    %c0_81 = arith.constant 0 : index
    %78 = vector.load %arg8[%c0_80, %c0_81] : memref<288x8xf32, #tpu.memory_space<vmem>>, vector<32x8xf32>
    %cst_82 = arith.constant dense<0.000000e+00> : vector<256x8xf32>
    %79 = tpu.matmul %77, %78, %cst_82 {dimension_numbers = #tpu.dot_dimension_numbers<[1], [0], [0], [1], [0, 0, 1, 1], [], []>} : vector<256x32xf32>, vector<32x8xf32>, vector<256x8xf32> -> vector<256x8xf32>
    %c0_83 = arith.constant 0 : index
    %c1_84 = arith.constant 1 : index
    %c0_85 = arith.constant 0 : index
    %80 = vector.load %arg16[%c0_83, %c1_84, %c0_85] : memref<18x18x32xf32, #tpu.memory_space<vmem>>, vector<16x16x32xf32>
    %81 = vector.shape_cast %80 : vector<16x16x32xf32> to vector<256x32xf32>
    %c32_86 = arith.constant 32 : index
    %c0_87 = arith.constant 0 : index
    %82 = vector.load %arg8[%c32_86, %c0_87] : memref<288x8xf32, #tpu.memory_space<vmem>>, vector<32x8xf32>
    %cst_88 = arith.constant dense<0.000000e+00> : vector<256x8xf32>
    %83 = tpu.matmul %81, %82, %cst_88 {dimension_numbers = #tpu.dot_dimension_numbers<[1], [0], [0], [1], [0, 0, 1, 1], [], []>} : vector<256x32xf32>, vector<32x8xf32>, vector<256x8xf32> -> vector<256x8xf32>
    %84 = arith.addf %79, %83 : vector<256x8xf32>
    %c0_89 = arith.constant 0 : index
    %c2_90 = arith.constant 2 : index
    %c0_91 = arith.constant 0 : index
    %85 = vector.load %arg16[%c0_89, %c2_90, %c0_91] : memref<18x18x32xf32, #tpu.memory_space<vmem>>, vector<16x16x32xf32>
    %86 = vector.shape_cast %85 : vector<16x16x32xf32> to vector<256x32xf32>
    %c64_92 = arith.constant 64 : index
    %c0_93 = arith.constant 0 : index
    %87 = vector.load %arg8[%c64_92, %c0_93] : memref<288x8xf32, #tpu.memory_space<vmem>>, vector<32x8xf32>
    %cst_94 = arith.constant dense<0.000000e+00> : vector<256x8xf32>
    %88 = tpu.matmul %86, %87, %cst_94 {dimension_numbers = #tpu.dot_dimension_numbers<[1], [0], [0], [1], [0, 0, 1, 1], [], []>} : vector<256x32xf32>, vector<32x8xf32>, vector<256x8xf32> -> vector<256x8xf32>
    %89 = arith.addf %84, %88 : vector<256x8xf32>
    %c1_95 = arith.constant 1 : index
    %c0_96 = arith.constant 0 : index
    %c0_97 = arith.constant 0 : index
    %90 = vector.load %arg16[%c1_95, %c0_96, %c0_97] : memref<18x18x32xf32, #tpu.memory_space<vmem>>, vector<16x16x32xf32>
    %91 = vector.shape_cast %90 : vector<16x16x32xf32> to vector<256x32xf32>
    %c96 = arith.constant 96 : index
    %c0_98 = arith.constant 0 : index
    %92 = vector.load %arg8[%c96, %c0_98] : memref<288x8xf32, #tpu.memory_space<vmem>>, vector<32x8xf32>
    %cst_99 = arith.constant dense<0.000000e+00> : vector<256x8xf32>
    %93 = tpu.matmul %91, %92, %cst_99 {dimension_numbers = #tpu.dot_dimension_numbers<[1], [0], [0], [1], [0, 0, 1, 1], [], []>} : vector<256x32xf32>, vector<32x8xf32>, vector<256x8xf32> -> vector<256x8xf32>
    %94 = arith.addf %89, %93 : vector<256x8xf32>
    %c1_100 = arith.constant 1 : index
    %c1_101 = arith.constant 1 : index
    %c0_102 = arith.constant 0 : index
    %95 = vector.load %arg16[%c1_100, %c1_101, %c0_102] : memref<18x18x32xf32, #tpu.memory_space<vmem>>, vector<16x16x32xf32>
    %96 = vector.shape_cast %95 : vector<16x16x32xf32> to vector<256x32xf32>
    %c128 = arith.constant 128 : index
    %c0_103 = arith.constant 0 : index
    %97 = vector.load %arg8[%c128, %c0_103] : memref<288x8xf32, #tpu.memory_space<vmem>>, vector<32x8xf32>
    %cst_104 = arith.constant dense<0.000000e+00> : vector<256x8xf32>
    %98 = tpu.matmul %96, %97, %cst_104 {dimension_numbers = #tpu.dot_dimension_numbers<[1], [0], [0], [1], [0, 0, 1, 1], [], []>} : vector<256x32xf32>, vector<32x8xf32>, vector<256x8xf32> -> vector<256x8xf32>
    %99 = arith.addf %94, %98 : vector<256x8xf32>
    %c1_105 = arith.constant 1 : index
    %c2_106 = arith.constant 2 : index
    %c0_107 = arith.constant 0 : index
    %100 = vector.load %arg16[%c1_105, %c2_106, %c0_107] : memref<18x18x32xf32, #tpu.memory_space<vmem>>, vector<16x16x32xf32>
    %101 = vector.shape_cast %100 : vector<16x16x32xf32> to vector<256x32xf32>
    %c160 = arith.constant 160 : index
    %c0_108 = arith.constant 0 : index
    %102 = vector.load %arg8[%c160, %c0_108] : memref<288x8xf32, #tpu.memory_space<vmem>>, vector<32x8xf32>
    %cst_109 = arith.constant dense<0.000000e+00> : vector<256x8xf32>
    %103 = tpu.matmul %101, %102, %cst_109 {dimension_numbers = #tpu.dot_dimension_numbers<[1], [0], [0], [1], [0, 0, 1, 1], [], []>} : vector<256x32xf32>, vector<32x8xf32>, vector<256x8xf32> -> vector<256x8xf32>
    %104 = arith.addf %99, %103 : vector<256x8xf32>
    %c2_110 = arith.constant 2 : index
    %c0_111 = arith.constant 0 : index
    %c0_112 = arith.constant 0 : index
    %105 = vector.load %arg16[%c2_110, %c0_111, %c0_112] : memref<18x18x32xf32, #tpu.memory_space<vmem>>, vector<16x16x32xf32>
    %106 = vector.shape_cast %105 : vector<16x16x32xf32> to vector<256x32xf32>
    %c192 = arith.constant 192 : index
    %c0_113 = arith.constant 0 : index
    %107 = vector.load %arg8[%c192, %c0_113] : memref<288x8xf32, #tpu.memory_space<vmem>>, vector<32x8xf32>
    %cst_114 = arith.constant dense<0.000000e+00> : vector<256x8xf32>
    %108 = tpu.matmul %106, %107, %cst_114 {dimension_numbers = #tpu.dot_dimension_numbers<[1], [0], [0], [1], [0, 0, 1, 1], [], []>} : vector<256x32xf32>, vector<32x8xf32>, vector<256x8xf32> -> vector<256x8xf32>
    %109 = arith.addf %104, %108 : vector<256x8xf32>
    %c2_115 = arith.constant 2 : index
    %c1_116 = arith.constant 1 : index
    %c0_117 = arith.constant 0 : index
    %110 = vector.load %arg16[%c2_115, %c1_116, %c0_117] : memref<18x18x32xf32, #tpu.memory_space<vmem>>, vector<16x16x32xf32>
    %111 = vector.shape_cast %110 : vector<16x16x32xf32> to vector<256x32xf32>
    %c224 = arith.constant 224 : index
    %c0_118 = arith.constant 0 : index
    %112 = vector.load %arg8[%c224, %c0_118] : memref<288x8xf32, #tpu.memory_space<vmem>>, vector<32x8xf32>
    %cst_119 = arith.constant dense<0.000000e+00> : vector<256x8xf32>
    %113 = tpu.matmul %111, %112, %cst_119 {dimension_numbers = #tpu.dot_dimension_numbers<[1], [0], [0], [1], [0, 0, 1, 1], [], []>} : vector<256x32xf32>, vector<32x8xf32>, vector<256x8xf32> -> vector<256x8xf32>
    %114 = arith.addf %109, %113 : vector<256x8xf32>
    %c2_120 = arith.constant 2 : index
    %c2_121 = arith.constant 2 : index
    %c0_122 = arith.constant 0 : index
    %115 = vector.load %arg16[%c2_120, %c2_121, %c0_122] : memref<18x18x32xf32, #tpu.memory_space<vmem>>, vector<16x16x32xf32>
    %116 = vector.shape_cast %115 : vector<16x16x32xf32> to vector<256x32xf32>
    %c256 = arith.constant 256 : index
    %c0_123 = arith.constant 0 : index
    %117 = vector.load %arg8[%c256, %c0_123] : memref<288x8xf32, #tpu.memory_space<vmem>>, vector<32x8xf32>
    %cst_124 = arith.constant dense<0.000000e+00> : vector<256x8xf32>
    %118 = tpu.matmul %116, %117, %cst_124 {dimension_numbers = #tpu.dot_dimension_numbers<[1], [0], [0], [1], [0, 0, 1, 1], [], []>} : vector<256x32xf32>, vector<32x8xf32>, vector<256x8xf32> -> vector<256x8xf32>
    %119 = arith.addf %114, %118 : vector<256x8xf32>
    %c0_125 = arith.constant 0 : index
    %c0_126 = arith.constant 0 : index
    %120 = vector.load %arg9[%c0_125, %c0_126] : memref<1x8xf32, #tpu.memory_space<vmem>>, vector<1x8xf32>
    %121 = vector.broadcast %120 : vector<1x8xf32> to vector<256x8xf32>
    %122 = arith.addf %119, %121 : vector<256x8xf32>
    %c0_127 = arith.constant 0 : index
    %c0_128 = arith.constant 0 : index
    %123 = vector.load %arg10[%c0_127, %c0_128] : memref<1x8xf32, #tpu.memory_space<vmem>>, vector<1x8xf32>
    %cst_129 = arith.constant 0.000000e+00 : f32
    %124 = vector.broadcast %cst_129 : f32 to vector<256x8xf32>
    %125 = arith.cmpf oge, %122, %124 : vector<256x8xf32>
    %126 = vector.broadcast %123 : vector<1x8xf32> to vector<256x8xf32>
    %127 = arith.mulf %126, %122 : vector<256x8xf32>
    %128 = arith.select %125, %122, %127 : vector<256x8xi1>, vector<256x8xf32>
    %129 = arith.subf %128, %18 : vector<256x8xf32>
    %130 = vector.shape_cast %129 : vector<256x8xf32> to vector<16x16x8xf32>
    %c1_130 = arith.constant 1 : index
    %c1_131 = arith.constant 1 : index
    %c0_132 = arith.constant 0 : index
    %131 = vector.load %arg17[%c1_130, %c1_131, %c0_132] : memref<18x18x8xf32, #tpu.memory_space<vmem>>, vector<16x16x8xf32>
    tpu.vector_store %arg17[%c1_130, %c1_131, %c0_132], %130 {strides = array<i32>} : memref<18x18x8xf32, #tpu.memory_space<vmem>>, vector<16x16x8xf32>,
    %c0_133 = arith.constant 0 : index
    %c0_134 = arith.constant 0 : index
    %c0_135 = arith.constant 0 : index
    %132 = vector.load %arg17[%c0_133, %c0_134, %c0_135] : memref<18x18x8xf32, #tpu.memory_space<vmem>>, vector<16x16x8xf32>
    %133 = vector.shape_cast %132 : vector<16x16x8xf32> to vector<256x8xf32>
    %c0_136 = arith.constant 0 : index
    %c0_137 = arith.constant 0 : index
    %134 = vector.load %arg11[%c0_136, %c0_137] : memref<72x32xf32, #tpu.memory_space<vmem>>, vector<8x32xf32>
    %cst_138 = arith.constant dense<0.000000e+00> : vector<256x32xf32>
    %135 = tpu.matmul %133, %134, %cst_138 {dimension_numbers = #tpu.dot_dimension_numbers<[1], [0], [0], [1], [0, 0, 1, 1], [], []>} : vector<256x8xf32>, vector<8x32xf32>, vector<256x32xf32> -> vector<256x32xf32>
    %c0_139 = arith.constant 0 : index
    %c1_140 = arith.constant 1 : index
    %c0_141 = arith.constant 0 : index
    %136 = vector.load %arg17[%c0_139, %c1_140, %c0_141] : memref<18x18x8xf32, #tpu.memory_space<vmem>>, vector<16x16x8xf32>
    %137 = vector.shape_cast %136 : vector<16x16x8xf32> to vector<256x8xf32>
    %c8_142 = arith.constant 8 : index
    %c0_143 = arith.constant 0 : index
    %138 = vector.load %arg11[%c8_142, %c0_143] : memref<72x32xf32, #tpu.memory_space<vmem>>, vector<8x32xf32>
    %cst_144 = arith.constant dense<0.000000e+00> : vector<256x32xf32>
    %139 = tpu.matmul %137, %138, %cst_144 {dimension_numbers = #tpu.dot_dimension_numbers<[1], [0], [0], [1], [0, 0, 1, 1], [], []>} : vector<256x8xf32>, vector<8x32xf32>, vector<256x32xf32> -> vector<256x32xf32>
    %140 = arith.addf %135, %139 : vector<256x32xf32>
    %c0_145 = arith.constant 0 : index
    %c2_146 = arith.constant 2 : index
    %c0_147 = arith.constant 0 : index
    %141 = vector.load %arg17[%c0_145, %c2_146, %c0_147] : memref<18x18x8xf32, #tpu.memory_space<vmem>>, vector<16x16x8xf32>
    %142 = vector.shape_cast %141 : vector<16x16x8xf32> to vector<256x8xf32>
    %c16_148 = arith.constant 16 : index
    %c0_149 = arith.constant 0 : index
    %143 = vector.load %arg11[%c16_148, %c0_149] : memref<72x32xf32, #tpu.memory_space<vmem>>, vector<8x32xf32>
    %cst_150 = arith.constant dense<0.000000e+00> : vector<256x32xf32>
    %144 = tpu.matmul %142, %143, %cst_150 {dimension_numbers = #tpu.dot_dimension_numbers<[1], [0], [0], [1], [0, 0, 1, 1], [], []>} : vector<256x8xf32>, vector<8x32xf32>, vector<256x32xf32> -> vector<256x32xf32>
    %145 = arith.addf %140, %144 : vector<256x32xf32>
    %c1_151 = arith.constant 1 : index
    %c0_152 = arith.constant 0 : index
    %c0_153 = arith.constant 0 : index
    %146 = vector.load %arg17[%c1_151, %c0_152, %c0_153] : memref<18x18x8xf32, #tpu.memory_space<vmem>>, vector<16x16x8xf32>
    %147 = vector.shape_cast %146 : vector<16x16x8xf32> to vector<256x8xf32>
    %c24_154 = arith.constant 24 : index
    %c0_155 = arith.constant 0 : index
    %148 = vector.load %arg11[%c24_154, %c0_155] : memref<72x32xf32, #tpu.memory_space<vmem>>, vector<8x32xf32>
    %cst_156 = arith.constant dense<0.000000e+00> : vector<256x32xf32>
    %149 = tpu.matmul %147, %148, %cst_156 {dimension_numbers = #tpu.dot_dimension_numbers<[1], [0], [0], [1], [0, 0, 1, 1], [], []>} : vector<256x8xf32>, vector<8x32xf32>, vector<256x32xf32> -> vector<256x32xf32>
    %150 = arith.addf %145, %149 : vector<256x32xf32>
    %c1_157 = arith.constant 1 : index
    %c1_158 = arith.constant 1 : index
    %c0_159 = arith.constant 0 : index
    %151 = vector.load %arg17[%c1_157, %c1_158, %c0_159] : memref<18x18x8xf32, #tpu.memory_space<vmem>>, vector<16x16x8xf32>
    %152 = vector.shape_cast %151 : vector<16x16x8xf32> to vector<256x8xf32>
    %c32_160 = arith.constant 32 : index
    %c0_161 = arith.constant 0 : index
    %153 = vector.load %arg11[%c32_160, %c0_161] : memref<72x32xf32, #tpu.memory_space<vmem>>, vector<8x32xf32>
    %cst_162 = arith.constant dense<0.000000e+00> : vector<256x32xf32>
    %154 = tpu.matmul %152, %153, %cst_162 {dimension_numbers = #tpu.dot_dimension_numbers<[1], [0], [0], [1], [0, 0, 1, 1], [], []>} : vector<256x8xf32>, vector<8x32xf32>, vector<256x32xf32> -> vector<256x32xf32>
    %155 = arith.addf %150, %154 : vector<256x32xf32>
    %c1_163 = arith.constant 1 : index
    %c2_164 = arith.constant 2 : index
    %c0_165 = arith.constant 0 : index
    %156 = vector.load %arg17[%c1_163, %c2_164, %c0_165] : memref<18x18x8xf32, #tpu.memory_space<vmem>>, vector<16x16x8xf32>
    %157 = vector.shape_cast %156 : vector<16x16x8xf32> to vector<256x8xf32>
    %c40_166 = arith.constant 40 : index
    %c0_167 = arith.constant 0 : index
    %158 = vector.load %arg11[%c40_166, %c0_167] : memref<72x32xf32, #tpu.memory_space<vmem>>, vector<8x32xf32>
    %cst_168 = arith.constant dense<0.000000e+00> : vector<256x32xf32>
    %159 = tpu.matmul %157, %158, %cst_168 {dimension_numbers = #tpu.dot_dimension_numbers<[1], [0], [0], [1], [0, 0, 1, 1], [], []>} : vector<256x8xf32>, vector<8x32xf32>, vector<256x32xf32> -> vector<256x32xf32>
    %160 = arith.addf %155, %159 : vector<256x32xf32>
    %c2_169 = arith.constant 2 : index
    %c0_170 = arith.constant 0 : index
    %c0_171 = arith.constant 0 : index
    %161 = vector.load %arg17[%c2_169, %c0_170, %c0_171] : memref<18x18x8xf32, #tpu.memory_space<vmem>>, vector<16x16x8xf32>
    %162 = vector.shape_cast %161 : vector<16x16x8xf32> to vector<256x8xf32>
    %c48_172 = arith.constant 48 : index
    %c0_173 = arith.constant 0 : index
    %163 = vector.load %arg11[%c48_172, %c0_173] : memref<72x32xf32, #tpu.memory_space<vmem>>, vector<8x32xf32>
    %cst_174 = arith.constant dense<0.000000e+00> : vector<256x32xf32>
    %164 = tpu.matmul %162, %163, %cst_174 {dimension_numbers = #tpu.dot_dimension_numbers<[1], [0], [0], [1], [0, 0, 1, 1], [], []>} : vector<256x8xf32>, vector<8x32xf32>, vector<256x32xf32> -> vector<256x32xf32>
    %165 = arith.addf %160, %164 : vector<256x32xf32>
    %c2_175 = arith.constant 2 : index
    %c1_176 = arith.constant 1 : index
    %c0_177 = arith.constant 0 : index
    %166 = vector.load %arg17[%c2_175, %c1_176, %c0_177] : memref<18x18x8xf32, #tpu.memory_space<vmem>>, vector<16x16x8xf32>
    %167 = vector.shape_cast %166 : vector<16x16x8xf32> to vector<256x8xf32>
    %c56_178 = arith.constant 56 : index
    %c0_179 = arith.constant 0 : index
    %168 = vector.load %arg11[%c56_178, %c0_179] : memref<72x32xf32, #tpu.memory_space<vmem>>, vector<8x32xf32>
    %cst_180 = arith.constant dense<0.000000e+00> : vector<256x32xf32>
    %169 = tpu.matmul %167, %168, %cst_180 {dimension_numbers = #tpu.dot_dimension_numbers<[1], [0], [0], [1], [0, 0, 1, 1], [], []>} : vector<256x8xf32>, vector<8x32xf32>, vector<256x32xf32> -> vector<256x32xf32>
    %170 = arith.addf %165, %169 : vector<256x32xf32>
    %c2_181 = arith.constant 2 : index
    %c2_182 = arith.constant 2 : index
    %c0_183 = arith.constant 0 : index
    %171 = vector.load %arg17[%c2_181, %c2_182, %c0_183] : memref<18x18x8xf32, #tpu.memory_space<vmem>>, vector<16x16x8xf32>
    %172 = vector.shape_cast %171 : vector<16x16x8xf32> to vector<256x8xf32>
    %c64_184 = arith.constant 64 : index
    %c0_185 = arith.constant 0 : index
    %173 = vector.load %arg11[%c64_184, %c0_185] : memref<72x32xf32, #tpu.memory_space<vmem>>, vector<8x32xf32>
    %cst_186 = arith.constant dense<0.000000e+00> : vector<256x32xf32>
    %174 = tpu.matmul %172, %173, %cst_186 {dimension_numbers = #tpu.dot_dimension_numbers<[1], [0], [0], [1], [0, 0, 1, 1], [], []>} : vector<256x8xf32>, vector<8x32xf32>, vector<256x32xf32> -> vector<256x32xf32>
    %175 = arith.addf %170, %174 : vector<256x32xf32>
    %c0_187 = arith.constant 0 : index
    %c0_188 = arith.constant 0 : index
    %176 = vector.load %arg12[%c0_187, %c0_188] : memref<1x32xf32, #tpu.memory_space<vmem>>, vector<1x32xf32>
    %177 = vector.broadcast %176 : vector<1x32xf32> to vector<256x32xf32>
    %178 = arith.addf %175, %177 : vector<256x32xf32>
    %c0_189 = arith.constant 0 : index
    %c0_190 = arith.constant 0 : index
    %179 = vector.load %arg13[%c0_189, %c0_190] : memref<1x32xf32, #tpu.memory_space<vmem>>, vector<1x32xf32>
    %cst_191 = arith.constant 0.000000e+00 : f32
    %180 = vector.broadcast %cst_191 : f32 to vector<256x32xf32>
    %181 = arith.cmpf oge, %178, %180 : vector<256x32xf32>
    %182 = vector.broadcast %179 : vector<1x32xf32> to vector<256x32xf32>
    %183 = arith.mulf %182, %178 : vector<256x32xf32>
    %184 = arith.select %181, %178, %183 : vector<256x32xi1>, vector<256x32xf32>
    %185 = arith.addf %73, %184 : vector<256x32xf32>
    %c0_192 = arith.constant 0 : index
    %c0_193 = arith.constant 0 : index
    %c0_194 = arith.constant 0 : index
    %186 = vector.load %arg14[%c0_192, %c0_193, %c0_194] : memref<1x256x32xf32, #tpu.memory_space<vmem>>, vector<1x256x32xf32>
    %187 = vector.shape_cast %186 : vector<1x256x32xf32> to vector<256x32xf32>
    %188 = vector.shape_cast %185 : vector<256x32xf32> to vector<1x256x32xf32>
    tpu.vector_store %arg14[%c0_192, %c0_193, %c0_194], %188 {strides = array<i32>} : memref<1x256x32xf32, #tpu.memory_space<vmem>>, vector<1x256x32xf32>,
    return
  }
  func.func @transform_0(%arg0: i32) -> (i32, i32, i32, i32) {
    %c0_i32 = arith.constant 0 : i32
    %c0_i32_0 = arith.constant 0 : i32
    %c0_i32_1 = arith.constant 0 : i32
    %c0_i32_2 = arith.constant 0 : i32
    return %arg0, %c0_i32, %c0_i32_0, %c0_i32_1 : i32, i32, i32, i32
  }
  func.func @transform_1(%arg0: i32) -> (i32, i32) {
    %c0_i32 = arith.constant 0 : i32
    %c0_i32_0 = arith.constant 0 : i32
    %c0_i32_1 = arith.constant 0 : i32
    return %c0_i32, %c0_i32_0 : i32, i32
  }
  func.func @transform_2(%arg0: i32) -> (i32, i32) {
    %c0_i32 = arith.constant 0 : i32
    %c0_i32_0 = arith.constant 0 : i32
    %c0_i32_1 = arith.constant 0 : i32
    return %c0_i32, %c0_i32_0 : i32, i32
  }
  func.func @transform_3(%arg0: i32) -> (i32, i32) {
    %c0_i32 = arith.constant 0 : i32
    %c0_i32_0 = arith.constant 0 : i32
    %c0_i32_1 = arith.constant 0 : i32
    return %c0_i32, %c0_i32_0 : i32, i32
  }
  func.func @transform_4(%arg0: i32) -> (i32, i32) {
    %c0_i32 = arith.constant 0 : i32
    %c0_i32_0 = arith.constant 0 : i32
    %c0_i32_1 = arith.constant 0 : i32
    return %c0_i32, %c0_i32_0 : i32, i32
  }
  func.func @transform_5(%arg0: i32) -> (i32, i32) {
    %c0_i32 = arith.constant 0 : i32
    %c0_i32_0 = arith.constant 0 : i32
    %c0_i32_1 = arith.constant 0 : i32
    return %c0_i32, %c0_i32_0 : i32, i32
  }
  func.func @transform_6(%arg0: i32) -> (i32, i32) {
    %c0_i32 = arith.constant 0 : i32
    %c0_i32_0 = arith.constant 0 : i32
    %c0_i32_1 = arith.constant 0 : i32
    return %c0_i32, %c0_i32_0 : i32, i32
  }
  func.func @transform_7(%arg0: i32) -> (i32, i32) {
    %c0_i32 = arith.constant 0 : i32
    %c0_i32_0 = arith.constant 0 : i32
    %c0_i32_1 = arith.constant 0 : i32
    return %c0_i32, %c0_i32_0 : i32, i32
  }
  func.func @transform_8(%arg0: i32) -> (i32, i32) {
    %c0_i32 = arith.constant 0 : i32
    %c0_i32_0 = arith.constant 0 : i32
    %c0_i32_1 = arith.constant 0 : i32
    return %c0_i32, %c0_i32_0 : i32, i32
  }
  func.func @transform_9(%arg0: i32) -> (i32, i32) {
    %c0_i32 = arith.constant 0 : i32
    %c0_i32_0 = arith.constant 0 : i32
    %c0_i32_1 = arith.constant 0 : i32
    return %c0_i32, %c0_i32_0 : i32, i32
  }
  func.func @transform_10(%arg0: i32) -> (i32, i32) {
    %c0_i32 = arith.constant 0 : i32
    %c0_i32_0 = arith.constant 0 : i32
    %c0_i32_1 = arith.constant 0 : i32
    return %c0_i32, %c0_i32_0 : i32, i32
  }
  func.func @transform_11(%arg0: i32) -> (i32, i32) {
    %c0_i32 = arith.constant 0 : i32
    %c0_i32_0 = arith.constant 0 : i32
    %c0_i32_1 = arith.constant 0 : i32
    return %c0_i32, %c0_i32_0 : i32, i32
  }
  func.func @transform_12(%arg0: i32) -> (i32, i32) {
    %c0_i32 = arith.constant 0 : i32
    %c0_i32_0 = arith.constant 0 : i32
    %c0_i32_1 = arith.constant 0 : i32
    return %c0_i32, %c0_i32_0 : i32, i32
  }
  func.func @transform_13(%arg0: i32) -> (i32, i32, i32) {
    %c0_i32 = arith.constant 0 : i32
    %c0_i32_0 = arith.constant 0 : i32
    %c0_i32_1 = arith.constant 0 : i32
    return %arg0, %c0_i32, %c0_i32_0 : i32, i32, i32
  }
}

</mosaic_0001>

<bundles_post_ra>
// kernel: _lambda_.1
= control target key start
LH: loop header
LB: loop body
LE: loop exit
PB: predicated region body
PF: predicated region fallthrough
CT: control target
= control target key end

     0   :  { %s16263_s25 = smov 0   ;;  %s19893_s0 = inlined_call_operand.vmem [shape: f32[2,16,16,4], index: 0, kind: input, shape index: {}]   ;;  %s19894_s1 = inlined_call_operand.vmem [shape: f32[4,8], index: 1, kind: input, shape index: {}]   ;;  %s19895_s2 = inlined_call_operand.vmem [shape: f32[1,8], index: 2, kind: input, shape index: {}]   ;;  %s19896_s3 = inlined_call_operand.vmem [shape: f32[1,8], index: 3, kind: input, shape index: {}, may-alias: {3,9}]   ;;  %s19897_s4 = inlined_call_operand.vmem [shape: f32[72,32], index: 4, kind: input, shape index: {}]   ;;  %s19898_s5 = inlined_call_operand.vmem [shape: f32[1,32], index: 5, kind: input, shape index: {}]   ;;  %s19899_s6 = inlined_call_operand.vmem [shape: f32[1,32], index: 6, kind: input, shape index: {}, may-alias: {6,12}]   ;;  %s19900_s7 = inlined_call_operand.vmem [shape: f32[288,8], index: 7, kind: input, shape index: {}]   ;;  %s19901_s8 = inlined_call_operand.vmem [shape: f32[1,8], index: 8, kind: input, shape index: {}]   ;;  %s19902_s9 = inlined_call_operand.vmem [shape: f32[1,8], index: 9, kind: input, shape index: {}, may-alias: {3,9}]   ;;  %s19903_s10 = inlined_call_operand.vmem [shape: f32[72,32], index: 10, kind: input, shape index: {}]   ;;  %s19904_s11 = inlined_call_operand.vmem [shape: f32[1,32], index: 11, kind: input, shape index: {}]   ;;  %s19905_s12 = inlined_call_operand.vmem [shape: f32[1,32], index: 12, kind: input, shape index: {}, may-alias: {6,12}]   ;;  %s19906_s13 = inlined_call_operand.vmem [shape: f32[2,256,32], index: 13, kind: output, shape index: {}]  }
   0x1 LB: > { %s12012_s26 = sadd.s32 4294967295, %s16190_s25   ;;  %p12016_p0 = scmp.ge.s32.totalorder %s16190_s25, 1  ;;  %s16190_s25 = sphi %s16263_s25, %s23_s25  }
   0x2   : > { %p387_p1 = scmp.lt.s32.totalorder %s16190_s25, 3 }
   0x4   : > { %p388_p2 = pnand %p12016_p0, %p387_p1 }
   0x6   : > { %391 = sbr.rel (%p388_p2) target bundleno = 2259 (0x8d3), region = 72 }
   0xd   : > { %v639_v0 = vld [vmem:[%s19894_s1] sm:$0xf]  ;;  %vm744_vm0 = vcmask 1043456   ;;  %p431_p3 = scmp.lt.s32.totalorder %s12012_s26, 1  ;;  %vm441_vm1 = vcmask 64512   ;;  %vm444_vm2 = vcmask 58368  }
   0xe   : > { %13881 = vmatprep.subr.msk.mxu0 %vm744_vm0, %v639_v0  ;;  %v19907_v1 = vmov 0.0   ;;  %vm647_vm3 = vcmask 31744   ;;  %v1174_v34 = vld [vmem:[%s19897_s4 + $0x8] sm:$0xff]  ;;  %v2621_v37 = vld [vmem:[%s19897_s4 + $0x20] sm:$0xff]  ;;  %v16613_v60 = vld [vmem:[%s19897_s4 + $0x10] sm:$0xff] }
   0xf   : > { %13882 = vmatpush3.msk.msra.mxu0 %vm744_vm0, %v639_v0  ;;  %s20474_s26 = smov (!%p431_p3, %s12012_s26), 1  ;;  %447 = vst.msk [vmem:[#allocation2 + $0x20] sm:$0xff] %vm441_vm1, %v19907_v1  ;;  %442 = vst.msk [vmem:[#allocation2] sm:$0xff] %vm441_vm1, %v19907_v1  ;;  %14131 = vmatprep.subr.mxu1 %v2621_v37  ;;  %v16575_v38 = vld [vmem:[%s19897_s4 + $0x28] sm:$0xff]  ;;  %v1141_v39 = vld [vmem:[%s19897_s4] sm:$0xff] }
  0x10   : > { %448 = vst.msk [vmem:[#allocation2 + $0x28] sm:$0x3] %vm444_vm2, %v19907_v1  ;;  %445 = vst.msk [vmem:[#allocation2 + $0x10] sm:$0x3] %vm444_vm2, %v19907_v1  ;;  %s12928_s29 = sshll.u32 %s20474_s26, 8  ;;  %13931 = vmatprep.subr.mxu0 %v1174_v34  ;;  %14132 = vmatpush3.msra.mxu1 %v2621_v37 }
  0x11   : > { %443 = vst.msk [vmem:[#allocation2 + $0x8] sm:$0xff] %vm441_vm1, %v19907_v1  ;;  %446 = vst.msk [vmem:[#allocation2 + $0x18] sm:$0xff] %vm441_vm1, %v19907_v1  ;;  %s16498_s15 = scalar_lea.vmem %s19893_s0, %s12928_s29  ;;  %14181 = vmatprep.subr.mxu1 %v16575_v38  ;;  %v16584_v40 = vld [vmem:[%s19895_s2] ss:$0 sm:$0xff]  ;;  %s19732_s16 = scalar_lea.vmem %s19906_s13, %s12928_s29 }
  0x12   : > { %449 = vst.msk [vmem:[#allocation2 + $0x30] sm:$0xff] %vm441_vm1, %v19907_v1  ;;  %450 = vst.msk [vmem:[#allocation2 + $0x38] sm:$0xff] %vm441_vm1, %v19907_v1  ;;  %v607_v2 = vld [vmem:[%s16498_s15] sm:$0xff]  ;;  %v608_v3 = vld [vmem:[%s16498_s15 + $0x8] sm:$0xff] }
  0x13   : > { %451 = vst.msk [vmem:[#allocation2 + $0x40] sm:$0x3] %vm444_vm2, %v19907_v1  ;;  %454 = vst.msk [vmem:[#allocation2 + $0x58] sm:$0x3] %vm444_vm2, %v19907_v1  ;;  %v609_v4 = vld [vmem:[%s16498_s15 + $0x10] sm:$0xff]  ;;  %13883 = vmatprep.mubr.msk.f32.mxu0 %vm647_vm3, %v607_v2  ;;  %v610_v5 = vld [vmem:[%s16498_s15 + $0x18] sm:$0xff] }
  0x14   : > { %452 = vst.msk [vmem:[#allocation2 + $0x48] sm:$0xff] %vm441_vm1, %v19907_v1  ;;  %453 = vst.msk [vmem:[#allocation2 + $0x50] sm:$0xff] %vm441_vm1, %v19907_v1  ;;  %13884 = vmatmul.mubr.msk.f32.vlgmr.msra.gmra.mrb[0].mxu0 %vm647_vm3, %v608_v3  ;;  %v611_v6 = vld [vmem:[%s16498_s15 + $0x20] sm:$0xff]  ;;  %v612_v7 = vld [vmem:[%s16498_s15 + $0x28] sm:$0xff] }
  0x15   : > { %455 = vst.msk [vmem:[#allocation2 + $0x60] sm:$0xff] %vm441_vm1, %v19907_v1  ;;  %456 = vst.msk [vmem:[#allocation2 + $0x68] sm:$0xff] %vm441_vm1, %v19907_v1  ;;  %13886 = vmatprep.mubr.msk.f32.mxu0 %vm647_vm3, %v609_v4  ;;  %v613_v8 = vld [vmem:[%s16498_s15 + $0x30] sm:$0xff]  ;;  %v614_v9 = vld [vmem:[%s16498_s15 + $0x38] sm:$0xff]  ;;  %13932 = vmatpush3.msra.mxu0 %v1174_v34 }
  0x16   : > { %457 = vst.msk [vmem:[#allocation2 + $0x70] sm:$0x3] %vm444_vm2, %v19907_v1  ;;  %460 = vst.msk [vmem:[#allocation2 + $0x88] sm:$0x3] %vm444_vm2, %v19907_v1  ;;  %v615_v10 = vld [vmem:[%s16498_s15 + $0x40] sm:$0xff]  ;;  %v616_v11 = vld [vmem:[%s16498_s15 + $0x48] sm:$0xff]  ;;  %13981 = vmatprep.subr.mxu0 %v1141_v39 }
  0x17   : > { %458 = vst.msk [vmem:[#allocation2 + $0x78] sm:$0xff] %vm441_vm1, %v19907_v1  ;;  %459 = vst.msk [vmem:[#allocation2 + $0x80] sm:$0xff] %vm441_vm1, %v19907_v1  ;;  %v617_v12 = vld [vmem:[%s16498_s15 + $0x50] sm:$0xff]  ;;  %v618_v13 = vld [vmem:[%s16498_s15 + $0x58] sm:$0xff] }
  0x18   : > { %461 = vst.msk [vmem:[#allocation2 + $0x90] sm:$0xff] %vm441_vm1, %v19907_v1  ;;  %462 = vst.msk [vmem:[#allocation2 + $0x98] sm:$0xff] %vm441_vm1, %v19907_v1  ;;  %13887 = vmatmul.mubr.msk.f32.gmra.mrb[2].mxu0 %vm647_vm3, %v610_v5  ;;  %v619_v14 = vld [vmem:[%s16498_s15 + $0x60] sm:$0xff]  ;;  %v620_v15 = vld [vmem:[%s16498_s15 + $0x68] sm:$0xff] }
  0x19   : > { %463 = vst.msk [vmem:[#allocation2 + $0xa0] sm:$0x3] %vm444_vm2, %v19907_v1  ;;  %466 = vst.msk [vmem:[#allocation2 + $0xb8] sm:$0x3] %vm444_vm2, %v19907_v1  ;;  %13889 = vmatprep.mubr.msk.f32.mxu0 %vm647_vm3, %v611_v6  ;;  %v621_v16 = vld [vmem:[%s16498_s15 + $0x70] sm:$0xff]  ;;  %v622_v17 = vld [vmem:[%s16498_s15 + $0x78] sm:$0xff] }
  0x1a   : > { %464 = vst.msk [vmem:[#allocation2 + $0xa8] sm:$0xff] %vm441_vm1, %v19907_v1  ;;  %465 = vst.msk [vmem:[#allocation2 + $0xb0] sm:$0xff] %vm441_vm1, %v19907_v1  ;;  %v623_v18 = vld [vmem:[%s16498_s15 + $0x80] sm:$0xff]  ;;  %v624_v19 = vld [vmem:[%s16498_s15 + $0x88] sm:$0xff] }
  0x1b   : > { %467 = vst.msk [vmem:[#allocation2 + $0xc0] sm:$0xff] %vm441_vm1, %v19907_v1  ;;  %468 = vst.msk [vmem:[#allocation2 + $0xc8] sm:$0xff] %vm441_vm1, %v19907_v1  ;;  %v625_v20 = vld [vmem:[%s16498_s15 + $0x90] sm:$0xff]  ;;  %v626_v21 = vld [vmem:[%s16498_s15 + $0x98] sm:$0xff] }
  0x1c   : > { %469 = vst.msk [vmem:[#allocation2 + $0xd0] sm:$0x3] %vm444_vm2, %v19907_v1  ;;  %472 = vst.msk [vmem:[#allocation2 + $0xe8] sm:$0x3] %vm444_vm2, %v19907_v1  ;;  %13890 = vmatmul.mubr.msk.f32.gmra.mrb[4].mxu0 %vm647_vm3, %v612_v7  ;;  %v627_v22 = vld [vmem:[%s16498_s15 + $0xa0] sm:$0xff]  ;;  %v628_v23 = vld [vmem:[%s16498_s15 + $0xa8] sm:$0xff] }
  0x1d   : > { %470 = vst.msk [vmem:[#allocation2 + $0xd8] sm:$0xff] %vm441_vm1, %v19907_v1  ;;  %471 = vst.msk [vmem:[#allocation2 + $0xe0] sm:$0xff] %vm441_vm1, %v19907_v1  ;;  %13892 = vmatprep.mubr.msk.f32.mxu0 %vm647_vm3, %v613_v8  ;;  %v629_v24 = vld [vmem:[%s16498_s15 + $0xb0] sm:$0xff]  ;;  %v630_v25 = vld [vmem:[%s16498_s15 + $0xb8] sm:$0xff] }
  0x1e   : > { %473 = vst.msk [vmem:[#allocation2 + $0xf0] sm:$0xff] %vm441_vm1, %v19907_v1  ;;  %474 = vst.msk [vmem:[#allocation2 + $0xf8] sm:$0xff] %vm441_vm1, %v19907_v1  ;;  %v631_v26 = vld [vmem:[%s16498_s15 + $0xc0] sm:$0xff]  ;;  %v632_v27 = vld [vmem:[%s16498_s15 + $0xc8] sm:$0xff] }
  0x1f   : > { %475 = vst.msk [vmem:[#allocation2 + $0x100] sm:$0x3] %vm444_vm2, %v19907_v1  ;;  %478 = vst.msk [vmem:[#allocation2 + $0x118] sm:$0x3] %vm444_vm2, %v19907_v1  ;;  %v633_v28 = vld [vmem:[%s16498_s15 + $0xd0] sm:$0xff]  ;;  %v634_v29 = vld [vmem:[%s16498_s15 + $0xd8] sm:$0xff] }
  0x20   : > { %476 = vst.msk [vmem:[#allocation2 + $0x108] sm:$0xff] %vm441_vm1, %v19907_v1  ;;  %477 = vst.msk [vmem:[#allocation2 + $0x110] sm:$0xff] %vm441_vm1, %v19907_v1  ;;  %13893 = vmatmul.mubr.msk.f32.gmra.mrb[6].mxu0 %vm647_vm3, %v614_v9  ;;  %v635_v30 = vld [vmem:[%s16498_s15 + $0xe0] sm:$0xff]  ;;  %v636_v31 = vld [vmem:[%s16498_s15 + $0xe8] sm:$0xff] }
  0x21   : > { %479 = vst.msk [vmem:[#allocation2 + $0x120] sm:$0xff] %vm441_vm1, %v19907_v1  ;;  %480 = vst.msk [vmem:[#allocation2 + $0x128] sm:$0xff] %vm441_vm1, %v19907_v1  ;;  %13895 = vmatprep.mubr.msk.f32.mxu0 %vm647_vm3, %v615_v10  ;;  %v637_v32 = vld [vmem:[%s16498_s15 + $0xf0] sm:$0xff]  ;;  %v638_v33 = vld [vmem:[%s16498_s15 + $0xf8] sm:$0xff] }
  0x22   : > { %481 = vst.msk [vmem:[#allocation2 + $0x130] sm:$0x3] %vm444_vm2, %v19907_v1  ;;  %484 = vst.msk [vmem:[#allocation2 + $0x148] sm:$0x3] %vm444_vm2, %v19907_v1  ;;  %v1142_v35 = vld [vmem:[#allocation2 + $0x1] sm:$0xff]  ;;  %v1143_v36 = vld [vmem:[#allocation2 + $0x9] sm:$0xff] }
  0x23   : > { %482 = vst.msk [vmem:[#allocation2 + $0x138] sm:$0xff] %vm441_vm1, %v19907_v1  ;;  %483 = vst.msk [vmem:[#allocation2 + $0x140] sm:$0xff] %vm441_vm1, %v19907_v1  ;;  %v16589_v42 = vld [vmem:[%s19896_s3] ss:$0 sm:$0xff] }
  0x24   : > { %485 = vst.msk [vmem:[#allocation2 + $0x150] sm:$0xff] %vm441_vm1, %v19907_v1  ;;  %486 = vst.msk [vmem:[#allocation2 + $0x158] sm:$0xff] %vm441_vm1, %v19907_v1  ;;  %13896 = vmatmul.mubr.msk.f32.gmra.mrb[8].mxu0 %vm647_vm3, %v616_v11  ;;  %v16641_v11 = vld [vmem:[%s19897_s4 + $0x30] sm:$0xff] }
  0x25   : > { %487 = vst.msk [vmem:[#allocation2 + $0x160] sm:$0x3] %vm444_vm2, %v19907_v1  ;;  %490 = vst.msk [vmem:[#allocation2 + $0x178] sm:$0x3] %vm444_vm2, %v19907_v1  ;;  %13898 = vmatprep.mubr.msk.f32.mxu0 %vm647_vm3, %v617_v12 }
  0x26   : > { %488 = vst.msk [vmem:[#allocation2 + $0x168] sm:$0xff] %vm441_vm1, %v19907_v1  ;;  %489 = vst.msk [vmem:[#allocation2 + $0x170] sm:$0xff] %vm441_vm1, %v19907_v1 }
  0x27   : > { %491 = vst.msk [vmem:[#allocation2 + $0x180] sm:$0xff] %vm441_vm1, %v19907_v1  ;;  %492 = vst.msk [vmem:[#allocation2 + $0x188] sm:$0xff] %vm441_vm1, %v19907_v1 }
  0x28   : > { %493 = vst.msk [vmem:[#allocation2 + $0x190] sm:$0x3] %vm444_vm2, %v19907_v1  ;;  %496 = vst.msk [vmem:[#allocation2 + $0x1a8] sm:$0x3] %vm444_vm2, %v19907_v1  ;;  %13899 = vmatmul.mubr.msk.f32.gmra.mrb[10].mxu0 %vm647_vm3, %v618_v13 }
  0x29   : > { %494 = vst.msk [vmem:[#allocation2 + $0x198] sm:$0xff] %vm441_vm1, %v19907_v1  ;;  %495 = vst.msk [vmem:[#allocation2 + $0x1a0] sm:$0xff] %vm441_vm1, %v19907_v1  ;;  %13901 = vmatprep.mubr.msk.f32.mxu0 %vm647_vm3, %v619_v14 }
  0x2a   : > { %553 = vst.msk [vmem:[#allocation4] sm:$0xff] %vm441_vm1, %v19907_v1  ;;  %554 = vst.msk [vmem:[#allocation4 + $0x8] sm:$0xff] %vm441_vm1, %v19907_v1 }
  0x2b   : > { %555 = vst.msk [vmem:[#allocation4 + $0x10] sm:$0x3] %vm444_vm2, %v19907_v1  ;;  %558 = vst.msk [vmem:[#allocation4 + $0x28] sm:$0x3] %vm444_vm2, %v19907_v1 }
  0x2c   : > { %556 = vst.msk [vmem:[#allocation4 + $0x18] sm:$0xff] %vm441_vm1, %v19907_v1  ;;  %557 = vst.msk [vmem:[#allocation4 + $0x20] sm:$0xff] %vm441_vm1, %v19907_v1  ;;  %13902 = vmatmul.mubr.msk.f32.gmra.mrb[12].mxu0 %vm647_vm3, %v620_v15 }
  0x2d   : > { %559 = vst.msk [vmem:[#allocation4 + $0x30] sm:$0xff] %vm441_vm1, %v19907_v1  ;;  %560 = vst.msk [vmem:[#allocation4 + $0x38] sm:$0xff] %vm441_vm1, %v19907_v1  ;;  %13904 = vmatprep.mubr.msk.f32.mxu0 %vm647_vm3, %v621_v16 }
  0x2e   : > { %561 = vst.msk [vmem:[#allocation4 + $0x40] sm:$0x3] %vm444_vm2, %v19907_v1  ;;  %564 = vst.msk [vmem:[#allocation4 + $0x58] sm:$0x3] %vm444_vm2, %v19907_v1 }
  0x2f   : > { %562 = vst.msk [vmem:[#allocation4 + $0x48] sm:$0xff] %vm441_vm1, %v19907_v1  ;;  %563 = vst.msk [vmem:[#allocation4 + $0x50] sm:$0xff] %vm441_vm1, %v19907_v1 }
  0x30   : > { %565 = vst.msk [vmem:[#allocation4 + $0x60] sm:$0xff] %vm441_vm1, %v19907_v1  ;;  %566 = vst.msk [vmem:[#allocation4 + $0x68] sm:$0xff] %vm441_vm1, %v19907_v1  ;;  %13905 = vmatmul.mubr.msk.f32.gmra.mrb[14].mxu0 %vm647_vm3, %v622_v17 }
  0x31   : > { %567 = vst.msk [vmem:[#allocation4 + $0x70] sm:$0x3] %vm444_vm2, %v19907_v1  ;;  %570 = vst.msk [vmem:[#allocation4 + $0x88] sm:$0x3] %vm444_vm2, %v19907_v1  ;;  %13907 = vmatprep.mubr.msk.f32.mxu0 %vm647_vm3, %v623_v18 }
  0x32   : > { %568 = vst.msk [vmem:[#allocation4 + $0x78] sm:$0xff] %vm441_vm1, %v19907_v1  ;;  %569 = vst.msk [vmem:[#allocation4 + $0x80] sm:$0xff] %vm441_vm1, %v19907_v1 }
  0x33   : > { %571 = vst.msk [vmem:[#allocation4 + $0x90] sm:$0xff] %vm441_vm1, %v19907_v1  ;;  %572 = vst.msk [vmem:[#allocation4 + $0x98] sm:$0xff] %vm441_vm1, %v19907_v1 }
  0x34   : > { %573 = vst.msk [vmem:[#allocation4 + $0xa0] sm:$0x3] %vm444_vm2, %v19907_v1  ;;  %576 = vst.msk [vmem:[#allocation4 + $0xb8] sm:$0x3] %vm444_vm2, %v19907_v1  ;;  %13908 = vmatmul.mubr.msk.f32.gmra.mrb[16].mxu0 %vm647_vm3, %v624_v19 }
  0x35   : > { %574 = vst.msk [vmem:[#allocation4 + $0xa8] sm:$0xff] %vm441_vm1, %v19907_v1  ;;  %575 = vst.msk [vmem:[#allocation4 + $0xb0] sm:$0xff] %vm441_vm1, %v19907_v1  ;;  %13910 = vmatprep.mubr.msk.f32.mxu0 %vm647_vm3, %v625_v20 }
  0x36   : > { %577 = vst.msk [vmem:[#allocation4 + $0xc0] sm:$0xff] %vm441_vm1, %v19907_v1  ;;  %578 = vst.msk [vmem:[#allocation4 + $0xc8] sm:$0xff] %vm441_vm1, %v19907_v1 }
  0x37   : > { %579 = vst.msk [vmem:[#allocation4 + $0xd0] sm:$0x3] %vm444_vm2, %v19907_v1  ;;  %582 = vst.msk [vmem:[#allocation4 + $0xe8] sm:$0x3] %vm444_vm2, %v19907_v1 }
  0x38   : > { %580 = vst.msk [vmem:[#allocation4 + $0xd8] sm:$0xff] %vm441_vm1, %v19907_v1  ;;  %581 = vst.msk [vmem:[#allocation4 + $0xe0] sm:$0xff] %vm441_vm1, %v19907_v1  ;;  %13911 = vmatmul.mubr.msk.f32.gmra.mrb[18].mxu0 %vm647_vm3, %v626_v21 }
  0x39   : > { %583 = vst.msk [vmem:[#allocation4 + $0xf0] sm:$0xff] %vm441_vm1, %v19907_v1  ;;  %584 = vst.msk [vmem:[#allocation4 + $0xf8] sm:$0xff] %vm441_vm1, %v19907_v1  ;;  %13913 = vmatprep.mubr.msk.f32.mxu0 %vm647_vm3, %v627_v22 }
  0x3a   : > { %585 = vst.msk [vmem:[#allocation4 + $0x100] sm:$0x3] %vm444_vm2, %v19907_v1  ;;  %588 = vst.msk [vmem:[#allocation4 + $0x118] sm:$0x3] %vm444_vm2, %v19907_v1 }
  0x3b   : > { %586 = vst.msk [vmem:[#allocation4 + $0x108] sm:$0xff] %vm441_vm1, %v19907_v1  ;;  %587 = vst.msk [vmem:[#allocation4 + $0x110] sm:$0xff] %vm441_vm1, %v19907_v1 }
  0x3c   : > { %589 = vst.msk [vmem:[#allocation4 + $0x120] sm:$0xff] %vm441_vm1, %v19907_v1  ;;  %590 = vst.msk [vmem:[#allocation4 + $0x128] sm:$0xff] %vm441_vm1, %v19907_v1  ;;  %13914 = vmatmul.mubr.msk.f32.gmra.mrb[20].mxu0 %vm647_vm3, %v628_v23 }
  0x3d   : > { %591 = vst.msk [vmem:[#allocation4 + $0x130] sm:$0x3] %vm444_vm2, %v19907_v1  ;;  %594 = vst.msk [vmem:[#allocation4 + $0x148] sm:$0x3] %vm444_vm2, %v19907_v1  ;;  %13916 = vmatprep.mubr.msk.f32.mxu0 %vm647_vm3, %v629_v24 }
  0x3e   : > { %592 = vst.msk [vmem:[#allocation4 + $0x138] sm:$0xff] %vm441_vm1, %v19907_v1  ;;  %593 = vst.msk [vmem:[#allocation4 + $0x140] sm:$0xff] %vm441_vm1, %v19907_v1 }
  0x3f   : > { %595 = vst.msk [vmem:[#allocation4 + $0x150] sm:$0xff] %vm441_vm1, %v19907_v1  ;;  %596 = vst.msk [vmem:[#allocation4 + $0x158] sm:$0xff] %vm441_vm1, %v19907_v1 }
  0x40   : > { %597 = vst.msk [vmem:[#allocation4 + $0x160] sm:$0x3] %vm444_vm2, %v19907_v1  ;;  %600 = vst.msk [vmem:[#allocation4 + $0x178] sm:$0x3] %vm444_vm2, %v19907_v1  ;;  %13917 = vmatmul.mubr.msk.f32.gmra.mrb[22].mxu0 %vm647_vm3, %v630_v25 }
  0x41   : > { %598 = vst.msk [vmem:[#allocation4 + $0x168] sm:$0xff] %vm441_vm1, %v19907_v1  ;;  %599 = vst.msk [vmem:[#allocation4 + $0x170] sm:$0xff] %vm441_vm1, %v19907_v1  ;;  %13919 = vmatprep.mubr.msk.f32.mxu0 %vm647_vm3, %v631_v26 }
  0x42   : > { %601 = vst.msk [vmem:[#allocation4 + $0x180] sm:$0xff] %vm441_vm1, %v19907_v1  ;;  %602 = vst.msk [vmem:[#allocation4 + $0x188] sm:$0xff] %vm441_vm1, %v19907_v1 }
  0x43   : > { %603 = vst.msk [vmem:[#allocation4 + $0x190] sm:$0x3] %vm444_vm2, %v19907_v1  ;;  %606 = vst.msk [vmem:[#allocation4 + $0x1a8] sm:$0x3] %vm444_vm2, %v19907_v1 }
  0x44   : > { %604 = vst.msk [vmem:[#allocation4 + $0x198] sm:$0xff] %vm441_vm1, %v19907_v1  ;;  %605 = vst.msk [vmem:[#allocation4 + $0x1a0] sm:$0xff] %vm441_vm1, %v19907_v1  ;;  %13920 = vmatmul.mubr.msk.f32.gmra.mrb[24].mxu0 %vm647_vm3, %v632_v27 }
  0x45   : > { %13922 = vmatprep.mubr.msk.f32.mxu0 %vm647_vm3, %v633_v28 }
  0x48   : > { %13923 = vmatmul.mubr.msk.f32.gmra.mrb[26].mxu0 %vm647_vm3, %v634_v29 }
  0x49   : > { %13925 = vmatprep.mubr.msk.f32.mxu0 %vm647_vm3, %v635_v30 }
  0x4c   : > { %13926 = vmatmul.mubr.msk.f32.gmra.mrb[28].mxu0 %vm647_vm3, %v636_v31 }
  0x4d   : > { %13928 = vmatprep.mubr.msk.f32.mxu0 %vm647_vm3, %v637_v32 }
  0x50   : > { %13929 = vmatmul.mubr.msk.f32.gmra.mrb[30].mxu0 %vm647_vm3, %v638_v33 }
  0x51   : > { %13933 = vmatprep.mubr.msk.f32.mxu0 %vm441_vm1, %v1142_v35 }
  0x54   : > { %13934 = vmatmul.mubr.msk.f32.vlgmr.msra.gmra.mrb[32].mxu0 %vm441_vm1, %v1143_v36 }
  0x55   : > { %13982 = vmatpush3.msra.mxu0 %v1141_v39 }
  0x56   : > { %14031 = vmatprep.subr.mxu0 %v16613_v60 }
  0xe7   : > { %v13885_v41 = vpop.f32.mrb[0].mxu0 }
  0xe8   : > { %v820_v43 = vadd.f32 %v13885_v41, %v16584_v40  ;;  %v814_v44 = vpop.f32.mrb[1].mxu0 }
  0xe9   : > { %v815_v45 = vadd.f32 %v16584_v40, %v814_v44 }
  0xea   : > { %vm975_vm4 = vcmp.ge.f32.partialorder %v820_v43, 0.0  ;;  %v1013_v46 = vmul.f32 %v16589_v42, %v820_v43 }
  0xeb   : > { %vm974_vm5 = vcmp.ge.f32.partialorder %v815_v45, 0.0  ;;  %v1012_v47 = vmul.f32 %v16589_v42, %v815_v45  ;;  %v13888_v48 = vpop.f32.mrb[2].mxu0 }
  0xec   : > { %v16595_v49 = vsel %vm975_vm4, %v820_v43, %v1013_v46  ;;  %v830_v50 = vadd.f32 %v13888_v48, %v16584_v40  ;;  %v824_v51 = vpop.f32.mrb[3].mxu0 }
  0xed   : > { %20128 = vst [vmem:[#allocation5_spill] sm:$0xff] %v16595_v49  ;;  %1078 = vst.msk [vmem:[#allocation2 + $0x21] sm:$0xff] %vm441_vm1, %v16595_v49  ;;  %v16600_v52 = vsel %vm974_vm5, %v815_v45, %v1012_v47  ;;  %v825_v53 = vadd.f32 %v16584_v40, %v824_v51 }
  0xee   : > { %20129 = vst [vmem:[#allocation6_spill] sm:$0xff] %v16600_v52  ;;  %1077 = vst.msk [vmem:[#allocation2 + $0x19] sm:$0xff] %vm441_vm1, %v16600_v52  ;;  %vm977_vm6 = vcmp.ge.f32.partialorder %v830_v50, 0.0  ;;  %v1015_v54 = vmul.f32 %v16589_v42, %v830_v50 }
  0xef   : > { %vm976_vm7 = vcmp.ge.f32.partialorder %v825_v53, 0.0  ;;  %v1014_v55 = vmul.f32 %v16589_v42, %v825_v53  ;;  %v13891_v56 = vpop.f32.mrb[4].mxu0 }
  0xf0   : > { %v16607_v57 = vsel %vm977_vm6, %v830_v50, %v1015_v54  ;;  %v840_v58 = vadd.f32 %v13891_v56, %v16584_v40  ;;  %v834_v59 = vpop.f32.mrb[5].mxu0 }
  0xf1   : > { %20130 = vst [vmem:[#allocation7_spill] sm:$0xff] %v16607_v57  ;;  %1080 = vst.msk [vmem:[#allocation2 + $0x39] sm:$0xff] %vm441_vm1, %v16607_v57  ;;  %v16617_v61 = vsel %vm976_vm7, %v825_v53, %v1014_v55  ;;  %v835_v62 = vadd.f32 %v16584_v40, %v834_v59 }
  0xf2   : > { %20131 = vst [vmem:[#allocation8_spill] sm:$0xff] %v16617_v61  ;;  %1079 = vst.msk [vmem:[#allocation2 + $0x31] sm:$0xff] %vm441_vm1, %v16617_v61  ;;  %vm979_vm8 = vcmp.ge.f32.partialorder %v840_v58, 0.0  ;;  %v1017_v63 = vmul.f32 %v16589_v42, %v840_v58 }
  0xf3   : > { %vm978_vm9 = vcmp.ge.f32.partialorder %v835_v62, 0.0  ;;  %v1016_v0 = vmul.f32 %v16589_v42, %v835_v62  ;;  %v13894_v2 = vpop.f32.mrb[6].mxu0 }
  0xf4   : > { %v16625_v3 = vsel %vm979_vm8, %v840_v58, %v1017_v63  ;;  %v850_v4 = vadd.f32 %v13894_v2, %v16584_v40  ;;  %v844_v5 = vpop.f32.mrb[7].mxu0  ;;  %v1145_v10 = vld [vmem:[#allocation2 + $0x21] sm:$0xff] }
  0xf5   : > { %20132 = vst [vmem:[#allocation9_spill] sm:$0xff] %v16625_v3  ;;  %1082 = vst.msk [vmem:[#allocation2 + $0x51] sm:$0xff] %vm441_vm1, %v16625_v3  ;;  %v16630_v6 = vsel %vm978_vm9, %v835_v62, %v1016_v0  ;;  %v845_v7 = vadd.f32 %v16584_v40, %v844_v5  ;;  %v1144_v8 = vld [vmem:[#allocation2 + $0x19] sm:$0xff] }
  0xf6   : > { %20133 = vst [vmem:[#allocation10_spill] sm:$0xff] %v16630_v6  ;;  %1081 = vst.msk [vmem:[#allocation2 + $0x49] sm:$0xff] %vm441_vm1, %v16630_v6  ;;  %vm981_vm10 = vcmp.ge.f32.partialorder %v850_v4, 0.0  ;;  %v1019_v9 = vmul.f32 %v16589_v42, %v850_v4  ;;  %13936 = vmatprep.mubr.msk.f32.mxu0 %vm441_vm1, %v1144_v8  ;;  %14133 = vmatprep.mubr.msk.f32.mxu1 %vm441_vm1, %v1144_v8  ;;  %v16966_v1 = vld [vmem:[#allocation2 + $0x18] sm:$0xff] }
  0xf7   : > { %vm980_vm11 = vcmp.ge.f32.partialorder %v845_v7, 0.0  ;;  %v1018_v12 = vmul.f32 %v16589_v42, %v845_v7  ;;  %v13897_v13 = vpop.f32.mrb[8].mxu0  ;;  %13937 = vmatmul.mubr.msk.f32.gmra.mrb[34].mxu0 %vm441_vm1, %v1145_v10  ;;  %14134 = vmatmul.mubr.msk.f32.vlgmr.msra.gmra.mrb[0].mxu1 %vm441_vm1, %v1145_v10  ;;  %20187 = vst [vmem:[#allocation64_spill] sm:$0xff] %v16966_v1 }
  0xf8   : > { %v16646_v14 = vsel %vm981_vm10, %v850_v4, %v1019_v9  ;;  %v860_v15 = vadd.f32 %v13897_v13, %v16584_v40  ;;  %14182 = vmatpush3.msra.mxu1 %v16575_v38  ;;  %v854_v16 = vpop.f32.mrb[9].mxu0  ;;  %v1147_v21 = vld [vmem:[#allocation2 + $0x39] sm:$0xff] }
  0xf9   : > { %20134 = vst [vmem:[#allocation11_spill] sm:$0xff] %v16646_v14  ;;  %1084 = vst.msk [vmem:[#allocation2 + $0x69] sm:$0xff] %vm441_vm1, %v16646_v14  ;;  %v16652_v17 = vsel %vm980_vm11, %v845_v7, %v1018_v12  ;;  %v855_v18 = vadd.f32 %v16584_v40, %v854_v16  ;;  %v1146_v19 = vld [vmem:[#allocation2 + $0x31] sm:$0xff]  ;;  %14231 = vmatprep.subr.mxu1 %v16641_v11 }
  0xfa   : > { %20135 = vst [vmem:[#allocation12_spill] sm:$0xff] %v16652_v17  ;;  %1083 = vst.msk [vmem:[#allocation2 + $0x61] sm:$0xff] %vm441_vm1, %v16652_v17  ;;  %vm983_vm12 = vcmp.ge.f32.partialorder %v860_v15, 0.0  ;;  %v1021_v20 = vmul.f32 %v16589_v42, %v860_v15  ;;  %13939 = vmatprep.mubr.msk.f32.mxu0 %vm441_vm1, %v1146_v19  ;;  %14136 = vmatprep.mubr.msk.f32.mxu1 %vm441_vm1, %v1146_v19 }
  0xfb   : > { %vm982_vm13 = vcmp.ge.f32.partialorder %v855_v18, 0.0  ;;  %v1020_v22 = vmul.f32 %v16589_v42, %v855_v18  ;;  %v13900_v23 = vpop.f32.mrb[10].mxu0  ;;  %13940 = vmatmul.mubr.msk.f32.gmra.mrb[36].mxu0 %vm441_vm1, %v1147_v21  ;;  %14137 = vmatmul.mubr.msk.f32.gmra.mrb[2].mxu1 %vm441_vm1, %v1147_v21 }
  0xfc   : > { %v16664_v24 = vsel %vm983_vm12, %v860_v15, %v1021_v20  ;;  %v870_v25 = vadd.f32 %v13900_v23, %v16584_v40  ;;  %v864_v26 = vpop.f32.mrb[11].mxu0  ;;  %v16677_v31 = vld [vmem:[#allocation2 + $0x51] sm:$0xff] }
  0xfd   : > { %20136 = vst [vmem:[#allocation13_spill] sm:$0xff] %v16664_v24  ;;  %1086 = vst.msk [vmem:[#allocation2 + $0x81] sm:$0xff] %vm441_vm1, %v16664_v24  ;;  %v16669_v27 = vsel %vm982_vm13, %v855_v18, %v1020_v22  ;;  %v865_v28 = vadd.f32 %v16584_v40, %v864_v26  ;;  %v1148_v29 = vld [vmem:[#allocation2 + $0x49] sm:$0xff] }
  0xfe   : > { %20137 = vst [vmem:[#allocation14_spill] sm:$0xff] %v16669_v27  ;;  %1085 = vst.msk [vmem:[#allocation2 + $0x79] sm:$0xff] %vm441_vm1, %v16669_v27  ;;  %vm985_vm14 = vcmp.ge.f32.partialorder %v870_v25, 0.0  ;;  %v1023_v30 = vmul.f32 %v16589_v42, %v870_v25  ;;  %13942 = vmatprep.mubr.msk.f32.mxu0 %vm441_vm1, %v1148_v29  ;;  %14139 = vmatprep.mubr.msk.f32.mxu1 %vm441_vm1, %v1148_v29 }
  0xff   : > { %20138 = vst [vmem:[#allocation15_spill] sm:$0xff] %v16677_v31  ;;  %vm984_vm15 = vcmp.ge.f32.partialorder %v865_v28, 0.0  ;;  %v1022_v32 = vmul.f32 %v16589_v42, %v865_v28  ;;  %v13903_v33 = vpop.f32.mrb[12].mxu0  ;;  %13943 = vmatmul.mubr.msk.f32.gmra.mrb[38].mxu0 %vm441_vm1, %v16677_v31  ;;  %14140 = vmatmul.mubr.msk.f32.gmra.mrb[4].mxu1 %vm441_vm1, %v16677_v31 }
 0x100   : > { %v16684_v34 = vsel %vm985_vm14, %v870_v25, %v1023_v30  ;;  %v880_v35 = vadd.f32 %v13903_v33, %v16584_v40  ;;  %v874_v36 = vpop.f32.mrb[13].mxu0  ;;  %v16701_v43 = vld [vmem:[#allocation2 + $0x69] sm:$0xff] }
 0x101   : > { %20139 = vst [vmem:[#allocation16_spill] sm:$0xff] %v16684_v34  ;;  %1088 = vst.msk [vmem:[#allocation2 + $0x99] sm:$0xff] %vm441_vm1, %v16684_v34  ;;  %v16689_v37 = vsel %vm984_vm15, %v865_v28, %v1022_v32  ;;  %v875_v38 = vadd.f32 %v16584_v40, %v874_v36  ;;  %v16692_v39 = vld [vmem:[#allocation2 + $0x61] sm:$0xff] }
 0x102   : > { %20140 = vst [vmem:[#allocation17_spill] sm:$0xff] %v16689_v37  ;;  %20141 = vst [vmem:[#allocation18_spill] sm:$0xff] %v16692_v39  ;;  %vm987_vm0 = vcmp.ge.f32.partialorder %v880_v35, 0.0  ;;  %v1025_v41 = vmul.f32 %v16589_v42, %v880_v35  ;;  %13945 = vmatprep.mubr.msk.f32.mxu0 %vm441_vm1, %v16692_v39  ;;  %14142 = vmatprep.mubr.msk.f32.mxu1 %vm441_vm1, %v16692_v39 }
 0x103   : > { %1087 = vst.msk [vmem:[#allocation2 + $0x91] sm:$0xff] %vm441_vm1, %v16689_v37  ;;  %20142 = vst [vmem:[#allocation19_spill] sm:$0xff] %v16701_v43  ;;  %vm986_vm2 = vcmp.ge.f32.partialorder %v875_v38, 0.0  ;;  %v1024_v44 = vmul.f32 %v16589_v42, %v875_v38  ;;  %v13906_v45 = vpop.f32.mrb[14].mxu0  ;;  %13946 = vmatmul.mubr.msk.f32.gmra.mrb[40].mxu0 %vm441_vm1, %v16701_v43  ;;  %14143 = vmatmul.mubr.msk.f32.gmra.mrb[6].mxu1 %vm441_vm1, %v16701_v43 }
 0x104   : > { %v16708_v46 = vsel %vm987_vm0, %v880_v35, %v1025_v41  ;;  %v890_v47 = vadd.f32 %v13906_v45, %v16584_v40  ;;  %v884_v48 = vpop.f32.mrb[15].mxu0  ;;  %v16725_v55 = vld [vmem:[#allocation2 + $0x81] sm:$0xff] }
 0x105   : > { %20143 = vst [vmem:[#allocation20_spill] sm:$0xff] %v16708_v46  ;;  %1090 = vst.msk [vmem:[#allocation2 + $0xb1] sm:$0xff] %vm441_vm1, %v16708_v46  ;;  %v16713_v50 = vsel %vm986_vm2, %v875_v38, %v1024_v44  ;;  %v885_v51 = vadd.f32 %v16584_v40, %v884_v48  ;;  %v16716_v53 = vld [vmem:[#allocation2 + $0x79] sm:$0xff] }
 0x106   : > { %20144 = vst [vmem:[#allocation21_spill] sm:$0xff] %v16713_v50  ;;  %20145 = vst [vmem:[#allocation22_spill] sm:$0xff] %v16716_v53  ;;  %vm989_vm3 = vcmp.ge.f32.partialorder %v890_v47, 0.0  ;;  %v1027_v54 = vmul.f32 %v16589_v42, %v890_v47  ;;  %13948 = vmatprep.mubr.msk.f32.mxu0 %vm441_vm1, %v16716_v53  ;;  %14145 = vmatprep.mubr.msk.f32.mxu1 %vm441_vm1, %v16716_v53  ;;  %v1817_v53 = vld [vmem:[#allocation2 + $0x2] sm:$0xff] }
 0x107   : > { %1089 = vst.msk [vmem:[#allocation2 + $0xa9] sm:$0xff] %vm441_vm1, %v16713_v50  ;;  %20146 = vst [vmem:[#allocation23_spill] sm:$0xff] %v16725_v55  ;;  %vm988_vm4 = vcmp.ge.f32.partialorder %v885_v51, 0.0  ;;  %v1026_v56 = vmul.f32 %v16589_v42, %v885_v51  ;;  %v13909_v58 = vpop.f32.mrb[16].mxu0  ;;  %13949 = vmatmul.mubr.msk.f32.gmra.mrb[42].mxu0 %vm441_vm1, %v16725_v55  ;;  %14146 = vmatmul.mubr.msk.f32.gmra.mrb[8].mxu1 %vm441_vm1, %v16725_v55 }
 0x108   : > { %v16732_v59 = vsel %vm989_vm3, %v890_v47, %v1027_v54  ;;  %v900_v62 = vadd.f32 %v13909_v58, %v16584_v40  ;;  %v894_v63 = vpop.f32.mrb[17].mxu0  ;;  %v16749_v7 = vld [vmem:[#allocation2 + $0x99] sm:$0xff] }
 0x109   : > { %20147 = vst [vmem:[#allocation24_spill] sm:$0xff] %v16732_v59  ;;  %1092 = vst.msk [vmem:[#allocation2 + $0xc9] sm:$0xff] %vm441_vm1, %v16732_v59  ;;  %v16737_v0 = vsel %vm988_vm4, %v885_v51, %v1026_v56  ;;  %v895_v2 = vadd.f32 %v16584_v40, %v894_v63  ;;  %v17070_v37 = vld [vmem:[#allocation2 + $0x9a] sm:$0xff] }
 0x10a   : > { %20148 = vst [vmem:[#allocation25_spill] sm:$0xff] %v16737_v0  ;;  %v16740_v4 = vld [vmem:[#allocation2 + $0x91] sm:$0xff]  ;;  %1091 = vst.msk [vmem:[#allocation2 + $0xc1] sm:$0xff] %vm441_vm1, %v16737_v0  ;;  %vm991_vm5 = vcmp.ge.f32.partialorder %v900_v62, 0.0  ;;  %v1029_v5 = vmul.f32 %v16589_v42, %v900_v62  ;;  %v17054_v0 = vld [vmem:[#allocation2 + $0x82] sm:$0xff] }
 0x10b   : > { %20149 = vst [vmem:[#allocation26_spill] sm:$0xff] %v16740_v4  ;;  %13951 = vmatprep.mubr.msk.f32.mxu0 %vm441_vm1, %v16740_v4  ;;  %14148 = vmatprep.mubr.msk.f32.mxu1 %vm441_vm1, %v16740_v4  ;;  %20150 = vst [vmem:[#allocation27_spill] sm:$0xff] %v16749_v7  ;;  %vm990_vm6 = vcmp.ge.f32.partialorder %v895_v2, 0.0  ;;  %v1028_v8 = vmul.f32 %v16589_v42, %v895_v2  ;;  %v13912_v9 = vpop.f32.mrb[18].mxu0  ;;  %v17060_v59 = vld [vmem:[#allocation2 + $0x90] sm:$0xff]  ;;  %v17068_v46 = vld [vmem:[#allocation2 + $0x98] sm:$0xff] }
 0x10c   : > { %13952 = vmatmul.mubr.msk.f32.gmra.mrb[44].mxu0 %vm441_vm1, %v16749_v7  ;;  %14149 = vmatmul.mubr.msk.f32.gmra.mrb[10].mxu1 %vm441_vm1, %v16749_v7  ;;  %v16756_v10 = vsel %vm991_vm5, %v900_v62, %v1029_v5  ;;  %v910_v12 = vadd.f32 %v13912_v9, %v16584_v40  ;;  %v904_v13 = vpop.f32.mrb[19].mxu0  ;;  %v16773_v20 = vld [vmem:[#allocation2 + $0xb1] sm:$0xff] }
 0x10d   : > { %20151 = vst [vmem:[#allocation28_spill] sm:$0xff] %v16756_v10  ;;  %1094 = vst.msk [vmem:[#allocation2 + $0xe1] sm:$0xff] %vm441_vm1, %v16756_v10  ;;  %v16761_v15 = vsel %vm990_vm6, %v895_v2, %v1028_v8  ;;  %v905_v16 = vadd.f32 %v16584_v40, %v904_v13  ;;  %v17052_v10 = vld [vmem:[#allocation2 + $0x80] sm:$0xff]  ;;  %v17062_v50 = vld [vmem:[#allocation2 + $0x92] sm:$0xff]  ;;  %vm497_vm6 = vcmask 261120  }
 0x10e   : > { %20152 = vst [vmem:[#allocation29_spill] sm:$0xff] %v16761_v15  ;;  %v16764_v18 = vld [vmem:[#allocation2 + $0xa9] sm:$0xff]  ;;  %1093 = vst.msk [vmem:[#allocation2 + $0xd9] sm:$0xff] %vm441_vm1, %v16761_v15  ;;  %vm993_vm7 = vcmp.ge.f32.partialorder %v910_v12, 0.0  ;;  %v1031_v19 = vmul.f32 %v16589_v42, %v910_v12  ;;  %v17046_v15 = vld [vmem:[#allocation2 + $0x7a] sm:$0xff] }
 0x10f   : > { %20153 = vst [vmem:[#allocation30_spill] sm:$0xff] %v16764_v18  ;;  %13954 = vmatprep.mubr.msk.f32.mxu0 %vm441_vm1, %v16764_v18  ;;  %14151 = vmatprep.mubr.msk.f32.mxu1 %vm441_vm1, %v16764_v18  ;;  %20154 = vst [vmem:[#allocation31_spill] sm:$0xff] %v16773_v20  ;;  %vm992_vm8 = vcmp.ge.f32.partialorder %v905_v16, 0.0  ;;  %v1030_v21 = vmul.f32 %v16589_v42, %v905_v16  ;;  %v13915_v22 = vpop.f32.mrb[20].mxu0  ;;  %v17076_v34 = vld [vmem:[#allocation2 + $0xa8] sm:$0xff]  ;;  %v17084_v24 = vld [vmem:[#allocation2 + $0xb0] sm:$0xff] }
 0x110   : > { %13955 = vmatmul.mubr.msk.f32.gmra.mrb[46].mxu0 %vm441_vm1, %v16773_v20  ;;  %14152 = vmatmul.mubr.msk.f32.gmra.mrb[12].mxu1 %vm441_vm1, %v16773_v20  ;;  %v16780_v23 = vsel %vm993_vm7, %v910_v12, %v1031_v19  ;;  %v920_v25 = vadd.f32 %v13915_v22, %v16584_v40  ;;  %v914_v26 = vpop.f32.mrb[21].mxu0  ;;  %v16797_v33 = vld [vmem:[#allocation2 + $0xc9] sm:$0xff]  ;;  %v17086_v17 = vld [vmem:[#allocation2 + $0xb2] sm:$0xff]  ;;  %vm500_vm7 = vcmask 254976  }
 0x111   : > { %20155 = vst [vmem:[#allocation32_spill] sm:$0xff] %v16780_v23  ;;  %1096 = vst.msk [vmem:[#allocation2 + $0xf9] sm:$0xff] %vm441_vm1, %v16780_v23  ;;  %v16785_v28 = vsel %vm992_vm8, %v905_v16, %v1030_v21  ;;  %v915_v29 = vadd.f32 %v16584_v40, %v914_v26  ;;  %v16788_v30 = vld [vmem:[#allocation2 + $0xc1] sm:$0xff]  ;;  %v17044_v23 = vld [vmem:[#allocation2 + $0x78] sm:$0xff] }
 0x112   : > { %20156 = vst [vmem:[#allocation33_spill] sm:$0xff] %v16785_v28  ;;  %20157 = vst [vmem:[#allocation34_spill] sm:$0xff] %v16788_v30  ;;  %vm995_vm9 = vcmp.ge.f32.partialorder %v920_v25, 0.0  ;;  %v1033_v32 = vmul.f32 %v16589_v42, %v920_v25  ;;  %13957 = vmatprep.mubr.msk.f32.mxu0 %vm441_vm1, %v16788_v30  ;;  %14154 = vmatprep.mubr.msk.f32.mxu1 %vm441_vm1, %v16788_v30  ;;  %v17078_v27 = vld [vmem:[#allocation2 + $0xaa] sm:$0xff]  ;;  %v17092_v14 = vld [vmem:[#allocation2 + $0xc0] sm:$0xff] }
 0x113   : > { %1095 = vst.msk [vmem:[#allocation2 + $0xf1] sm:$0xff] %vm441_vm1, %v16785_v28  ;;  %20158 = vst [vmem:[#allocation35_spill] sm:$0xff] %v16797_v33  ;;  %vm994_vm10 = vcmp.ge.f32.partialorder %v915_v29, 0.0  ;;  %v1032_v35 = vmul.f32 %v16589_v42, %v915_v29  ;;  %v13918_v36 = vpop.f32.mrb[22].mxu0  ;;  %v17038_v28 = vld [vmem:[#allocation2 + $0x6a] sm:$0xff]  ;;  %v17094_v6 = vld [vmem:[#allocation2 + $0xc2] sm:$0xff] }
 0x114   : > { %13958 = vmatmul.mubr.msk.f32.gmra.mrb[48].mxu0 %vm441_vm1, %v16797_v33  ;;  %14155 = vmatmul.mubr.msk.f32.gmra.mrb[14].mxu1 %vm441_vm1, %v16797_v33  ;;  %v16804_v38 = vsel %vm995_vm9, %v920_v25, %v1033_v32  ;;  %v930_v41 = vadd.f32 %v13918_v36, %v16584_v40  ;;  %v924_v44 = vpop.f32.mrb[23].mxu0  ;;  %v16821_v54 = vld [vmem:[#allocation2 + $0xe1] sm:$0xff]  ;;  %v17102_v61 = vld [vmem:[#allocation2 + $0xca] sm:$0xff] }
 0x115   : > { %20159 = vst [vmem:[#allocation36_spill] sm:$0xff] %v16804_v38  ;;  %1098 = vst.msk [vmem:[#allocation2 + $0x111] sm:$0xff] %vm441_vm1, %v16804_v38  ;;  %v16809_v45 = vsel %vm994_vm10, %v915_v29, %v1032_v35  ;;  %v925_v47 = vadd.f32 %v16584_v40, %v924_v44  ;;  %v16812_v48 = vld [vmem:[#allocation2 + $0xd9] sm:$0xff]  ;;  %v17036_v38 = vld [vmem:[#allocation2 + $0x68] sm:$0xff] }
 0x116   : > { %20160 = vst [vmem:[#allocation37_spill] sm:$0xff] %v16809_v45  ;;  %20161 = vst [vmem:[#allocation38_spill] sm:$0xff] %v16812_v48  ;;  %vm997_vm11 = vcmp.ge.f32.partialorder %v930_v41, 0.0  ;;  %v1035_v51 = vmul.f32 %v16589_v42, %v930_v41  ;;  %13960 = vmatprep.mubr.msk.f32.mxu0 %vm441_vm1, %v16812_v48  ;;  %14157 = vmatprep.mubr.msk.f32.mxu1 %vm441_vm1, %v16812_v48  ;;  %v17100_v3 = vld [vmem:[#allocation2 + $0xc8] sm:$0xff]  ;;  %v17108_v57 = vld [vmem:[#allocation2 + $0xd8] sm:$0xff] }
 0x117   : > { %1097 = vst.msk [vmem:[#allocation2 + $0x109] sm:$0xff] %vm441_vm1, %v16809_v45  ;;  %20162 = vst [vmem:[#allocation39_spill] sm:$0xff] %v16821_v54  ;;  %vm996_vm12 = vcmp.ge.f32.partialorder %v925_v47, 0.0  ;;  %v1034_v56 = vmul.f32 %v16589_v42, %v925_v47  ;;  %v13921_v58 = vpop.f32.mrb[24].mxu0  ;;  %v17030_v45 = vld [vmem:[#allocation2 + $0x62] sm:$0xff]  ;;  %v17110_v52 = vld [vmem:[#allocation2 + $0xda] sm:$0xff] }
 0x118   : > { %13961 = vmatmul.mubr.msk.f32.gmra.mrb[50].mxu0 %vm441_vm1, %v16821_v54  ;;  %14158 = vmatmul.mubr.msk.f32.gmra.mrb[16].mxu1 %vm441_vm1, %v16821_v54  ;;  %v16828_v62 = vsel %vm997_vm11, %v930_v41, %v1035_v51  ;;  %v940_v63 = vadd.f32 %v13921_v58, %v16584_v40  ;;  %v934_v2 = vpop.f32.mrb[25].mxu0  ;;  %v16845_v13 = vld [vmem:[#allocation2 + $0xf9] sm:$0xff] }
 0x119   : > { %20163 = vst [vmem:[#allocation40_spill] sm:$0xff] %v16828_v62  ;;  %1100 = vst.msk [vmem:[#allocation2 + $0x129] sm:$0xff] %vm441_vm1, %v16828_v62  ;;  %v16833_v5 = vsel %vm996_vm12, %v925_v47, %v1034_v56  ;;  %v935_v8 = vadd.f32 %v16584_v40, %v934_v2  ;;  %v17028_v62 = vld [vmem:[#allocation2 + $0x60] sm:$0xff] }
 0x11a   : > { %20164 = vst [vmem:[#allocation41_spill] sm:$0xff] %v16833_v5  ;;  %v16836_v9 = vld [vmem:[#allocation2 + $0xf1] sm:$0xff]  ;;  %1099 = vst.msk [vmem:[#allocation2 + $0x121] sm:$0xff] %vm441_vm1, %v16833_v5  ;;  %vm999_vm13 = vcmp.ge.f32.partialorder %v940_v63, 0.0  ;;  %v1037_v12 = vmul.f32 %v16589_v42, %v940_v63  ;;  %v17116_v49 = vld [vmem:[#allocation2 + $0xe0] sm:$0xff] }
 0x11b   : > { %20165 = vst [vmem:[#allocation42_spill] sm:$0xff] %v16836_v9  ;;  %13963 = vmatprep.mubr.msk.f32.mxu0 %vm441_vm1, %v16836_v9  ;;  %14160 = vmatprep.mubr.msk.f32.mxu1 %vm441_vm1, %v16836_v9  ;;  %20166 = vst [vmem:[#allocation43_spill] sm:$0xff] %v16845_v13  ;;  %vm998_vm14 = vcmp.ge.f32.partialorder %v935_v8, 0.0  ;;  %v1036_v16 = vmul.f32 %v16589_v42, %v935_v8  ;;  %v13924_v19 = vpop.f32.mrb[26].mxu0  ;;  %v17022_v5 = vld [vmem:[#allocation2 + $0x52] sm:$0xff] }
 0x11c   : > { %13964 = vmatmul.mubr.msk.f32.gmra.mrb[52].mxu0 %vm441_vm1, %v16845_v13  ;;  %14161 = vmatmul.mubr.msk.f32.gmra.mrb[18].mxu1 %vm441_vm1, %v16845_v13  ;;  %v16852_v21 = vsel %vm999_vm13, %v940_v63, %v1037_v12  ;;  %v950_v22 = vadd.f32 %v13924_v19, %v16584_v40  ;;  %v944_v25 = vpop.f32.mrb[27].mxu0  ;;  %v16869_v36 = vld [vmem:[#allocation2 + $0x111] sm:$0xff] }
 0x11d   : > { %20167 = vst [vmem:[#allocation44_spill] sm:$0xff] %v16852_v21  ;;  %1102 = vst.msk [vmem:[#allocation2 + $0x141] sm:$0xff] %vm441_vm1, %v16852_v21  ;;  %v16857_v26 = vsel %vm998_vm14, %v935_v8, %v1036_v16  ;;  %v945_v29 = vadd.f32 %v16584_v40, %v944_v25  ;;  %v17020_v21 = vld [vmem:[#allocation2 + $0x50] sm:$0xff] }
 0x11e   : > { %20168 = vst [vmem:[#allocation45_spill] sm:$0xff] %v16857_v26  ;;  %v16860_v32 = vld [vmem:[#allocation2 + $0x109] sm:$0xff]  ;;  %1101 = vst.msk [vmem:[#allocation2 + $0x139] sm:$0xff] %vm441_vm1, %v16857_v26  ;;  %vm1001_vm15 = vcmp.ge.f32.partialorder %v950_v22, 0.0  ;;  %v1039_v35 = vmul.f32 %v16589_v42, %v950_v22 }
 0x11f   : > { %20169 = vst [vmem:[#allocation46_spill] sm:$0xff] %v16860_v32  ;;  %13966 = vmatprep.mubr.msk.f32.mxu0 %vm441_vm1, %v16860_v32  ;;  %14163 = vmatprep.mubr.msk.f32.mxu1 %vm441_vm1, %v16860_v32  ;;  %20170 = vst [vmem:[#allocation47_spill] sm:$0xff] %v16869_v36  ;;  %vm1000_vm0 = vcmp.ge.f32.partialorder %v945_v29, 0.0  ;;  %v1038_v41 = vmul.f32 %v16589_v42, %v945_v29  ;;  %v13927_v44 = vpop.f32.mrb[28].mxu0  ;;  %v17014_v26 = vld [vmem:[#allocation2 + $0x4a] sm:$0xff] }
 0x120   : > { %13967 = vmatmul.mubr.msk.f32.gmra.mrb[54].mxu0 %vm441_vm1, %v16869_v36  ;;  %14164 = vmatmul.mubr.msk.f32.gmra.mrb[20].mxu1 %vm441_vm1, %v16869_v36  ;;  %v16876_v47 = vsel %vm1001_vm15, %v950_v22, %v1039_v35  ;;  %v960_v51 = vadd.f32 %v13927_v44, %v16584_v40  ;;  %v954_v56 = vpop.f32.mrb[29].mxu0  ;;  %v16893_v12 = vld [vmem:[#allocation2 + $0x129] sm:$0xff] }
 0x121   : > { %20171 = vst [vmem:[#allocation48_spill] sm:$0xff] %v16876_v47  ;;  %1104 = vst.msk [vmem:[#allocation2 + $0x159] sm:$0xff] %vm441_vm1, %v16876_v47  ;;  %v16881_v58 = vsel %vm1000_vm0, %v945_v29, %v1038_v41  ;;  %v955_v63 = vadd.f32 %v16584_v40, %v954_v56  ;;  %v16884_v2 = vld [vmem:[#allocation2 + $0x121] sm:$0xff]  ;;  %v17166_v13 = vld [vmem:[#allocation2 + $0x12a] sm:$0xff] }
 0x122   : > { %20172 = vst [vmem:[#allocation49_spill] sm:$0xff] %v16881_v58  ;;  %20173 = vst [vmem:[#allocation50_spill] sm:$0xff] %v16884_v2  ;;  %vm1003_vm2 = vcmp.ge.f32.partialorder %v960_v51, 0.0  ;;  %v1041_v8 = vmul.f32 %v16589_v42, %v960_v51  ;;  %13969 = vmatprep.mubr.msk.f32.mxu0 %vm441_vm1, %v16884_v2  ;;  %14166 = vmatprep.mubr.msk.f32.mxu1 %vm441_vm1, %v16884_v2  ;;  %v17006_v47 = vld [vmem:[#allocation2 + $0x3a] sm:$0xff]  ;;  %v17158_v36 = vld [vmem:[#allocation2 + $0x122] sm:$0xff] }
 0x123   : > { %1103 = vst.msk [vmem:[#allocation2 + $0x151] sm:$0xff] %vm441_vm1, %v16881_v58  ;;  %20174 = vst [vmem:[#allocation51_spill] sm:$0xff] %v16893_v12  ;;  %vm1002_vm3 = vcmp.ge.f32.partialorder %v955_v63, 0.0  ;;  %v1040_v16 = vmul.f32 %v16589_v42, %v955_v63  ;;  %v13930_v19 = vpop.f32.mrb[30].mxu0  ;;  %v17004_v58 = vld [vmem:[#allocation2 + $0x38] sm:$0xff]  ;;  %v17156_v2 = vld [vmem:[#allocation2 + $0x120] sm:$0xff] }
 0x124   : > { %13970 = vmatmul.mubr.msk.f32.gmra.mrb[56].mxu0 %vm441_vm1, %v16893_v12  ;;  %14167 = vmatmul.mubr.msk.f32.gmra.mrb[22].mxu1 %vm441_vm1, %v16893_v12  ;;  %v16900_v22 = vsel %vm1003_vm2, %v960_v51, %v1041_v8  ;;  %v970_v25 = vadd.f32 %v13930_v19, %v16584_v40  ;;  %v964_v29 = vpop.f32.mrb[31].mxu0  ;;  %v16917_v51 = vld [vmem:[#allocation2 + $0x141] sm:$0xff]  ;;  %v17150_v12 = vld [vmem:[#allocation2 + $0x112] sm:$0xff] }
 0x125   : > { %20175 = vst [vmem:[#allocation52_spill] sm:$0xff] %v16900_v22  ;;  %1106 = vst.msk [vmem:[#allocation2 + $0x171] sm:$0xff] %vm441_vm1, %v16900_v22  ;;  %v16905_v35 = vsel %vm1002_vm3, %v955_v63, %v1040_v16  ;;  %v965_v41 = vadd.f32 %v16584_v40, %v964_v29  ;;  %v16908_v44 = vld [vmem:[#allocation2 + $0x139] sm:$0xff]  ;;  %v16994_v22 = vld [vmem:[#allocation2 + $0x30] sm:$0xff] }
 0x126   : > { %20176 = vst [vmem:[#allocation53_spill] sm:$0xff] %v16905_v35  ;;  %20177 = vst [vmem:[#allocation54_spill] sm:$0xff] %v16908_v44  ;;  %vm1005_vm4 = vcmp.ge.f32.partialorder %v970_v25, 0.0  ;;  %v1043_v56 = vmul.f32 %v16589_v42, %v970_v25  ;;  %13972 = vmatprep.mubr.msk.f32.mxu0 %vm441_vm1, %v16908_v44  ;;  %14169 = vmatprep.mubr.msk.f32.mxu1 %vm441_vm1, %v16908_v44  ;;  %v17148_v44 = vld [vmem:[#allocation2 + $0x110] sm:$0xff]  ;;  %v17164_v32 = vld [vmem:[#allocation2 + $0x128] sm:$0xff] }
 0x127   : > { %1105 = vst.msk [vmem:[#allocation2 + $0x169] sm:$0xff] %vm441_vm1, %v16905_v35  ;;  %20178 = vst [vmem:[#allocation55_spill] sm:$0xff] %v16917_v51  ;;  %vm1004_vm5 = vcmp.ge.f32.partialorder %v965_v41, 0.0  ;;  %v1042_v63 = vmul.f32 %v16589_v42, %v965_v41  ;;  %v16987_v35 = vld [vmem:[%s19897_s4 + $0x38] sm:$0xff]  ;;  %v17180_v48 = vld [vmem:[#allocation2 + $0x140] sm:$0xff] }
 0x128   : > { %13973 = vmatmul.mubr.msk.f32.gmra.mrb[58].mxu0 %vm441_vm1, %v16917_v51  ;;  %14170 = vmatmul.mubr.msk.f32.gmra.mrb[24].mxu1 %vm441_vm1, %v16917_v51  ;;  %v16924_v40 = vsel %vm1005_vm4, %v970_v25, %v1043_v56  ;;  %v16938_v42 = vld [vmem:[#allocation2 + $0x159] sm:$0xff]  ;;  %v17142_v51 = vld [vmem:[#allocation2 + $0x10a] sm:$0xff]  ;;  %v17182_v33 = vld [vmem:[#allocation2 + $0x142] sm:$0xff] }
 0x129   : > { %20179 = vst [vmem:[#allocation56_spill] sm:$0xff] %v16924_v40  ;;  %1108 = vst.msk [vmem:[#allocation2 + $0x189] sm:$0xff] %vm441_vm1, %v16924_v40  ;;  %v16928_v8 = vsel %vm1004_vm5, %v965_v41, %v1042_v63  ;;  %v1109_v25 = vld [vmem:[#allocation2] sm:$0xff]  ;;  %v1110_v41 = vld [vmem:[#allocation2 + $0x8] sm:$0xff] }
 0x12a   : > { %20180 = vst [vmem:[#allocation57_spill] sm:$0xff] %v16928_v8  ;;  %v16930_v16 = vld [vmem:[#allocation2 + $0x151] sm:$0xff]  ;;  %1107 = vst.msk [vmem:[#allocation2 + $0x181] sm:$0xff] %vm441_vm1, %v16928_v8  ;;  %v16968_v8 = vld [vmem:[#allocation2 + $0x1a] sm:$0xff] }
 0x12b   : > { %20181 = vst [vmem:[#allocation58_spill] sm:$0xff] %v16930_v16  ;;  %13975 = vmatprep.mubr.msk.f32.mxu0 %vm441_vm1, %v16930_v16  ;;  %14172 = vmatprep.mubr.msk.f32.mxu1 %vm441_vm1, %v16930_v16  ;;  %20182 = vst [vmem:[#allocation59_spill] sm:$0xff] %v16938_v42  ;;  %v16982_v40 = vld [vmem:[#allocation2 + $0x22] sm:$0xff]  ;;  %v17172_v9 = vld [vmem:[#allocation2 + $0x138] sm:$0xff] }
 0x12c   : > { %13976 = vmatmul.mubr.msk.f32.gmra.mrb[60].mxu0 %vm441_vm1, %v16938_v42  ;;  %14173 = vmatmul.mubr.msk.f32.gmra.mrb[26].mxu1 %vm441_vm1, %v16938_v42  ;;  %v16950_v29 = vld [vmem:[#allocation2 + $0x171] sm:$0xff]  ;;  %v17134_v42 = vld [vmem:[#allocation2 + $0xfa] sm:$0xff]  ;;  %v17140_v16 = vld [vmem:[#allocation2 + $0x108] sm:$0xff] }
 0x12d   : > { %20184 = vst [vmem:[#allocation61_spill] sm:$0xff] %v16950_v29  ;;  %v17174_v54 = vld [vmem:[#allocation2 + $0x13a] sm:$0xff]  ;;  %v17188_v30 = vld [vmem:[#allocation2 + $0x150] sm:$0xff] }
 0x12e   : > { %v16944_v19 = vld [vmem:[#allocation2 + $0x169] sm:$0xff]  ;;  %v17190_v20 = vld [vmem:[#allocation2 + $0x152] sm:$0xff]  ;;  %v17198_v7 = vld [vmem:[#allocation2 + $0x15a] sm:$0xff] }
 0x12f   : > { %20183 = vst [vmem:[#allocation60_spill] sm:$0xff] %v16944_v19  ;;  %13978 = vmatprep.mubr.msk.f32.mxu0 %vm441_vm1, %v16944_v19  ;;  %14175 = vmatprep.mubr.msk.f32.mxu1 %vm441_vm1, %v16944_v19  ;;  %v17132_v19 = vld [vmem:[#allocation2 + $0xf8] sm:$0xff]  ;;  %v17204_v4 = vld [vmem:[#allocation2 + $0x168] sm:$0xff]  ;;  %v17212_v43 = vld [vmem:[#allocation2 + $0x170] sm:$0xff] }
 0x130   : > { %13979 = vmatmul.mubr.msk.f32.gmra.mrb[62].mxu0 %vm441_vm1, %v16950_v29  ;;  %14176 = vmatmul.mubr.msk.f32.gmra.mrb[28].mxu1 %vm441_vm1, %v16950_v29  ;;  %v16961_v63 = vld [vmem:[#allocation2 + $0x189] sm:$0xff]  ;;  %v17126_v29 = vld [vmem:[#allocation2 + $0xf2] sm:$0xff] }
 0x131   : > { %13983 = vmatprep.mubr.msk.f32.mxu0 %vm441_vm1, %v1109_v25  ;;  %v16957_v56 = vld [vmem:[#allocation2 + $0x181] sm:$0xff]  ;;  %20186 = vst [vmem:[#allocation63_spill] sm:$0xff] %v16961_v63  ;;  %v16973_v25 = vld [vmem:[%s19897_s4 + $0x18] sm:$0xff]  ;;  %v17206_v55 = vld [vmem:[#allocation2 + $0x16a] sm:$0xff] }
 0x132   : > { %20185 = vst [vmem:[#allocation62_spill] sm:$0xff] %v16957_v56  ;;  %14178 = vmatprep.mubr.msk.f32.mxu1 %vm441_vm1, %v16957_v56  ;;  %v17124_v56 = vld [vmem:[#allocation2 + $0xf0] sm:$0xff]  ;;  %v17196_v18 = vld [vmem:[#allocation2 + $0x158] sm:$0xff]  ;;  %v17220_v31 = vld [vmem:[#allocation2 + $0x182] sm:$0xff] }
 0x133   : > { %v17214_v39 = vld [vmem:[#allocation2 + $0x172] sm:$0xff]  ;;  %20190 = vst [vmem:[#allocation67_spill] sm:$0xff] %v17220_v31 }
 0x134   : > { %13984 = vmatmul.mubr.msk.f32.vlgmr.msra.gmra.mrb[32].mxu0 %vm441_vm1, %v1110_v41  ;;  %14179 = vmatmul.mubr.msk.f32.gmra.mrb[30].mxu1 %vm441_vm1, %v16961_v63  ;;  %v16980_v41 = vld [vmem:[#allocation2 + $0x20] sm:$0xff]  ;;  %20189 = vst [vmem:[#allocation66_spill] sm:$0xff] %v17214_v39 }
 0x135   : > { %13986 = vmatprep.mubr.msk.f32.mxu0 %vm441_vm1, %v16966_v1  ;;  %14183 = vmatprep.mubr.msk.f32.mxu1 %vm441_vm1, %v16968_v8  ;;  %20188 = vst [vmem:[#allocation65_spill] sm:$0xff] %v16980_v41  ;;  %v17118_v63 = vld [vmem:[#allocation2 + $0xe2] sm:$0xff]  ;;  %v17225_v1 = vld [vmem:[#allocation2 + $0x18a] sm:$0xff] }
 0x136   : > { %14032 = vmatpush3.msra.mxu0 %v16613_v60  ;;  %v16999_v60 = vld [vmem:[#allocation2 + $0x32] sm:$0xff]  ;;  %20191 = vst [vmem:[#allocation68_spill] sm:$0xff] %v17225_v1 }
 0x137   : > { %14081 = vmatprep.subr.mxu0 %v16973_v25 }
 0x138   : > { %13987 = vmatmul.mubr.msk.f32.gmra.mrb[34].mxu0 %vm441_vm1, %v16980_v41  ;;  %14184 = vmatmul.mubr.msk.f32.vlgmr.msra.gmra.mrb[0].mxu1 %vm441_vm1, %v16982_v40  ;;  %v1818_v41 = vld [vmem:[#allocation2 + $0xa] sm:$0xff] }
 0x139   : > { %14232 = vmatpush3.msra.mxu1 %v16641_v11  ;;  %13989 = vmatprep.mubr.msk.f32.mxu0 %vm441_vm1, %v16994_v22  ;;  %v17012_v11 = vld [vmem:[#allocation2 + $0x48] sm:$0xff] }
 0x13a   : > { %14186 = vmatprep.mubr.msk.f32.mxu1 %vm441_vm1, %v16999_v60  ;;  %14281 = vmatprep.subr.mxu1 %v16987_v35 }
 0x13c   : > { %13990 = vmatmul.mubr.msk.f32.gmra.mrb[36].mxu0 %vm441_vm1, %v17004_v58  ;;  %14187 = vmatmul.mubr.msk.f32.gmra.mrb[2].mxu1 %vm441_vm1, %v17006_v47 }
 0x13d   : > { %13992 = vmatprep.mubr.msk.f32.mxu0 %vm441_vm1, %v17012_v11  ;;  %14189 = vmatprep.mubr.msk.f32.mxu1 %vm441_vm1, %v17014_v26 }
 0x140   : > { %13993 = vmatmul.mubr.msk.f32.gmra.mrb[38].mxu0 %vm441_vm1, %v17020_v21  ;;  %14190 = vmatmul.mubr.msk.f32.gmra.mrb[4].mxu1 %vm441_vm1, %v17022_v5 }
 0x141   : > { %13995 = vmatprep.mubr.msk.f32.mxu0 %vm441_vm1, %v17028_v62  ;;  %14192 = vmatprep.mubr.msk.f32.mxu1 %vm441_vm1, %v17030_v45 }
 0x144   : > { %13996 = vmatmul.mubr.msk.f32.gmra.mrb[40].mxu0 %vm441_vm1, %v17036_v38  ;;  %14193 = vmatmul.mubr.msk.f32.gmra.mrb[6].mxu1 %vm441_vm1, %v17038_v28 }
 0x145   : > { %13998 = vmatprep.mubr.msk.f32.mxu0 %vm441_vm1, %v17044_v23  ;;  %14195 = vmatprep.mubr.msk.f32.mxu1 %vm441_vm1, %v17046_v15 }
 0x148   : > { %13999 = vmatmul.mubr.msk.f32.gmra.mrb[42].mxu0 %vm441_vm1, %v17052_v10  ;;  %14196 = vmatmul.mubr.msk.f32.gmra.mrb[8].mxu1 %vm441_vm1, %v17054_v0 }
 0x149   : > { %14001 = vmatprep.mubr.msk.f32.mxu0 %vm441_vm1, %v17060_v59  ;;  %14198 = vmatprep.mubr.msk.f32.mxu1 %vm441_vm1, %v17062_v50 }
 0x14c   : > { %14002 = vmatmul.mubr.msk.f32.gmra.mrb[44].mxu0 %vm441_vm1, %v17068_v46  ;;  %14199 = vmatmul.mubr.msk.f32.gmra.mrb[10].mxu1 %vm441_vm1, %v17070_v37 }
 0x14d   : > { %14004 = vmatprep.mubr.msk.f32.mxu0 %vm441_vm1, %v17076_v34  ;;  %14201 = vmatprep.mubr.msk.f32.mxu1 %vm441_vm1, %v17078_v27 }
 0x150   : > { %14005 = vmatmul.mubr.msk.f32.gmra.mrb[46].mxu0 %vm441_vm1, %v17084_v24  ;;  %14202 = vmatmul.mubr.msk.f32.gmra.mrb[12].mxu1 %vm441_vm1, %v17086_v17 }
 0x151   : > { %14007 = vmatprep.mubr.msk.f32.mxu0 %vm441_vm1, %v17092_v14  ;;  %14204 = vmatprep.mubr.msk.f32.mxu1 %vm441_vm1, %v17094_v6 }
 0x154   : > { %14008 = vmatmul.mubr.msk.f32.gmra.mrb[48].mxu0 %vm441_vm1, %v17100_v3  ;;  %14205 = vmatmul.mubr.msk.f32.gmra.mrb[14].mxu1 %vm441_vm1, %v17102_v61 }
 0x155   : > { %14010 = vmatprep.mubr.msk.f32.mxu0 %vm441_vm1, %v17108_v57  ;;  %14207 = vmatprep.mubr.msk.f32.mxu1 %vm441_vm1, %v17110_v52 }
 0x158   : > { %14011 = vmatmul.mubr.msk.f32.gmra.mrb[50].mxu0 %vm441_vm1, %v17116_v49  ;;  %14208 = vmatmul.mubr.msk.f32.gmra.mrb[16].mxu1 %vm441_vm1, %v17118_v63 }
 0x159   : > { %14013 = vmatprep.mubr.msk.f32.mxu0 %vm441_vm1, %v17124_v56  ;;  %14210 = vmatprep.mubr.msk.f32.mxu1 %vm441_vm1, %v17126_v29 }
 0x15c   : > { %14014 = vmatmul.mubr.msk.f32.gmra.mrb[52].mxu0 %vm441_vm1, %v17132_v19  ;;  %14211 = vmatmul.mubr.msk.f32.gmra.mrb[18].mxu1 %vm441_vm1, %v17134_v42 }
 0x15d   : > { %14016 = vmatprep.mubr.msk.f32.mxu0 %vm441_vm1, %v17140_v16  ;;  %14213 = vmatprep.mubr.msk.f32.mxu1 %vm441_vm1, %v17142_v51 }
 0x160   : > { %14017 = vmatmul.mubr.msk.f32.gmra.mrb[54].mxu0 %vm441_vm1, %v17148_v44  ;;  %14214 = vmatmul.mubr.msk.f32.gmra.mrb[20].mxu1 %vm441_vm1, %v17150_v12 }
 0x161   : > { %14019 = vmatprep.mubr.msk.f32.mxu0 %vm441_vm1, %v17156_v2  ;;  %14216 = vmatprep.mubr.msk.f32.mxu1 %vm441_vm1, %v17158_v36 }
 0x164   : > { %14020 = vmatmul.mubr.msk.f32.gmra.mrb[56].mxu0 %vm441_vm1, %v17164_v32  ;;  %14217 = vmatmul.mubr.msk.f32.gmra.mrb[22].mxu1 %vm441_vm1, %v17166_v13 }
 0x165   : > { %14022 = vmatprep.mubr.msk.f32.mxu0 %vm441_vm1, %v17172_v9  ;;  %14219 = vmatprep.mubr.msk.f32.mxu1 %vm441_vm1, %v17174_v54 }
 0x168   : > { %14023 = vmatmul.mubr.msk.f32.gmra.mrb[58].mxu0 %vm441_vm1, %v17180_v48  ;;  %14220 = vmatmul.mubr.msk.f32.gmra.mrb[24].mxu1 %vm441_vm1, %v17182_v33 }
 0x169   : > { %14025 = vmatprep.mubr.msk.f32.mxu0 %vm441_vm1, %v17188_v30  ;;  %14222 = vmatprep.mubr.msk.f32.mxu1 %vm441_vm1, %v17190_v20 }
 0x16c   : > { %14026 = vmatmul.mubr.msk.f32.gmra.mrb[60].mxu0 %vm441_vm1, %v17196_v18  ;;  %14223 = vmatmul.mubr.msk.f32.gmra.mrb[26].mxu1 %vm441_vm1, %v17198_v7 }
 0x16d   : > { %14028 = vmatprep.mubr.msk.f32.mxu0 %vm441_vm1, %v17204_v4  ;;  %14225 = vmatprep.mubr.msk.f32.mxu1 %vm441_vm1, %v17206_v55 }
 0x170   : > { %14029 = vmatmul.mubr.msk.f32.gmra.mrb[62].mxu0 %vm441_vm1, %v17212_v43  ;;  %14226 = vmatmul.mubr.msk.f32.gmra.mrb[28].mxu1 %vm441_vm1, %v17214_v39 }
 0x171   : > { %14228 = vmatprep.mubr.msk.f32.mxu1 %vm441_vm1, %v17220_v31  ;;  %14033 = vmatprep.mubr.msk.f32.mxu0 %vm441_vm1, %v1817_v53  ;;  %v17238_v53 = vld [vmem:[%s19897_s4 + $0x40] sm:$0xff]  ;;  %v3748_v31 = vld [vmem:[#allocation2 + $0x31] sm:$0xff] }
 0x174   : > { %14034 = vmatmul.mubr.msk.f32.vlgmr.msra.gmra.mrb[32].mxu0 %vm441_vm1, %v1818_v41  ;;  %14229 = vmatmul.mubr.msk.f32.gmra.mrb[30].mxu1 %vm441_vm1, %v17225_v1  ;;  %v3393_v41 = vld [vmem:[#allocation2 + $0x1a0] sm:$0xff]  ;;  %v20193_v1 = vld [vmem:[#allocation65_spill] sm:$0xff] }
 0x175   : > { %14036 = vmatprep.mubr.msk.f32.mxu0 %vm441_vm1, %v16968_v8  ;;  %14233 = vmatprep.mubr.msk.f32.mxu1 %vm441_vm1, %v16994_v22  ;;  %v17356_v8 = vld [vmem:[#allocation2 + $0x188] sm:$0xff] }
 0x176   : > { %14082 = vmatpush3.msra.mxu0 %v16973_v25  ;;  %v20192_v25 = vld [vmem:[#allocation64_spill] sm:$0xff] }
 0x178   : > { %14037 = vmatmul.mubr.msk.f32.gmra.mrb[34].mxu0 %vm441_vm1, %v16982_v40  ;;  %14234 = vmatmul.mubr.msk.f32.vlgmr.msra.gmra.mrb[0].mxu1 %vm441_vm1, %v17004_v58  ;;  %v3392_v40 = vld [vmem:[#allocation2 + $0x198] sm:$0xff] }
 0x179   : > { %14282 = vmatpush3.msra.mxu1 %v16987_v35  ;;  %14039 = vmatprep.mubr.msk.f32.mxu0 %vm441_vm1, %v16999_v60  ;;  %v17350_v35 = vld [vmem:[#allocation2 + $0x180] sm:$0xff] }
 0x17a   : > { %14236 = vmatprep.mubr.msk.f32.mxu1 %vm441_vm1, %v17012_v11  ;;  %14331 = vmatprep.subr.mxu1 %v17238_v53 }
 0x17c   : > { %14040 = vmatmul.mubr.msk.f32.gmra.mrb[36].mxu0 %vm441_vm1, %v17006_v47  ;;  %14237 = vmatmul.mubr.msk.f32.gmra.mrb[2].mxu1 %vm441_vm1, %v17020_v21 }
 0x17d   : > { %14042 = vmatprep.mubr.msk.f32.mxu0 %vm441_vm1, %v17014_v26  ;;  %14239 = vmatprep.mubr.msk.f32.mxu1 %vm441_vm1, %v17028_v62 }
 0x180   : > { %14043 = vmatmul.mubr.msk.f32.gmra.mrb[38].mxu0 %vm441_vm1, %v17022_v5  ;;  %14240 = vmatmul.mubr.msk.f32.gmra.mrb[4].mxu1 %vm441_vm1, %v17036_v38 }
 0x181   : > { %14045 = vmatprep.mubr.msk.f32.mxu0 %vm441_vm1, %v17030_v45  ;;  %14242 = vmatprep.mubr.msk.f32.mxu1 %vm441_vm1, %v17044_v23 }
 0x184   : > { %14046 = vmatmul.mubr.msk.f32.gmra.mrb[40].mxu0 %vm441_vm1, %v17038_v28  ;;  %14243 = vmatmul.mubr.msk.f32.gmra.mrb[6].mxu1 %vm441_vm1, %v17052_v10 }
 0x185   : > { %14048 = vmatprep.mubr.msk.f32.mxu0 %vm441_vm1, %v17046_v15  ;;  %14245 = vmatprep.mubr.msk.f32.mxu1 %vm441_vm1, %v17060_v59 }
 0x188   : > { %14049 = vmatmul.mubr.msk.f32.gmra.mrb[42].mxu0 %vm441_vm1, %v17054_v0  ;;  %14246 = vmatmul.mubr.msk.f32.gmra.mrb[8].mxu1 %vm441_vm1, %v17068_v46 }
 0x189   : > { %14051 = vmatprep.mubr.msk.f32.mxu0 %vm441_vm1, %v17062_v50  ;;  %14248 = vmatprep.mubr.msk.f32.mxu1 %vm441_vm1, %v17076_v34 }
 0x18c   : > { %14052 = vmatmul.mubr.msk.f32.gmra.mrb[44].mxu0 %vm441_vm1, %v17070_v37  ;;  %14249 = vmatmul.mubr.msk.f32.gmra.mrb[10].mxu1 %vm441_vm1, %v17084_v24 }
 0x18d   : > { %14054 = vmatprep.mubr.msk.f32.mxu0 %vm441_vm1, %v17078_v27  ;;  %14251 = vmatprep.mubr.msk.f32.mxu1 %vm441_vm1, %v17092_v14 }
 0x190   : > { %14055 = vmatmul.mubr.msk.f32.gmra.mrb[46].mxu0 %vm441_vm1, %v17086_v17  ;;  %14252 = vmatmul.mubr.msk.f32.gmra.mrb[12].mxu1 %vm441_vm1, %v17100_v3 }
 0x191   : > { %14057 = vmatprep.mubr.msk.f32.mxu0 %vm441_vm1, %v17094_v6  ;;  %14254 = vmatprep.mubr.msk.f32.mxu1 %vm441_vm1, %v17108_v57 }
 0x194   : > { %14058 = vmatmul.mubr.msk.f32.gmra.mrb[48].mxu0 %vm441_vm1, %v17102_v61  ;;  %14255 = vmatmul.mubr.msk.f32.gmra.mrb[14].mxu1 %vm441_vm1, %v17116_v49 }
 0x195   : > { %14060 = vmatprep.mubr.msk.f32.mxu0 %vm441_vm1, %v17110_v52  ;;  %14257 = vmatprep.mubr.msk.f32.mxu1 %vm441_vm1, %v17124_v56 }
 0x198   : > { %14061 = vmatmul.mubr.msk.f32.gmra.mrb[50].mxu0 %vm441_vm1, %v17118_v63  ;;  %14258 = vmatmul.mubr.msk.f32.gmra.mrb[16].mxu1 %vm441_vm1, %v17132_v19 }
 0x199   : > { %14063 = vmatprep.mubr.msk.f32.mxu0 %vm441_vm1, %v17126_v29  ;;  %14260 = vmatprep.mubr.msk.f32.mxu1 %vm441_vm1, %v17140_v16 }
 0x19c   : > { %14064 = vmatmul.mubr.msk.f32.gmra.mrb[52].mxu0 %vm441_vm1, %v17134_v42  ;;  %14261 = vmatmul.mubr.msk.f32.gmra.mrb[18].mxu1 %vm441_vm1, %v17148_v44 }
 0x19d   : > { %14066 = vmatprep.mubr.msk.f32.mxu0 %vm441_vm1, %v17142_v51  ;;  %14263 = vmatprep.mubr.msk.f32.mxu1 %vm441_vm1, %v17156_v2 }
 0x1a0   : > { %14067 = vmatmul.mubr.msk.f32.gmra.mrb[54].mxu0 %vm441_vm1, %v17150_v12  ;;  %14264 = vmatmul.mubr.msk.f32.gmra.mrb[20].mxu1 %vm441_vm1, %v17164_v32 }
 0x1a1   : > { %14069 = vmatprep.mubr.msk.f32.mxu0 %vm441_vm1, %v17158_v36  ;;  %14266 = vmatprep.mubr.msk.f32.mxu1 %vm441_vm1, %v17172_v9 }
 0x1a4   : > { %14070 = vmatmul.mubr.msk.f32.gmra.mrb[56].mxu0 %vm441_vm1, %v17166_v13  ;;  %14267 = vmatmul.mubr.msk.f32.gmra.mrb[22].mxu1 %vm441_vm1, %v17180_v48 }
 0x1a5   : > { %14072 = vmatprep.mubr.msk.f32.mxu0 %vm441_vm1, %v17174_v54  ;;  %14269 = vmatprep.mubr.msk.f32.mxu1 %vm441_vm1, %v17188_v30 }
 0x1a8   : > { %14073 = vmatmul.mubr.msk.f32.gmra.mrb[58].mxu0 %vm441_vm1, %v17182_v33  ;;  %14270 = vmatmul.mubr.msk.f32.gmra.mrb[24].mxu1 %vm441_vm1, %v17196_v18 }
 0x1a9   : > { %14075 = vmatprep.mubr.msk.f32.mxu0 %vm441_vm1, %v17190_v20  ;;  %14272 = vmatprep.mubr.msk.f32.mxu1 %vm441_vm1, %v17204_v4 }
 0x1ac   : > { %14076 = vmatmul.mubr.msk.f32.gmra.mrb[60].mxu0 %vm441_vm1, %v17198_v7  ;;  %14273 = vmatmul.mubr.msk.f32.gmra.mrb[26].mxu1 %vm441_vm1, %v17212_v43 }
 0x1ad   : > { %14078 = vmatprep.mubr.msk.f32.mxu0 %vm441_vm1, %v17206_v55  ;;  %14275 = vmatprep.mubr.msk.f32.mxu1 %vm441_vm1, %v17350_v35 }
 0x1b0   : > { %14079 = vmatmul.mubr.msk.f32.gmra.mrb[62].mxu0 %vm441_vm1, %v17214_v39  ;;  %14276 = vmatmul.mubr.msk.f32.gmra.mrb[28].mxu1 %vm441_vm1, %v17356_v8  ;;  %v3749_v39 = vld [vmem:[#allocation2 + $0x39] sm:$0xff] }
 0x1b1   : > { %14083 = vmatprep.mubr.msk.f32.mxu0 %vm441_vm1, %v20192_v25  ;;  %14278 = vmatprep.mubr.msk.f32.mxu1 %vm441_vm1, %v3392_v40 }
 0x1b4   : > { %14084 = vmatmul.mubr.msk.f32.vlgmr.msra.gmra.mrb[32].mxu0 %vm441_vm1, %v20193_v1  ;;  %14279 = vmatmul.mubr.msk.f32.gmra.mrb[30].mxu1 %vm441_vm1, %v3393_v41  ;;  %v3750_v1 = vld [vmem:[#allocation2 + $0x49] sm:$0xff] }
 0x1b5   : > { %14086 = vmatprep.mubr.msk.f32.mxu0 %vm441_vm1, %v16994_v22  ;;  %14283 = vmatprep.mubr.msk.f32.mxu1 %vm441_vm1, %v3748_v31  ;;  %v20194_v22 = vld [vmem:[#allocation15_spill] sm:$0xff]  ;;  %v20195_v31 = vld [vmem:[#allocation18_spill] sm:$0xff] }
 0x1b8   : > { %14087 = vmatmul.mubr.msk.f32.gmra.mrb[34].mxu0 %vm441_vm1, %v17004_v58  ;;  %14284 = vmatmul.mubr.msk.f32.vlgmr.msra.gmra.mrb[0].mxu1 %vm441_vm1, %v3749_v39  ;;  %v20196_v39 = vld [vmem:[#allocation19_spill] sm:$0xff]  ;;  %v20197_v58 = vld [vmem:[#allocation22_spill] sm:$0xff] }
 0x1b9   : > { %14332 = vmatpush3.msra.mxu1 %v17238_v53  ;;  %14089 = vmatprep.mubr.msk.f32.mxu0 %vm441_vm1, %v17012_v11  ;;  %v3779_v11 = vld [vmem:[#allocation2 + $0x1a1] sm:$0xff] }
 0x1ba   : > { %14286 = vmatprep.mubr.msk.f32.mxu1 %vm441_vm1, %v3750_v1  ;;  %v5441_v53 = vld [vmem:[%s19900_s7 + $0x40] sm:$0xff] }
 0x1bc   : > { %14090 = vmatmul.mubr.msk.f32.gmra.mrb[36].mxu0 %vm441_vm1, %v17020_v21  ;;  %14287 = vmatmul.mubr.msk.f32.gmra.mrb[2].mxu1 %vm441_vm1, %v20194_v22  ;;  %v20198_v21 = vld [vmem:[#allocation23_spill] sm:$0xff] }
 0x1bd   : > { %14092 = vmatprep.mubr.msk.f32.mxu0 %vm441_vm1, %v17028_v62  ;;  %14289 = vmatprep.mubr.msk.f32.mxu1 %vm441_vm1, %v20195_v31  ;;  %v20199_v62 = vld [vmem:[#allocation26_spill] sm:$0xff] }
 0x1c0   : > { %14093 = vmatmul.mubr.msk.f32.gmra.mrb[38].mxu0 %vm441_vm1, %v17036_v38  ;;  %14290 = vmatmul.mubr.msk.f32.gmra.mrb[4].mxu1 %vm441_vm1, %v20196_v39  ;;  %v20200_v38 = vld [vmem:[#allocation27_spill] sm:$0xff] }
 0x1c1   : > { %14095 = vmatprep.mubr.msk.f32.mxu0 %vm441_vm1, %v17044_v23  ;;  %14292 = vmatprep.mubr.msk.f32.mxu1 %vm441_vm1, %v20197_v58  ;;  %v20201_v23 = vld [vmem:[#allocation30_spill] sm:$0xff] }
 0x1c4   : > { %14096 = vmatmul.mubr.msk.f32.gmra.mrb[40].mxu0 %vm441_vm1, %v17052_v10  ;;  %14293 = vmatmul.mubr.msk.f32.gmra.mrb[6].mxu1 %vm441_vm1, %v20198_v21  ;;  %v20202_v10 = vld [vmem:[#allocation31_spill] sm:$0xff] }
 0x1c5   : > { %14098 = vmatprep.mubr.msk.f32.mxu0 %vm441_vm1, %v17060_v59  ;;  %14295 = vmatprep.mubr.msk.f32.mxu1 %vm441_vm1, %v20199_v62  ;;  %v20203_v59 = vld [vmem:[#allocation34_spill] sm:$0xff] }
 0x1c8   : > { %14099 = vmatmul.mubr.msk.f32.gmra.mrb[42].mxu0 %vm441_vm1, %v17068_v46  ;;  %14296 = vmatmul.mubr.msk.f32.gmra.mrb[8].mxu1 %vm441_vm1, %v20200_v38  ;;  %v20204_v46 = vld [vmem:[#allocation35_spill] sm:$0xff] }
 0x1c9   : > { %14101 = vmatprep.mubr.msk.f32.mxu0 %vm441_vm1, %v17076_v34  ;;  %14298 = vmatprep.mubr.msk.f32.mxu1 %vm441_vm1, %v20201_v23  ;;  %v20205_v34 = vld [vmem:[#allocation38_spill] sm:$0xff] }
 0x1cc   : > { %14102 = vmatmul.mubr.msk.f32.gmra.mrb[44].mxu0 %vm441_vm1, %v17084_v24  ;;  %14299 = vmatmul.mubr.msk.f32.gmra.mrb[10].mxu1 %vm441_vm1, %v20202_v10  ;;  %v20206_v24 = vld [vmem:[#allocation39_spill] sm:$0xff] }
 0x1cd   : > { %14104 = vmatprep.mubr.msk.f32.mxu0 %vm441_vm1, %v17092_v14  ;;  %14301 = vmatprep.mubr.msk.f32.mxu1 %vm441_vm1, %v20203_v59  ;;  %v20207_v14 = vld [vmem:[#allocation42_spill] sm:$0xff] }
 0x1d0   : > { %14105 = vmatmul.mubr.msk.f32.gmra.mrb[46].mxu0 %vm441_vm1, %v17100_v3  ;;  %14302 = vmatmul.mubr.msk.f32.gmra.mrb[12].mxu1 %vm441_vm1, %v20204_v46  ;;  %v20208_v3 = vld [vmem:[#allocation43_spill] sm:$0xff] }
 0x1d1   : > { %14107 = vmatprep.mubr.msk.f32.mxu0 %vm441_vm1, %v17108_v57  ;;  %14304 = vmatprep.mubr.msk.f32.mxu1 %vm441_vm1, %v20205_v34  ;;  %v20209_v57 = vld [vmem:[#allocation46_spill] sm:$0xff] }
 0x1d4   : > { %14108 = vmatmul.mubr.msk.f32.gmra.mrb[48].mxu0 %vm441_vm1, %v17116_v49  ;;  %14305 = vmatmul.mubr.msk.f32.gmra.mrb[14].mxu1 %vm441_vm1, %v20206_v24  ;;  %v20210_v49 = vld [vmem:[#allocation47_spill] sm:$0xff] }
 0x1d5   : > { %14110 = vmatprep.mubr.msk.f32.mxu0 %vm441_vm1, %v17124_v56  ;;  %14307 = vmatprep.mubr.msk.f32.mxu1 %vm441_vm1, %v20207_v14  ;;  %v20211_v56 = vld [vmem:[#allocation50_spill] sm:$0xff] }
 0x1d8   : > { %14111 = vmatmul.mubr.msk.f32.gmra.mrb[50].mxu0 %vm441_vm1, %v17132_v19  ;;  %14308 = vmatmul.mubr.msk.f32.gmra.mrb[16].mxu1 %vm441_vm1, %v20208_v3  ;;  %v20212_v19 = vld [vmem:[#allocation51_spill] sm:$0xff] }
 0x1d9   : > { %14113 = vmatprep.mubr.msk.f32.mxu0 %vm441_vm1, %v17140_v16  ;;  %14310 = vmatprep.mubr.msk.f32.mxu1 %vm441_vm1, %v20209_v57  ;;  %v20213_v16 = vld [vmem:[#allocation54_spill] sm:$0xff] }
 0x1dc   : > { %14114 = vmatmul.mubr.msk.f32.gmra.mrb[52].mxu0 %vm441_vm1, %v17148_v44  ;;  %14311 = vmatmul.mubr.msk.f32.gmra.mrb[18].mxu1 %vm441_vm1, %v20210_v49  ;;  %v20214_v44 = vld [vmem:[#allocation55_spill] sm:$0xff] }
 0x1dd   : > { %14116 = vmatprep.mubr.msk.f32.mxu0 %vm441_vm1, %v17156_v2  ;;  %14313 = vmatprep.mubr.msk.f32.mxu1 %vm441_vm1, %v20211_v56  ;;  %v20215_v2 = vld [vmem:[#allocation58_spill] sm:$0xff] }
 0x1e0   : > { %14117 = vmatmul.mubr.msk.f32.gmra.mrb[54].mxu0 %vm441_vm1, %v17164_v32  ;;  %14314 = vmatmul.mubr.msk.f32.gmra.mrb[20].mxu1 %vm441_vm1, %v20212_v19  ;;  %v20216_v32 = vld [vmem:[#allocation59_spill] sm:$0xff] }
 0x1e1   : > { %14119 = vmatprep.mubr.msk.f32.mxu0 %vm441_vm1, %v17172_v9  ;;  %14316 = vmatprep.mubr.msk.f32.mxu1 %vm441_vm1, %v20213_v16  ;;  %v20217_v9 = vld [vmem:[#allocation60_spill] sm:$0xff] }
 0x1e4   : > { %14120 = vmatmul.mubr.msk.f32.gmra.mrb[56].mxu0 %vm441_vm1, %v17180_v48  ;;  %14317 = vmatmul.mubr.msk.f32.gmra.mrb[22].mxu1 %vm441_vm1, %v20214_v44  ;;  %v20218_v48 = vld [vmem:[#allocation61_spill] sm:$0xff] }
 0x1e5   : > { %14122 = vmatprep.mubr.msk.f32.mxu0 %vm441_vm1, %v17188_v30  ;;  %14319 = vmatprep.mubr.msk.f32.mxu1 %vm441_vm1, %v20215_v2  ;;  %v20219_v30 = vld [vmem:[#allocation62_spill] sm:$0xff]  ;;  %v17748_v2 = vld [vmem:[%s19898_s5] ss:$0 sm:$0xff] }
 0x1e8   : > { %14123 = vmatmul.mubr.msk.f32.gmra.mrb[58].mxu0 %vm441_vm1, %v17196_v18  ;;  %14320 = vmatmul.mubr.msk.f32.gmra.mrb[24].mxu1 %vm441_vm1, %v20216_v32  ;;  %v3778_v18 = vld [vmem:[#allocation2 + $0x199] sm:$0xff] }
 0x1e9   : > { %14125 = vmatprep.mubr.msk.f32.mxu0 %vm441_vm1, %v17204_v4  ;;  %14322 = vmatprep.mubr.msk.f32.mxu1 %vm441_vm1, %v20217_v9  ;;  %v20220_v4 = vld [vmem:[#allocation63_spill] sm:$0xff] }
 0x1ec   : > { %14126 = vmatmul.mubr.msk.f32.gmra.mrb[60].mxu0 %vm441_vm1, %v17212_v43  ;;  %14323 = vmatmul.mubr.msk.f32.gmra.mrb[26].mxu1 %vm441_vm1, %v20218_v48  ;;  %v20223_v43 = vld [vmem:[#allocation68_spill] sm:$0xff]  ;;  %v17753_v48 = vld [vmem:[%s19899_s6] ss:$0 sm:$0xff] }
 0x1ed   : > { %14128 = vmatprep.mubr.msk.f32.mxu0 %vm441_vm1, %v17350_v35  ;;  %14325 = vmatprep.mubr.msk.f32.mxu1 %vm441_vm1, %v20219_v30  ;;  %v5442_v35 = vld [vmem:[%s19900_s7 + $0x48] sm:$0xff] }
 0x1f0   : > { %14129 = vmatmul.mubr.msk.f32.gmra.mrb[62].mxu0 %vm441_vm1, %v17356_v8  ;;  %14326 = vmatmul.mubr.msk.f32.gmra.mrb[28].mxu1 %vm441_vm1, %v20220_v4  ;;  %v17696_v8 = vpack.c.bf16 %v5442_v35, %v5441_v53 }
 0x1f1   : > { %14328 = vmatprep.mubr.msk.f32.mxu1 %vm441_vm1, %v3778_v18 }
 0x1f4   : > { %14329 = vmatmul.mubr.msk.f32.gmra.mrb[30].mxu1 %vm441_vm1, %v3779_v11 }
 0x1f5   : > { %14333 = vmatprep.mubr.msk.f32.mxu1 %vm441_vm1, %v16999_v60 }
 0x1f8   : > { %14334 = vmatmul.mubr.msk.f32.vlgmr.msra.gmra.mrb[0].mxu1 %vm441_vm1, %v17006_v47 }
 0x1f9   : > { %14336 = vmatprep.mubr.msk.f32.mxu1 %vm441_vm1, %v17014_v26 }
 0x1fc   : > { %14337 = vmatmul.mubr.msk.f32.gmra.mrb[2].mxu1 %vm441_vm1, %v17022_v5  ;;  %v4729_v5 = vld [vmem:[%s19900_s7 + $0x10] sm:$0xff] }
 0x1fd   : > { %14339 = vmatprep.mubr.msk.f32.mxu1 %vm441_vm1, %v17030_v45  ;;  %v4728_v45 = vld [vmem:[%s19900_s7 + $0x8] sm:$0xff] }
 0x200   : > { %14340 = vmatmul.mubr.msk.f32.gmra.mrb[4].mxu1 %vm441_vm1, %v17038_v28 }
 0x201   : > { %14342 = vmatprep.mubr.msk.f32.mxu1 %vm441_vm1, %v17046_v15  ;;  %v20224_v15 = vmov 0.0  }
 0x202   : > { %503 = vst.msk [vmem:[#allocation3 + $0x20] sm:$0xff] %vm497_vm6, %v20224_v15  ;;  %498 = vst.msk [vmem:[#allocation3] sm:$0xff] %vm497_vm6, %v20224_v15 }
 0x203   : > { %504 = vst.msk [vmem:[#allocation3 + $0x28] sm:$0x3] %vm500_vm7, %v20224_v15  ;;  %501 = vst.msk [vmem:[#allocation3 + $0x10] sm:$0x3] %vm500_vm7, %v20224_v15 }
 0x204   : > { %14343 = vmatmul.mubr.msk.f32.gmra.mrb[6].mxu1 %vm441_vm1, %v17054_v0  ;;  %v4765_v0 = vld [vmem:[%s19900_s7 + $0x30] sm:$0xff]  ;;  %499 = vst.msk [vmem:[#allocation3 + $0x8] sm:$0xff] %vm497_vm6, %v20224_v15  ;;  %502 = vst.msk [vmem:[#allocation3 + $0x18] sm:$0xff] %vm497_vm6, %v20224_v15 }
 0x205   : > { %14345 = vmatprep.mubr.msk.f32.mxu1 %vm441_vm1, %v17062_v50  ;;  %v4165_v50 = vld [vmem:[#allocation2 + $0x1a2] sm:$0xff]  ;;  %505 = vst.msk [vmem:[#allocation3 + $0x30] sm:$0xff] %vm497_vm6, %v20224_v15  ;;  %506 = vst.msk [vmem:[#allocation3 + $0x38] sm:$0xff] %vm497_vm6, %v20224_v15 }
 0x206   : > { %507 = vst.msk [vmem:[#allocation3 + $0x40] sm:$0x3] %vm500_vm7, %v20224_v15  ;;  %510 = vst.msk [vmem:[#allocation3 + $0x58] sm:$0x3] %vm500_vm7, %v20224_v15 }
 0x207   : > { %508 = vst.msk [vmem:[#allocation3 + $0x48] sm:$0xff] %vm497_vm6, %v20224_v15  ;;  %509 = vst.msk [vmem:[#allocation3 + $0x50] sm:$0xff] %vm497_vm6, %v20224_v15 }
 0x208   : > { %14346 = vmatmul.mubr.msk.f32.gmra.mrb[8].mxu1 %vm441_vm1, %v17070_v37  ;;  %v4164_v37 = vld [vmem:[#allocation2 + $0x19a] sm:$0xff]  ;;  %511 = vst.msk [vmem:[#allocation3 + $0x60] sm:$0xff] %vm497_vm6, %v20224_v15  ;;  %512 = vst.msk [vmem:[#allocation3 + $0x68] sm:$0xff] %vm497_vm6, %v20224_v15 }
 0x209   : > { %14348 = vmatprep.mubr.msk.f32.mxu1 %vm441_vm1, %v17078_v27  ;;  %v20222_v27 = vld [vmem:[#allocation67_spill] sm:$0xff]  ;;  %513 = vst.msk [vmem:[#allocation3 + $0x70] sm:$0x3] %vm500_vm7, %v20224_v15  ;;  %516 = vst.msk [vmem:[#allocation3 + $0x88] sm:$0x3] %vm500_vm7, %v20224_v15 }
 0x20a   : > { %514 = vst.msk [vmem:[#allocation3 + $0x78] sm:$0xff] %vm497_vm6, %v20224_v15  ;;  %515 = vst.msk [vmem:[#allocation3 + $0x80] sm:$0xff] %vm497_vm6, %v20224_v15 }
 0x20b   : > { %517 = vst.msk [vmem:[#allocation3 + $0x90] sm:$0xff] %vm497_vm6, %v20224_v15  ;;  %518 = vst.msk [vmem:[#allocation3 + $0x98] sm:$0xff] %vm497_vm6, %v20224_v15  ;;  %v4732_v28 = vld [vmem:[#allocation3 + $0x9] sm:$0xff] }
 0x20c   : > { %14349 = vmatmul.mubr.msk.f32.gmra.mrb[10].mxu1 %vm441_vm1, %v17086_v17  ;;  %v4763_v17 = vld [vmem:[%s19900_s7 + $0x20] sm:$0xff]  ;;  %519 = vst.msk [vmem:[#allocation3 + $0xa0] sm:$0x3] %vm500_vm7, %v20224_v15  ;;  %522 = vst.msk [vmem:[#allocation3 + $0xb8] sm:$0x3] %vm500_vm7, %v20224_v15 }
 0x20d   : > { %14351 = vmatprep.mubr.msk.f32.mxu1 %vm441_vm1, %v17094_v6  ;;  %v20221_v6 = vld [vmem:[#allocation66_spill] sm:$0xff]  ;;  %520 = vst.msk [vmem:[#allocation3 + $0xa8] sm:$0xff] %vm497_vm6, %v20224_v15  ;;  %521 = vst.msk [vmem:[#allocation3 + $0xb0] sm:$0xff] %vm497_vm6, %v20224_v15 }
 0x20e   : > { %523 = vst.msk [vmem:[#allocation3 + $0xc0] sm:$0xff] %vm497_vm6, %v20224_v15  ;;  %524 = vst.msk [vmem:[#allocation3 + $0xc8] sm:$0xff] %vm497_vm6, %v20224_v15 }
 0x20f   : > { %525 = vst.msk [vmem:[#allocation3 + $0xd0] sm:$0x3] %vm500_vm7, %v20224_v15  ;;  %528 = vst.msk [vmem:[#allocation3 + $0xe8] sm:$0x3] %vm500_vm7, %v20224_v15 }
 0x210   : > { %14352 = vmatmul.mubr.msk.f32.gmra.mrb[12].mxu1 %vm441_vm1, %v17102_v61  ;;  %v4764_v61 = vld [vmem:[%s19900_s7 + $0x28] sm:$0xff]  ;;  %526 = vst.msk [vmem:[#allocation3 + $0xd8] sm:$0xff] %vm497_vm6, %v20224_v15  ;;  %527 = vst.msk [vmem:[#allocation3 + $0xe0] sm:$0xff] %vm497_vm6, %v20224_v15 }
 0x211   : > { %14354 = vmatprep.mubr.msk.f32.mxu1 %vm441_vm1, %v17110_v52  ;;  %v15335_v52 = vpack.c.bf16 %v4764_v61, %v4763_v17  ;;  %529 = vst.msk [vmem:[#allocation3 + $0xf0] sm:$0xff] %vm497_vm6, %v20224_v15  ;;  %530 = vst.msk [vmem:[#allocation3 + $0xf8] sm:$0xff] %vm497_vm6, %v20224_v15 }
 0x212   : > { %531 = vst.msk [vmem:[#allocation3 + $0x100] sm:$0x3] %vm500_vm7, %v20224_v15  ;;  %534 = vst.msk [vmem:[#allocation3 + $0x118] sm:$0x3] %vm500_vm7, %v20224_v15 }
 0x213   : > { %15336 = vmatprep.subr.bf16.mxu0 %v15335_v52  ;;  %532 = vst.msk [vmem:[#allocation3 + $0x108] sm:$0xff] %vm497_vm6, %v20224_v15  ;;  %533 = vst.msk [vmem:[#allocation3 + $0x110] sm:$0xff] %vm497_vm6, %v20224_v15 }
 0x214   : > { %14355 = vmatmul.mubr.msk.f32.gmra.mrb[14].mxu1 %vm441_vm1, %v17118_v63  ;;  %15338 = vmatpush3.bf16.msra.mxu0 %v15335_v52  ;;  %535 = vst.msk [vmem:[#allocation3 + $0x120] sm:$0xff] %vm497_vm6, %v20224_v15  ;;  %536 = vst.msk [vmem:[#allocation3 + $0x128] sm:$0xff] %vm497_vm6, %v20224_v15 }
 0x215   : > { %14357 = vmatprep.mubr.msk.f32.mxu1 %vm441_vm1, %v17126_v29  ;;  %537 = vst.msk [vmem:[#allocation3 + $0x130] sm:$0x3] %vm500_vm7, %v20224_v15  ;;  %540 = vst.msk [vmem:[#allocation3 + $0x148] sm:$0x3] %vm500_vm7, %v20224_v15 }
 0x216   : > { %538 = vst.msk [vmem:[#allocation3 + $0x138] sm:$0xff] %vm497_vm6, %v20224_v15  ;;  %539 = vst.msk [vmem:[#allocation3 + $0x140] sm:$0xff] %vm497_vm6, %v20224_v15 }
 0x217   : > { %541 = vst.msk [vmem:[#allocation3 + $0x150] sm:$0xff] %vm497_vm6, %v20224_v15  ;;  %542 = vst.msk [vmem:[#allocation3 + $0x158] sm:$0xff] %vm497_vm6, %v20224_v15 }
 0x218   : > { %14358 = vmatmul.mubr.msk.f32.gmra.mrb[16].mxu1 %vm441_vm1, %v17134_v42  ;;  %543 = vst.msk [vmem:[#allocation3 + $0x160] sm:$0x3] %vm500_vm7, %v20224_v15  ;;  %546 = vst.msk [vmem:[#allocation3 + $0x178] sm:$0x3] %vm500_vm7, %v20224_v15 }
 0x219   : > { %14360 = vmatprep.mubr.msk.f32.mxu1 %vm441_vm1, %v17142_v51  ;;  %544 = vst.msk [vmem:[#allocation3 + $0x168] sm:$0xff] %vm497_vm6, %v20224_v15  ;;  %545 = vst.msk [vmem:[#allocation3 + $0x170] sm:$0xff] %vm497_vm6, %v20224_v15 }
 0x21a   : > { %547 = vst.msk [vmem:[#allocation3 + $0x180] sm:$0xff] %vm497_vm6, %v20224_v15  ;;  %548 = vst.msk [vmem:[#allocation3 + $0x188] sm:$0xff] %vm497_vm6, %v20224_v15 }
 0x21b   : > { %549 = vst.msk [vmem:[#allocation3 + $0x190] sm:$0x3] %vm500_vm7, %v20224_v15  ;;  %552 = vst.msk [vmem:[#allocation3 + $0x1a8] sm:$0x3] %vm500_vm7, %v20224_v15 }
 0x21c   : > { %14361 = vmatmul.mubr.msk.f32.gmra.mrb[18].mxu1 %vm441_vm1, %v17150_v12  ;;  %550 = vst.msk [vmem:[#allocation3 + $0x198] sm:$0xff] %vm497_vm6, %v20224_v15  ;;  %551 = vst.msk [vmem:[#allocation3 + $0x1a0] sm:$0xff] %vm497_vm6, %v20224_v15 }
 0x21d   : > { %14363 = vmatprep.mubr.msk.f32.mxu1 %vm441_vm1, %v17158_v36 }
 0x220   : > { %14364 = vmatmul.mubr.msk.f32.gmra.mrb[20].mxu1 %vm441_vm1, %v17166_v13  ;;  %v4730_v13 = vld [vmem:[%s19900_s7 + $0x18] sm:$0xff] }
 0x221   : > { %14366 = vmatprep.mubr.msk.f32.mxu1 %vm441_vm1, %v17174_v54  ;;  %v15347_v26 = vpack.c.bf16 %v4730_v13, %v4729_v5 }
 0x224   : > { %14367 = vmatmul.mubr.msk.f32.gmra.mrb[22].mxu1 %vm441_vm1, %v17182_v33  ;;  %v4727_v33 = vld [vmem:[%s19900_s7] sm:$0xff] }
 0x225   : > { %14369 = vmatprep.mubr.msk.f32.mxu1 %vm441_vm1, %v17190_v20  ;;  %v4731_v20 = vld [vmem:[#allocation3 + $0x1] sm:$0xff]  ;;  %v15343_v54 = vpack.c.bf16 %v4728_v45, %v4727_v33 }
 0x226   : > { %14389 = vmatprep.mubr.msk.f32.mxu0 %vm497_vm6, %v4731_v20 }
 0x228   : > { %14370 = vmatmul.mubr.msk.f32.gmra.mrb[24].mxu1 %vm441_vm1, %v17198_v7 }
 0x229   : > { %14372 = vmatprep.mubr.msk.f32.mxu1 %vm441_vm1, %v17206_v55  ;;  %v4766_v55 = vld [vmem:[%s19900_s7 + $0x38] sm:$0xff] }
 0x22a   : > { %v15339_v7 = vpack.c.bf16 %v4766_v55, %v4765_v0 }
 0x22c   : > { %14373 = vmatmul.mubr.msk.f32.gmra.mrb[26].mxu1 %vm441_vm1, %v20221_v6  ;;  %15340 = vmatprep.subr.bf16.mxu0 %v15339_v7 }
 0x22d   : > { %14375 = vmatprep.mubr.msk.f32.mxu1 %vm441_vm1, %v20222_v27  ;;  %15342 = vmatpush3.bf16.msra.mxu0 %v15339_v7 }
 0x22e   : > { %15344 = vmatprep.subr.bf16.mxu0 %v15343_v54 }
 0x230   : > { %14376 = vmatmul.mubr.msk.f32.gmra.mrb[28].mxu1 %vm441_vm1, %v20223_v43  ;;  %14390 = vmatmul.mubr.msk.f32.vlgmr.msra.gmra.mrb[64].mxu0 %vm497_vm6, %v4732_v28 }
 0x231   : > { %14378 = vmatprep.mubr.msk.f32.mxu1 %vm441_vm1, %v4164_v37  ;;  %15346 = vmatpush3.bf16.msra.mxu0 %v15343_v54 }
 0x232   : > { %15348 = vmatprep.subr.bf16.mxu0 %v15347_v26 }
 0x234   : > { %14379 = vmatmul.mubr.msk.f32.gmra.mrb[30].mxu1 %vm441_vm1, %v4165_v50 }
 0x235   : > { %15350 = vmatpush3.bf16.msra.mxu0 %v15347_v26 }
 0x236   : > { %15352 = vmatprep.subr.bf16.mxu0 %v17696_v8 }
 0x287   : > { %v14085_v36 = vpop.f32.mrb[32].mxu0 }
 0x288   : > { %v2398_v47 = vpop.f32.mrb[33].mxu0 }
 0x28b   : > { %v14088_v12 = vpop.f32.mrb[34].mxu0 }
 0x28c   : > { %v2408_v51 = vpop.f32.mrb[35].mxu0 }
 0x28f   : > { %v14091_v42 = vpop.f32.mrb[36].mxu0 }
 0x290   : > { %v2418_v29 = vpop.f32.mrb[37].mxu0 }
 0x293   : > { %v17684_v63 = vpop.f32.mrb[38].mxu0 }
 0x294   : > { %v17686_v60 = vpop.f32.mrb[39].mxu0 }
 0x297   : > { %v17694_v40 = vpop.f32.mrb[40].mxu0 }
 0x298   : > { %v17698_v25 = vpop.f32.mrb[41].mxu0 }
 0x29b   : > { %v17701_v41 = vpop.f32.mrb[42].mxu0 }
 0x29c   : > { %v17703_v1 = vpop.f32.mrb[43].mxu0 }
 0x29f   : > { %v17705_v22 = vpop.f32.mrb[44].mxu0 }
 0x2a0   : > { %v17707_v31 = vpop.f32.mrb[45].mxu0 }
 0x2a3   : > { %v17709_v39 = vpop.f32.mrb[46].mxu0 }
 0x2a4   : > { %v17711_v58 = vpop.f32.mrb[47].mxu0 }
 0x2a7   : > { %v17713_v21 = vpop.f32.mrb[48].mxu0 }
 0x2a8   : > { %v17715_v62 = vpop.f32.mrb[49].mxu0 }
 0x2ab   : > { %v17717_v38 = vpop.f32.mrb[50].mxu0 }
 0x2ac   : > { %v17719_v23 = vpop.f32.mrb[51].mxu0 }
 0x2af   : > { %v17721_v10 = vpop.f32.mrb[52].mxu0 }
 0x2b0   : > { %v17723_v59 = vpop.f32.mrb[53].mxu0 }
 0x2b3   : > { %v17725_v46 = vpop.f32.mrb[54].mxu0 }
 0x2b4   : > { %v17727_v34 = vpop.f32.mrb[55].mxu0 }
 0x2b7   : > { %v17729_v24 = vpop.f32.mrb[56].mxu0 }
 0x2b8   : > { %v17731_v14 = vpop.f32.mrb[57].mxu0 }
 0x2bb   : > { %v17733_v3 = vpop.f32.mrb[58].mxu0 }
 0x2bc   : > { %v17735_v57 = vpop.f32.mrb[59].mxu0 }
 0x2bf   : > { %v17737_v49 = vpop.f32.mrb[60].mxu0 }
 0x2c0   : > { %v17739_v56 = vpop.f32.mrb[61].mxu0 }
 0x2c3   : > { %v17741_v19 = vpop.f32.mrb[62].mxu0 }
 0x2c4   : > { %v17743_v16 = vpop.f32.mrb[63].mxu0 }
 0x2cb   : > { %v14335_v44 = vpop.f32.mrb[0].mxu1 }
 0x2cc   : > { %v15407_v32 = vadd.f32 %v14335_v44, %v14085_v36  ;;  %v4329_v9 = vpop.f32.mrb[1].mxu1 }
 0x2cd   : > { %v15408_v30 = vadd.f32 %v4329_v9, %v2398_v47 }
 0x2ce   : > { %v4528_v18 = vadd.f32 %v15407_v32, %v17748_v2 }
 0x2cf   : > { %v4527_v4 = vadd.f32 %v15408_v30, %v17748_v2  ;;  %v14338_v11 = vpop.f32.mrb[2].mxu1 }
 0x2d0   : > { %vm4561_vm8 = vcmp.ge.f32.partialorder %v4528_v18, 0.0  ;;  %v4599_v17 = vmul.f32 %v17753_v48, %v4528_v18  ;;  %v15409_v61 = vadd.f32 %v14338_v11, %v14088_v12  ;;  %v4339_v52 = vpop.f32.mrb[3].mxu1 }
 0x2d1   : > { %vm4560_vm9 = vcmp.ge.f32.partialorder %v4527_v4, 0.0  ;;  %v4598_v6 = vmul.f32 %v17753_v48, %v4527_v4  ;;  %v15410_v27 = vadd.f32 %v4339_v52, %v2408_v51 }
 0x2d2   : > { %v17759_v37 = vsel %vm4561_vm8, %v4528_v18, %v4599_v17  ;;  %v4530_v43 = vadd.f32 %v15409_v61, %v17748_v2 }
 0x2d3   : > { %20225 = vst [vmem:[#allocation64_spill] sm:$0xff] %v17759_v37  ;;  %4664 = vst.msk [vmem:[#allocation3 + $0x21] sm:$0xff] %vm497_vm6, %v17759_v37  ;;  %v17764_v50 = vsel %vm4560_vm9, %v4527_v4, %v4598_v6  ;;  %v4529_v0 = vadd.f32 %v15410_v27, %v17748_v2  ;;  %v14341_v55 = vpop.f32.mrb[4].mxu1  ;;  %v5833_v37 = vld [vmem:[%s19900_s7 + $0x78] sm:$0xff] }
 0x2d4   : > { %20226 = vst [vmem:[#allocation65_spill] sm:$0xff] %v17764_v50  ;;  %4663 = vst.msk [vmem:[#allocation3 + $0x19] sm:$0xff] %vm497_vm6, %v17764_v50  ;;  %vm4563_vm10 = vcmp.ge.f32.partialorder %v4530_v43, 0.0  ;;  %v4601_v7 = vmul.f32 %v17753_v48, %v4530_v43  ;;  %v15411_v15 = vadd.f32 %v14341_v55, %v14091_v42  ;;  %v4349_v20 = vpop.f32.mrb[5].mxu1  ;;  %v5832_v50 = vld [vmem:[%s19900_s7 + $0x70] sm:$0xff] }
 0x2d5   : > { %vm4562_vm11 = vcmp.ge.f32.partialorder %v4529_v0, 0.0  ;;  %v4600_v28 = vmul.f32 %v17753_v48, %v4529_v0  ;;  %v15412_v33 = vadd.f32 %v4349_v20, %v2418_v29 }
 0x2d6   : > { %v17771_v45 = vsel %vm4563_vm10, %v4530_v43, %v4601_v7  ;;  %v4532_v54 = vadd.f32 %v15411_v15, %v17748_v2 }
 0x2d7   : > { %20227 = vst [vmem:[#allocation15_spill] sm:$0xff] %v17771_v45  ;;  %4666 = vst.msk [vmem:[#allocation3 + $0x39] sm:$0xff] %vm497_vm6, %v17771_v45  ;;  %v17776_v5 = vsel %vm4562_vm11, %v4529_v0, %v4600_v28  ;;  %v4531_v13 = vadd.f32 %v15412_v33, %v17748_v2  ;;  %v14344_v26 = vpop.f32.mrb[6].mxu1 }
 0x2d8   : > { %20228 = vst [vmem:[#allocation18_spill] sm:$0xff] %v17776_v5  ;;  %4665 = vst.msk [vmem:[#allocation3 + $0x31] sm:$0xff] %vm497_vm6, %v17776_v5  ;;  %vm4565_vm12 = vcmp.ge.f32.partialorder %v4532_v54, 0.0  ;;  %v4603_v36 = vmul.f32 %v17753_v48, %v4532_v54  ;;  %v15413_v47 = vadd.f32 %v14344_v26, %v17684_v63  ;;  %v4359_v12 = vpop.f32.mrb[7].mxu1  ;;  %v5409_v5 = vld [vmem:[#allocation3 + $0x2] sm:$0xff] }
 0x2d9   : > { %vm4564_vm13 = vcmp.ge.f32.partialorder %v4531_v13, 0.0  ;;  %v4602_v51 = vmul.f32 %v17753_v48, %v4531_v13  ;;  %v15414_v42 = vadd.f32 %v4359_v12, %v17686_v60 }
 0x2da   : > { %v17785_v29 = vsel %vm4565_vm12, %v4532_v54, %v4603_v36  ;;  %v4534_v53 = vadd.f32 %v15413_v47, %v17748_v2  ;;  %v17801_v18 = vld [vmem:[#allocation3 + $0x21] sm:$0xff] }
 0x2db   : > { %20229 = vst [vmem:[#allocation19_spill] sm:$0xff] %v17785_v29  ;;  %4668 = vst.msk [vmem:[#allocation3 + $0x51] sm:$0xff] %vm497_vm6, %v17785_v29  ;;  %v17790_v35 = vsel %vm4564_vm13, %v4531_v13, %v4602_v51  ;;  %v4533_v44 = vadd.f32 %v15414_v42, %v17748_v2  ;;  %v14347_v32 = vpop.f32.mrb[8].mxu1  ;;  %v17793_v9 = vld [vmem:[#allocation3 + $0x19] sm:$0xff] }
 0x2dc   : > { %20230 = vst [vmem:[#allocation22_spill] sm:$0xff] %v17790_v35  ;;  %4667 = vst.msk [vmem:[#allocation3 + $0x49] sm:$0xff] %vm497_vm6, %v17790_v35  ;;  %vm4567_vm14 = vcmp.ge.f32.partialorder %v4534_v53, 0.0  ;;  %v4605_v63 = vmul.f32 %v17753_v48, %v4534_v53  ;;  %v15415_v60 = vadd.f32 %v14347_v32, %v17694_v40  ;;  %v4369_v30 = vpop.f32.mrb[9].mxu1  ;;  %14392 = vmatprep.mubr.msk.f32.mxu0 %vm497_vm6, %v17793_v9 }
 0x2dd   : > { %vm4566_vm15 = vcmp.ge.f32.partialorder %v4533_v44, 0.0  ;;  %v4604_v4 = vmul.f32 %v17753_v48, %v4533_v44  ;;  %v15416_v11 = vadd.f32 %v4369_v30, %v17698_v25  ;;  %14393 = vmatmul.mubr.msk.f32.gmra.mrb[66].mxu0 %vm497_vm6, %v17801_v18 }
 0x2de   : > { %v17807_v17 = vsel %vm4567_vm14, %v4534_v53, %v4605_v63  ;;  %v4536_v61 = vadd.f32 %v15415_v60, %v17748_v2  ;;  %v17823_v55 = vld [vmem:[#allocation3 + $0x39] sm:$0xff] }
 0x2df   : > { %20231 = vst [vmem:[#allocation23_spill] sm:$0xff] %v17807_v17  ;;  %4670 = vst.msk [vmem:[#allocation3 + $0x69] sm:$0xff] %vm497_vm6, %v17807_v17  ;;  %v17812_v40 = vsel %vm4566_vm15, %v4533_v44, %v4604_v4  ;;  %v4535_v52 = vadd.f32 %v15416_v11, %v17748_v2  ;;  %v14350_v6 = vpop.f32.mrb[10].mxu1  ;;  %v17815_v27 = vld [vmem:[#allocation3 + $0x31] sm:$0xff] }
 0x2e0   : > { %20232 = vst [vmem:[#allocation26_spill] sm:$0xff] %v17812_v40  ;;  %4669 = vst.msk [vmem:[#allocation3 + $0x61] sm:$0xff] %vm497_vm6, %v17812_v40  ;;  %vm4569_vm0 = vcmp.ge.f32.partialorder %v4536_v61, 0.0  ;;  %v4607_v25 = vmul.f32 %v17753_v48, %v4536_v61  ;;  %v15417_v43 = vadd.f32 %v14350_v6, %v17701_v41  ;;  %v4379_v0 = vpop.f32.mrb[11].mxu1  ;;  %14395 = vmatprep.mubr.msk.f32.mxu0 %vm497_vm6, %v17815_v27 }
 0x2e1   : > { %vm4568_vm2 = vcmp.ge.f32.partialorder %v4535_v52, 0.0  ;;  %v4606_v7 = vmul.f32 %v17753_v48, %v4535_v52  ;;  %v15418_v15 = vadd.f32 %v4379_v0, %v17703_v1  ;;  %14396 = vmatmul.mubr.msk.f32.gmra.mrb[68].mxu0 %vm497_vm6, %v17823_v55 }
 0x2e2   : > { %v17829_v20 = vsel %vm4569_vm0, %v4536_v61, %v4607_v25  ;;  %v4538_v28 = vadd.f32 %v15417_v43, %v17748_v2  ;;  %v17845_v47 = vld [vmem:[#allocation3 + $0x51] sm:$0xff] }
 0x2e3   : > { %20233 = vst [vmem:[#allocation27_spill] sm:$0xff] %v17829_v20  ;;  %4672 = vst.msk [vmem:[#allocation3 + $0x81] sm:$0xff] %vm497_vm6, %v17829_v20  ;;  %v17834_v41 = vsel %vm4568_vm2, %v4535_v52, %v4606_v7  ;;  %v4537_v33 = vadd.f32 %v15418_v15, %v17748_v2  ;;  %v14353_v54 = vpop.f32.mrb[12].mxu1  ;;  %v17837_v13 = vld [vmem:[#allocation3 + $0x49] sm:$0xff] }
 0x2e4   : > { %20234 = vst [vmem:[#allocation30_spill] sm:$0xff] %v17834_v41  ;;  %4671 = vst.msk [vmem:[#allocation3 + $0x79] sm:$0xff] %vm497_vm6, %v17834_v41  ;;  %vm4571_vm3 = vcmp.ge.f32.partialorder %v4538_v28, 0.0  ;;  %v4609_v1 = vmul.f32 %v17753_v48, %v4538_v28  ;;  %v15419_v26 = vadd.f32 %v14353_v54, %v17705_v22  ;;  %v4389_v36 = vpop.f32.mrb[13].mxu1  ;;  %14398 = vmatprep.mubr.msk.f32.mxu0 %vm497_vm6, %v17837_v13 }
 0x2e5   : > { %vm4570_vm4 = vcmp.ge.f32.partialorder %v4537_v33, 0.0  ;;  %v4608_v12 = vmul.f32 %v17753_v48, %v4537_v33  ;;  %v15420_v51 = vadd.f32 %v4389_v36, %v17707_v31  ;;  %14399 = vmatmul.mubr.msk.f32.gmra.mrb[70].mxu0 %vm497_vm6, %v17845_v47 }
 0x2e6   : > { %v17851_v42 = vsel %vm4571_vm3, %v4538_v28, %v4609_v1  ;;  %v4540_v53 = vadd.f32 %v15419_v26, %v17748_v2  ;;  %v17867_v4 = vld [vmem:[#allocation3 + $0x69] sm:$0xff] }
 0x2e7   : > { %20235 = vst [vmem:[#allocation31_spill] sm:$0xff] %v17851_v42  ;;  %4674 = vst.msk [vmem:[#allocation3 + $0x99] sm:$0xff] %vm497_vm6, %v17851_v42  ;;  %v17856_v22 = vsel %vm4570_vm4, %v4537_v33, %v4608_v12  ;;  %v4539_v44 = vadd.f32 %v15420_v51, %v17748_v2  ;;  %v14356_v32 = vpop.f32.mrb[14].mxu1  ;;  %v17859_v63 = vld [vmem:[#allocation3 + $0x61] sm:$0xff] }
 0x2e8   : > { %20236 = vst [vmem:[#allocation34_spill] sm:$0xff] %v17856_v22  ;;  %4673 = vst.msk [vmem:[#allocation3 + $0x91] sm:$0xff] %vm497_vm6, %v17856_v22  ;;  %vm4573_vm5 = vcmp.ge.f32.partialorder %v4540_v53, 0.0  ;;  %v4611_v31 = vmul.f32 %v17753_v48, %v4540_v53  ;;  %v15421_v60 = vadd.f32 %v14356_v32, %v17709_v39  ;;  %v4399_v30 = vpop.f32.mrb[15].mxu1  ;;  %14401 = vmatprep.mubr.msk.f32.mxu0 %vm497_vm6, %v17859_v63 }
 0x2e9   : > { %vm4572_vm7 = vcmp.ge.f32.partialorder %v4539_v44, 0.0  ;;  %v4610_v11 = vmul.f32 %v17753_v48, %v4539_v44  ;;  %v15422_v61 = vadd.f32 %v4399_v30, %v17711_v58  ;;  %14402 = vmatmul.mubr.msk.f32.gmra.mrb[72].mxu0 %vm497_vm6, %v17867_v4 }
 0x2ea   : > { %v17873_v52 = vsel %vm4573_vm5, %v4540_v53, %v4611_v31  ;;  %v4542_v6 = vadd.f32 %v15421_v60, %v17748_v2  ;;  %v17889_v28 = vld [vmem:[#allocation3 + $0x81] sm:$0xff] }
 0x2eb   : > { %20237 = vst [vmem:[#allocation35_spill] sm:$0xff] %v17873_v52  ;;  %4676 = vst.msk [vmem:[#allocation3 + $0xb1] sm:$0xff] %vm497_vm6, %v17873_v52  ;;  %v17878_v39 = vsel %vm4572_vm7, %v4539_v44, %v4610_v11  ;;  %v4541_v25 = vadd.f32 %v15422_v61, %v17748_v2  ;;  %v14359_v43 = vpop.f32.mrb[16].mxu1  ;;  %v17881_v0 = vld [vmem:[#allocation3 + $0x79] sm:$0xff] }
 0x2ec   : > { %20238 = vst [vmem:[#allocation38_spill] sm:$0xff] %v17878_v39  ;;  %4675 = vst.msk [vmem:[#allocation3 + $0xa9] sm:$0xff] %vm497_vm6, %v17878_v39  ;;  %vm4575_vm8 = vcmp.ge.f32.partialorder %v4542_v6, 0.0  ;;  %v4613_v58 = vmul.f32 %v17753_v48, %v4542_v6  ;;  %v15423_v7 = vadd.f32 %v14359_v43, %v17713_v21  ;;  %v4409_v15 = vpop.f32.mrb[17].mxu1  ;;  %14404 = vmatprep.mubr.msk.f32.mxu0 %vm497_vm6, %v17881_v0 }
 0x2ed   : > { %vm4574_vm9 = vcmp.ge.f32.partialorder %v4541_v25, 0.0  ;;  %v4612_v33 = vmul.f32 %v17753_v48, %v4541_v25  ;;  %v15424_v54 = vadd.f32 %v4409_v15, %v17715_v62  ;;  %14405 = vmatmul.mubr.msk.f32.gmra.mrb[74].mxu0 %vm497_vm6, %v17889_v28 }
 0x2ee   : > { %v17895_v1 = vsel %vm4575_vm8, %v4542_v6, %v4613_v58  ;;  %v4544_v26 = vadd.f32 %v15423_v7, %v17748_v2  ;;  %v17911_v32 = vld [vmem:[#allocation3 + $0x99] sm:$0xff] }
 0x2ef   : > { %20239 = vst [vmem:[#allocation39_spill] sm:$0xff] %v17895_v1  ;;  %4678 = vst.msk [vmem:[#allocation3 + $0xc9] sm:$0xff] %vm497_vm6, %v17895_v1  ;;  %v17900_v21 = vsel %vm4574_vm9, %v4541_v25, %v4612_v33  ;;  %v4543_v36 = vadd.f32 %v15424_v54, %v17748_v2  ;;  %v14362_v12 = vpop.f32.mrb[18].mxu1  ;;  %v17903_v51 = vld [vmem:[#allocation3 + $0x91] sm:$0xff] }
 0x2f0   : > { %20240 = vst [vmem:[#allocation42_spill] sm:$0xff] %v17900_v21  ;;  %4677 = vst.msk [vmem:[#allocation3 + $0xc1] sm:$0xff] %vm497_vm6, %v17900_v21  ;;  %vm4577_vm10 = vcmp.ge.f32.partialorder %v4544_v26, 0.0  ;;  %v4615_v62 = vmul.f32 %v17753_v48, %v4544_v26  ;;  %v15425_v53 = vadd.f32 %v14362_v12, %v17717_v38  ;;  %v4419_v44 = vpop.f32.mrb[19].mxu1  ;;  %14407 = vmatprep.mubr.msk.f32.mxu0 %vm497_vm6, %v17903_v51 }
 0x2f1   : > { %vm4576_vm11 = vcmp.ge.f32.partialorder %v4543_v36, 0.0  ;;  %v4614_v31 = vmul.f32 %v17753_v48, %v4543_v36  ;;  %v15426_v60 = vadd.f32 %v4419_v44, %v17719_v23  ;;  %14408 = vmatmul.mubr.msk.f32.gmra.mrb[76].mxu0 %vm497_vm6, %v17911_v32 }
 0x2f2   : > { %v17917_v30 = vsel %vm4577_vm10, %v4544_v26, %v4615_v62  ;;  %v4546_v11 = vadd.f32 %v15425_v53, %v17748_v2  ;;  %v17933_v7 = vld [vmem:[#allocation3 + $0xb1] sm:$0xff] }
 0x2f3   : > { %20241 = vst [vmem:[#allocation43_spill] sm:$0xff] %v17917_v30  ;;  %4680 = vst.msk [vmem:[#allocation3 + $0xe1] sm:$0xff] %vm497_vm6, %v17917_v30  ;;  %v17922_v38 = vsel %vm4576_vm11, %v4543_v36, %v4614_v31  ;;  %v4545_v61 = vadd.f32 %v15426_v60, %v17748_v2  ;;  %v14365_v6 = vpop.f32.mrb[20].mxu1  ;;  %v17925_v25 = vld [vmem:[#allocation3 + $0xa9] sm:$0xff] }
 0x2f4   : > { %20242 = vst [vmem:[#allocation46_spill] sm:$0xff] %v17922_v38  ;;  %4679 = vst.msk [vmem:[#allocation3 + $0xd9] sm:$0xff] %vm497_vm6, %v17922_v38  ;;  %vm4579_vm12 = vcmp.ge.f32.partialorder %v4546_v11, 0.0  ;;  %v4617_v23 = vmul.f32 %v17753_v48, %v4546_v11  ;;  %v15427_v43 = vadd.f32 %v14365_v6, %v17721_v10  ;;  %v4429_v58 = vpop.f32.mrb[21].mxu1  ;;  %14410 = vmatprep.mubr.msk.f32.mxu0 %vm497_vm6, %v17925_v25 }
 0x2f5   : > { %vm4578_vm13 = vcmp.ge.f32.partialorder %v4545_v61, 0.0  ;;  %v4616_v15 = vmul.f32 %v17753_v48, %v4545_v61  ;;  %v15428_v33 = vadd.f32 %v4429_v58, %v17723_v59  ;;  %14411 = vmatmul.mubr.msk.f32.gmra.mrb[78].mxu0 %vm497_vm6, %v17933_v7 }
 0x2f6   : > { %v17939_v54 = vsel %vm4579_vm12, %v4546_v11, %v4617_v23  ;;  %v4548_v26 = vadd.f32 %v15427_v43, %v17748_v2  ;;  %v17955_v31 = vld [vmem:[#allocation3 + $0xc9] sm:$0xff] }
 0x2f7   : > { %20243 = vst [vmem:[#allocation47_spill] sm:$0xff] %v17939_v54  ;;  %4682 = vst.msk [vmem:[#allocation3 + $0xf9] sm:$0xff] %vm497_vm6, %v17939_v54  ;;  %v17944_v10 = vsel %vm4578_vm13, %v4545_v61, %v4616_v15  ;;  %v4547_v36 = vadd.f32 %v15428_v33, %v17748_v2  ;;  %v14368_v12 = vpop.f32.mrb[22].mxu1  ;;  %v17947_v62 = vld [vmem:[#allocation3 + $0xc1] sm:$0xff] }
 0x2f8   : > { %20244 = vst [vmem:[#allocation50_spill] sm:$0xff] %v17944_v10  ;;  %4681 = vst.msk [vmem:[#allocation3 + $0xf1] sm:$0xff] %vm497_vm6, %v17944_v10  ;;  %vm4581_vm14 = vcmp.ge.f32.partialorder %v4548_v26, 0.0  ;;  %v4619_v59 = vmul.f32 %v17753_v48, %v4548_v26  ;;  %v15429_v53 = vadd.f32 %v14368_v12, %v17725_v46  ;;  %v4439_v44 = vpop.f32.mrb[23].mxu1  ;;  %14413 = vmatprep.mubr.msk.f32.mxu0 %vm497_vm6, %v17947_v62  ;;  %v18163_v10 = vld [vmem:[#allocation3 + $0xb0] sm:$0xff]  ;;  %v18167_v54 = vld [vmem:[#allocation3 + $0xc0] sm:$0xff] }
 0x2f9   : > { %vm4580_vm15 = vcmp.ge.f32.partialorder %v4547_v36, 0.0  ;;  %v4618_v60 = vmul.f32 %v17753_v48, %v4547_v36  ;;  %v15430_v11 = vadd.f32 %v4439_v44, %v17727_v34  ;;  %14414 = vmatmul.mubr.msk.f32.gmra.mrb[80].mxu0 %vm497_vm6, %v17955_v31  ;;  %v18171_v38 = vld [vmem:[#allocation3 + $0xc8] sm:$0xff] }
 0x2fa   : > { %v17961_v61 = vsel %vm4581_vm14, %v4548_v26, %v4619_v59  ;;  %v4550_v6 = vadd.f32 %v15429_v53, %v17748_v2  ;;  %v17977_v26 = vld [vmem:[#allocation3 + $0xe1] sm:$0xff] }
 0x2fb   : > { %20245 = vst [vmem:[#allocation51_spill] sm:$0xff] %v17961_v61  ;;  %4684 = vst.msk [vmem:[#allocation3 + $0x111] sm:$0xff] %vm497_vm6, %v17961_v61  ;;  %v17966_v46 = vsel %vm4580_vm15, %v4547_v36, %v4618_v60  ;;  %v4549_v23 = vadd.f32 %v15430_v11, %v17748_v2  ;;  %v14371_v43 = vpop.f32.mrb[24].mxu1  ;;  %v17969_v58 = vld [vmem:[#allocation3 + $0xd9] sm:$0xff]  ;;  %v18159_v61 = vld [vmem:[#allocation3 + $0xa8] sm:$0xff] }
 0x2fc   : > { %20246 = vst [vmem:[#allocation54_spill] sm:$0xff] %v17966_v46  ;;  %4683 = vst.msk [vmem:[#allocation3 + $0x109] sm:$0xff] %vm497_vm6, %v17966_v46  ;;  %vm4583_vm0 = vcmp.ge.f32.partialorder %v4550_v6, 0.0  ;;  %v4621_v34 = vmul.f32 %v17753_v48, %v4550_v6  ;;  %v15431_v15 = vadd.f32 %v14371_v43, %v17729_v24  ;;  %v4449_v33 = vpop.f32.mrb[25].mxu1  ;;  %14416 = vmatprep.mubr.msk.f32.mxu0 %vm497_vm6, %v17969_v58  ;;  %v18155_v46 = vld [vmem:[#allocation3 + $0x98] sm:$0xff]  ;;  %v18179_v21 = vld [vmem:[#allocation3 + $0xe0] sm:$0xff] }
 0x2fd   : > { %vm4582_vm2 = vcmp.ge.f32.partialorder %v4549_v23, 0.0  ;;  %v4620_v36 = vmul.f32 %v17753_v48, %v4549_v23  ;;  %v15432_v12 = vadd.f32 %v4449_v33, %v17731_v14  ;;  %14417 = vmatmul.mubr.msk.f32.gmra.mrb[82].mxu0 %vm497_vm6, %v17977_v26  ;;  %v18175_v30 = vld [vmem:[#allocation3 + $0xd8] sm:$0xff] }
 0x2fe   : > { %v17983_v59 = vsel %vm4583_vm0, %v4550_v6, %v4621_v34  ;;  %v4552_v53 = vadd.f32 %v15431_v15, %v17748_v2  ;;  %v17999_v34 = vld [vmem:[#allocation3 + $0xf9] sm:$0xff] }
 0x2ff   : > { %20247 = vst [vmem:[#allocation55_spill] sm:$0xff] %v17983_v59  ;;  %4686 = vst.msk [vmem:[#allocation3 + $0x129] sm:$0xff] %vm497_vm6, %v17983_v59  ;;  %v17988_v24 = vsel %vm4582_vm2, %v4549_v23, %v4620_v36  ;;  %v4551_v44 = vadd.f32 %v15432_v12, %v17748_v2  ;;  %v14374_v60 = vpop.f32.mrb[26].mxu1  ;;  %v17991_v11 = vld [vmem:[#allocation3 + $0xf1] sm:$0xff] }
 0x300   : > { %20248 = vst [vmem:[#allocation58_spill] sm:$0xff] %v17988_v24  ;;  %4685 = vst.msk [vmem:[#allocation3 + $0x121] sm:$0xff] %vm497_vm6, %v17988_v24  ;;  %vm4585_vm3 = vcmp.ge.f32.partialorder %v4552_v53, 0.0  ;;  %v4623_v14 = vmul.f32 %v17753_v48, %v4552_v53  ;;  %v15433_v6 = vadd.f32 %v14374_v60, %v17733_v3  ;;  %v4459_v43 = vpop.f32.mrb[27].mxu1  ;;  %14419 = vmatprep.mubr.msk.f32.mxu0 %vm497_vm6, %v17991_v11  ;;  %v18151_v59 = vld [vmem:[#allocation3 + $0x90] sm:$0xff]  ;;  %v18187_v39 = vld [vmem:[#allocation3 + $0xf8] sm:$0xff] }
 0x301   : > { %vm4584_vm4 = vcmp.ge.f32.partialorder %v4551_v44, 0.0  ;;  %v4622_v23 = vmul.f32 %v17753_v48, %v4551_v44  ;;  %v15434_v15 = vadd.f32 %v4459_v43, %v17735_v57  ;;  %14420 = vmatmul.mubr.msk.f32.gmra.mrb[84].mxu0 %vm497_vm6, %v17999_v34  ;;  %v18183_v1 = vld [vmem:[#allocation3 + $0xf0] sm:$0xff] }
 0x302   : > { %v18005_v33 = vsel %vm4585_vm3, %v4552_v53, %v4623_v14  ;;  %v4554_v36 = vadd.f32 %v15433_v6, %v17748_v2  ;;  %v18021_v6 = vld [vmem:[#allocation3 + $0x111] sm:$0xff] }
 0x303   : > { %20249 = vst [vmem:[#allocation59_spill] sm:$0xff] %v18005_v33  ;;  %4688 = vst.msk [vmem:[#allocation3 + $0x141] sm:$0xff] %vm497_vm6, %v18005_v33  ;;  %v18010_v3 = vsel %vm4584_vm4, %v4551_v44, %v4622_v23  ;;  %v4553_v12 = vadd.f32 %v15434_v15, %v17748_v2  ;;  %v14377_v60 = vpop.f32.mrb[28].mxu1  ;;  %v18013_v24 = vld [vmem:[#allocation3 + $0x109] sm:$0xff] }
 0x304   : > { %20250 = vst [vmem:[#allocation60_spill] sm:$0xff] %v18010_v3  ;;  %4687 = vst.msk [vmem:[#allocation3 + $0x139] sm:$0xff] %vm497_vm6, %v18010_v3  ;;  %vm4587_vm5 = vcmp.ge.f32.partialorder %v4554_v36, 0.0  ;;  %v4625_v57 = vmul.f32 %v17753_v48, %v4554_v36  ;;  %v15435_v53 = vadd.f32 %v14377_v60, %v17737_v49  ;;  %v4469_v14 = vpop.f32.mrb[29].mxu1  ;;  %14422 = vmatprep.mubr.msk.f32.mxu0 %vm497_vm6, %v18013_v24  ;;  %v18191_v52 = vld [vmem:[#allocation3 + $0x108] sm:$0xff]  ;;  %v18195_v22 = vld [vmem:[#allocation3 + $0x110] sm:$0xff] }
 0x305   : > { %vm4586_vm7 = vcmp.ge.f32.partialorder %v4553_v12, 0.0  ;;  %v4624_v44 = vmul.f32 %v17753_v48, %v4553_v12  ;;  %v15436_v43 = vadd.f32 %v4469_v14, %v17739_v56  ;;  %14423 = vmatmul.mubr.msk.f32.gmra.mrb[86].mxu0 %vm497_vm6, %v18021_v6 }
 0x306   : > { %v18027_v23 = vsel %vm4587_vm5, %v4554_v36, %v4625_v57  ;;  %v4556_v15 = vadd.f32 %v15435_v53, %v17748_v2  ;;  %v18043_v53 = vld [vmem:[#allocation3 + $0x129] sm:$0xff] }
 0x307   : > { %20251 = vst [vmem:[#allocation61_spill] sm:$0xff] %v18027_v23  ;;  %4690 = vst.msk [vmem:[#allocation3 + $0x159] sm:$0xff] %vm497_vm6, %v18027_v23  ;;  %v18032_v49 = vsel %vm4586_vm7, %v4553_v12, %v4624_v44  ;;  %v4555_v60 = vadd.f32 %v15436_v43, %v17748_v2  ;;  %v14380_v3 = vpop.f32.mrb[30].mxu1  ;;  %v18035_v33 = vld [vmem:[#allocation3 + $0x121] sm:$0xff] }
 0x308   : > { %20252 = vst [vmem:[#allocation62_spill] sm:$0xff] %v18032_v49  ;;  %4689 = vst.msk [vmem:[#allocation3 + $0x151] sm:$0xff] %vm497_vm6, %v18032_v49  ;;  %vm4589_vm8 = vcmp.ge.f32.partialorder %v4556_v15, 0.0  ;;  %v4627_v56 = vmul.f32 %v17753_v48, %v4556_v15  ;;  %v15437_v36 = vadd.f32 %v14380_v3, %v17741_v19  ;;  %v4479_v57 = vpop.f32.mrb[31].mxu1  ;;  %14425 = vmatprep.mubr.msk.f32.mxu0 %vm497_vm6, %v18035_v33  ;;  %v18147_v23 = vld [vmem:[#allocation3 + $0x80] sm:$0xff]  ;;  %v18203_v41 = vld [vmem:[#allocation3 + $0x128] sm:$0xff] }
 0x309   : > { %vm4588_vm9 = vcmp.ge.f32.partialorder %v4555_v60, 0.0  ;;  %v4626_v12 = vmul.f32 %v17753_v48, %v4555_v60  ;;  %v15438_v14 = vadd.f32 %v4479_v57, %v17743_v16  ;;  %14426 = vmatmul.mubr.msk.f32.gmra.mrb[88].mxu0 %vm497_vm6, %v18043_v53  ;;  %v18199_v42 = vld [vmem:[#allocation3 + $0x120] sm:$0xff] }
 0x30a   : > { %v18049_v44 = vsel %vm4589_vm8, %v4556_v15, %v4627_v56  ;;  %v4558_v43 = vadd.f32 %v15437_v36, %v17748_v2  ;;  %v18064_v15 = vld [vmem:[#allocation3 + $0x141] sm:$0xff] }
 0x30b   : > { %20253 = vst [vmem:[#allocation63_spill] sm:$0xff] %v18049_v44  ;;  %4692 = vst.msk [vmem:[#allocation3 + $0x171] sm:$0xff] %vm497_vm6, %v18049_v44  ;;  %v18054_v19 = vsel %vm4588_vm9, %v4555_v60, %v4626_v12  ;;  %v4557_v3 = vadd.f32 %v15438_v14, %v17748_v2  ;;  %v18057_v49 = vld [vmem:[#allocation3 + $0x139] sm:$0xff] }
 0x30c   : > { %20254 = vst [vmem:[#allocation66_spill] sm:$0xff] %v18054_v19  ;;  %4691 = vst.msk [vmem:[#allocation3 + $0x169] sm:$0xff] %vm497_vm6, %v18054_v19  ;;  %vm4591_vm10 = vcmp.ge.f32.partialorder %v4558_v43, 0.0  ;;  %v4629_v16 = vmul.f32 %v17753_v48, %v4558_v43  ;;  %14428 = vmatprep.mubr.msk.f32.mxu0 %vm497_vm6, %v18057_v49  ;;  %v4695_v12 = vld [vmem:[#allocation3] sm:$0xff]  ;;  %v18107_v19 = vld [vmem:[#allocation3 + $0x18] sm:$0xff] }
 0x30d   : > { %20255 = vst [vmem:[#allocation67_spill] sm:$0xff] %v18064_v15  ;;  %vm4590_vm11 = vcmp.ge.f32.partialorder %v4557_v3, 0.0  ;;  %v4628_v56 = vmul.f32 %v17753_v48, %v4557_v3  ;;  %14429 = vmatmul.mubr.msk.f32.gmra.mrb[90].mxu0 %vm497_vm6, %v18064_v15  ;;  %v18143_v44 = vld [vmem:[#allocation3 + $0x78] sm:$0xff]  ;;  %v18211_v40 = vld [vmem:[#allocation3 + $0x140] sm:$0xff] }
 0x30e   : > { %v18069_v2 = vsel %vm4591_vm10, %v4558_v43, %v4629_v16  ;;  %v18081_v57 = vld [vmem:[#allocation3 + $0x159] sm:$0xff]  ;;  %v4696_v16 = vld [vmem:[#allocation3 + $0x8] sm:$0xff] }
 0x30f   : > { %20256 = vst [vmem:[#allocation68_spill] sm:$0xff] %v18069_v2  ;;  %4694 = vst.msk [vmem:[#allocation3 + $0x189] sm:$0xff] %vm497_vm6, %v18069_v2  ;;  %v18073_v60 = vsel %vm4590_vm11, %v4557_v3, %v4628_v56  ;;  %v18075_v36 = vld [vmem:[#allocation3 + $0x151] sm:$0xff]  ;;  %v5443_v43 = vld [vmem:[%s19900_s7 + $0x50] sm:$0xff] }
 0x310   : > { %20257 = vst [vmem:[#allocation69_spill] sm:$0xff] %v18073_v60  ;;  %20258 = vst [vmem:[#allocation70_spill] sm:$0xff] %v18075_v36  ;;  %14431 = vmatprep.mubr.msk.f32.mxu0 %vm497_vm6, %v18075_v36  ;;  %v5444_v3 = vld [vmem:[%s19900_s7 + $0x58] sm:$0xff]  ;;  %v5831_v2 = vld [vmem:[%s19900_s7 + $0x68] sm:$0xff] }
 0x311   : > { %4693 = vst.msk [vmem:[#allocation3 + $0x181] sm:$0xff] %vm497_vm6, %v18073_v60  ;;  %20259 = vst [vmem:[#allocation71_spill] sm:$0xff] %v18081_v57  ;;  %14432 = vmatmul.mubr.msk.f32.gmra.mrb[92].mxu0 %vm497_vm6, %v18081_v57  ;;  %v15355_v56 = vpack.c.bf16 %v5444_v3, %v5443_v43  ;;  %v5830_v60 = vld [vmem:[%s19900_s7 + $0x60] sm:$0xff]  ;;  %v18114_v43 = vld [vmem:[#allocation3 + $0x20] sm:$0xff] }
 0x312   : > { %v18089_v14 = vld [vmem:[#allocation3 + $0x171] sm:$0xff]  ;;  %v18245_v15 = vld [vmem:[#allocation3 + $0x1a] sm:$0xff] }
 0x313   : > { %v18085_v48 = vld [vmem:[#allocation3 + $0x169] sm:$0xff]  ;;  %20261 = vst [vmem:[#allocation73_spill] sm:$0xff] %v18089_v14  ;;  %v18207_v20 = vld [vmem:[#allocation3 + $0x138] sm:$0xff] }
 0x314   : > { %20260 = vst [vmem:[#allocation72_spill] sm:$0xff] %v18085_v48  ;;  %14434 = vmatprep.mubr.msk.f32.mxu0 %vm497_vm6, %v18085_v48  ;;  %v18118_v3 = vld [vmem:[#allocation3 + $0x30] sm:$0xff]  ;;  %v18219_v35 = vld [vmem:[#allocation3 + $0x158] sm:$0xff]  ;;  %v18223_v29 = vld [vmem:[#allocation3 + $0x168] sm:$0xff]  ;;  %v15363_v48 = vpack.c.bf16 %v5833_v37, %v5832_v50 }
 0x315   : > { %14435 = vmatmul.mubr.msk.f32.gmra.mrb[94].mxu0 %vm497_vm6, %v18089_v14  ;;  %v18215_v17 = vld [vmem:[#allocation3 + $0x150] sm:$0xff]  ;;  %v6220_v36 = vld [vmem:[%s19900_s7 + $0x88] sm:$0xff]  ;;  %v18252_v37 = vld [vmem:[#allocation3 + $0x22] sm:$0xff] }
 0x316   : > { %14445 = vmatprep.mubr.msk.f32.mxu0 %vm497_vm6, %v4695_v12  ;;  %v18112_v12 = vpack.c.bf16 %v5831_v2, %v5830_v60  ;;  %v18127_v2 = vld [vmem:[#allocation3 + $0x48] sm:$0xff]  ;;  %v18131_v60 = vld [vmem:[#allocation3 + $0x50] sm:$0xff] }
 0x317   : > { %v18227_v45 = vld [vmem:[#allocation3 + $0x170] sm:$0xff] }
 0x318   : > { %v5410_v14 = vld [vmem:[#allocation3 + $0xa] sm:$0xff]  ;;  %v18256_v50 = vld [vmem:[#allocation3 + $0x32] sm:$0xff] }
 0x319   : > { %14446 = vmatmul.mubr.msk.f32.vlgmr.msra.gmra.mrb[64].mxu0 %vm497_vm6, %v4696_v16  ;;  %v18135_v16 = vld [vmem:[#allocation3 + $0x60] sm:$0xff]  ;;  %v6219_v57 = vld [vmem:[%s19900_s7 + $0x80] sm:$0xff]  ;;  %20262 = vst [vmem:[#allocation74_spill] sm:$0xff] %v18256_v50 }
 0x31a   : > { %15354 = vmatpush3.bf16.msra.mxu0 %v17696_v8  ;;  %14448 = vmatprep.mubr.msk.f32.mxu0 %vm497_vm6, %v18107_v19  ;;  %v18123_v8 = vld [vmem:[#allocation3 + $0x38] sm:$0xff] }
 0x31b   : > { %15356 = vmatprep.subr.bf16.mxu0 %v15355_v56 }
 0x31d   : > { %14449 = vmatmul.mubr.msk.f32.gmra.mrb[66].mxu0 %vm497_vm6, %v18114_v43 }
 0x31e   : > { %14451 = vmatprep.mubr.msk.f32.mxu0 %vm497_vm6, %v18118_v3  ;;  %15358 = vmatpush3.bf16.msra.mxu0 %v15355_v56  ;;  %v18139_v56 = vld [vmem:[#allocation3 + $0x68] sm:$0xff] }
 0x31f   : > { %15360 = vmatprep.subr.bf16.mxu0 %v18112_v12 }
 0x321   : > { %14452 = vmatmul.mubr.msk.f32.gmra.mrb[68].mxu0 %vm497_vm6, %v18123_v8 }
 0x322   : > { %14454 = vmatprep.mubr.msk.f32.mxu0 %vm497_vm6, %v18127_v2 }
 0x325   : > { %14455 = vmatmul.mubr.msk.f32.gmra.mrb[70].mxu0 %vm497_vm6, %v18131_v60 }
 0x326   : > { %14457 = vmatprep.mubr.msk.f32.mxu0 %vm497_vm6, %v18135_v16 }
 0x329   : > { %14458 = vmatmul.mubr.msk.f32.gmra.mrb[72].mxu0 %vm497_vm6, %v18139_v56 }
 0x32a   : > { %14460 = vmatprep.mubr.msk.f32.mxu0 %vm497_vm6, %v18143_v44 }
 0x32d   : > { %14461 = vmatmul.mubr.msk.f32.gmra.mrb[74].mxu0 %vm497_vm6, %v18147_v23 }
 0x32e   : > { %14463 = vmatprep.mubr.msk.f32.mxu0 %vm497_vm6, %v18151_v59 }
 0x331   : > { %14464 = vmatmul.mubr.msk.f32.gmra.mrb[76].mxu0 %vm497_vm6, %v18155_v46 }
 0x332   : > { %14466 = vmatprep.mubr.msk.f32.mxu0 %vm497_vm6, %v18159_v61 }
 0x335   : > { %14467 = vmatmul.mubr.msk.f32.gmra.mrb[78].mxu0 %vm497_vm6, %v18163_v10 }
 0x336   : > { %14469 = vmatprep.mubr.msk.f32.mxu0 %vm497_vm6, %v18167_v54 }
 0x339   : > { %14470 = vmatmul.mubr.msk.f32.gmra.mrb[80].mxu0 %vm497_vm6, %v18171_v38 }
 0x33a   : > { %14472 = vmatprep.mubr.msk.f32.mxu0 %vm497_vm6, %v18175_v30 }
 0x33d   : > { %14473 = vmatmul.mubr.msk.f32.gmra.mrb[82].mxu0 %vm497_vm6, %v18179_v21 }
 0x33e   : > { %14475 = vmatprep.mubr.msk.f32.mxu0 %vm497_vm6, %v18183_v1 }
 0x341   : > { %14476 = vmatmul.mubr.msk.f32.gmra.mrb[84].mxu0 %vm497_vm6, %v18187_v39 }
 0x342   : > { %14478 = vmatprep.mubr.msk.f32.mxu0 %vm497_vm6, %v18191_v52 }
 0x345   : > { %14479 = vmatmul.mubr.msk.f32.gmra.mrb[86].mxu0 %vm497_vm6, %v18195_v22 }
 0x346   : > { %14481 = vmatprep.mubr.msk.f32.mxu0 %vm497_vm6, %v18199_v42 }
 0x349   : > { %14482 = vmatmul.mubr.msk.f32.gmra.mrb[88].mxu0 %vm497_vm6, %v18203_v41 }
 0x34a   : > { %14484 = vmatprep.mubr.msk.f32.mxu0 %vm497_vm6, %v18207_v20 }
 0x34d   : > { %14485 = vmatmul.mubr.msk.f32.gmra.mrb[90].mxu0 %vm497_vm6, %v18211_v40 }
 0x34e   : > { %14487 = vmatprep.mubr.msk.f32.mxu0 %vm497_vm6, %v18215_v17 }
 0x351   : > { %14488 = vmatmul.mubr.msk.f32.gmra.mrb[92].mxu0 %vm497_vm6, %v18219_v35 }
 0x352   : > { %14490 = vmatprep.mubr.msk.f32.mxu0 %vm497_vm6, %v18223_v29 }
 0x355   : > { %14491 = vmatmul.mubr.msk.f32.gmra.mrb[94].mxu0 %vm497_vm6, %v18227_v45 }
 0x356   : > { %14501 = vmatprep.mubr.msk.f32.mxu0 %vm497_vm6, %v5409_v5  ;;  %v18250_v5 = vpack.c.bf16 %v6220_v36, %v6219_v57  ;;  %v18265_v36 = vld [vmem:[#allocation3 + $0x4a] sm:$0xff]  ;;  %v18269_v57 = vld [vmem:[#allocation3 + $0x52] sm:$0xff] }
 0x357   : > { %20264 = vst [vmem:[#allocation76_spill] sm:$0xff] %v18265_v36  ;;  %20265 = vst [vmem:[#allocation77_spill] sm:$0xff] %v18269_v57 }
 0x359   : > { %14502 = vmatmul.mubr.msk.f32.vlgmr.msra.gmra.mrb[64].mxu0 %vm497_vm6, %v5410_v14  ;;  %v18261_v14 = vld [vmem:[#allocation3 + $0x3a] sm:$0xff] }
 0x35a   : > { %15362 = vmatpush3.bf16.msra.mxu0 %v18112_v12  ;;  %14504 = vmatprep.mubr.msk.f32.mxu0 %vm497_vm6, %v18245_v15  ;;  %20263 = vst [vmem:[#allocation75_spill] sm:$0xff] %v18261_v14  ;;  %v18273_v12 = vld [vmem:[#allocation3 + $0x62] sm:$0xff] }
 0x35b   : > { %15364 = vmatprep.subr.bf16.mxu0 %v15363_v48  ;;  %20266 = vst [vmem:[#allocation78_spill] sm:$0xff] %v18273_v12 }
 0x35d   : > { %14505 = vmatmul.mubr.msk.f32.gmra.mrb[66].mxu0 %vm497_vm6, %v18252_v37 }
 0x35e   : > { %14507 = vmatprep.mubr.msk.f32.mxu0 %vm497_vm6, %v18256_v50  ;;  %15366 = vmatpush3.bf16.msra.mxu0 %v15363_v48  ;;  %v18277_v48 = vld [vmem:[#allocation3 + $0x6a] sm:$0xff]  ;;  %v6609_v50 = vld [vmem:[%s19900_s7 + $0xa8] sm:$0xff] }
 0x35f   : > { %15368 = vmatprep.subr.bf16.mxu0 %v18250_v5  ;;  %20267 = vst [vmem:[#allocation79_spill] sm:$0xff] %v18277_v48 }
 0x361   : > { %14508 = vmatmul.mubr.msk.f32.gmra.mrb[68].mxu0 %vm497_vm6, %v18261_v14  ;;  %v18281_v14 = vld [vmem:[#allocation3 + $0x7a] sm:$0xff] }
 0x362   : > { %14510 = vmatprep.mubr.msk.f32.mxu0 %vm497_vm6, %v18265_v36  ;;  %20268 = vst [vmem:[#allocation80_spill] sm:$0xff] %v18281_v14  ;;  %v18285_v36 = vld [vmem:[#allocation3 + $0x82] sm:$0xff] }
 0x363   : > { %20269 = vst [vmem:[#allocation81_spill] sm:$0xff] %v18285_v36 }
 0x365   : > { %14511 = vmatmul.mubr.msk.f32.gmra.mrb[70].mxu0 %vm497_vm6, %v18269_v57  ;;  %v18289_v57 = vld [vmem:[#allocation3 + $0x92] sm:$0xff] }
 0x366   : > { %14513 = vmatprep.mubr.msk.f32.mxu0 %vm497_vm6, %v18273_v12  ;;  %20270 = vst [vmem:[#allocation82_spill] sm:$0xff] %v18289_v57  ;;  %v18293_v12 = vld [vmem:[#allocation3 + $0x9a] sm:$0xff] }
 0x367   : > { %20271 = vst [vmem:[#allocation83_spill] sm:$0xff] %v18293_v12 }
 0x369   : > { %14514 = vmatmul.mubr.msk.f32.gmra.mrb[72].mxu0 %vm497_vm6, %v18277_v48  ;;  %v18297_v48 = vld [vmem:[#allocation3 + $0xaa] sm:$0xff] }
 0x36a   : > { %14516 = vmatprep.mubr.msk.f32.mxu0 %vm497_vm6, %v18281_v14  ;;  %20272 = vst [vmem:[#allocation84_spill] sm:$0xff] %v18297_v48  ;;  %v18301_v14 = vld [vmem:[#allocation3 + $0xb2] sm:$0xff] }
 0x36b   : > { %20273 = vst [vmem:[#allocation85_spill] sm:$0xff] %v18301_v14 }
 0x36d   : > { %14517 = vmatmul.mubr.msk.f32.gmra.mrb[74].mxu0 %vm497_vm6, %v18285_v36  ;;  %v18305_v36 = vld [vmem:[#allocation3 + $0xc2] sm:$0xff] }
 0x36e   : > { %14519 = vmatprep.mubr.msk.f32.mxu0 %vm497_vm6, %v18289_v57  ;;  %20274 = vst [vmem:[#allocation86_spill] sm:$0xff] %v18305_v36  ;;  %v18309_v57 = vld [vmem:[#allocation3 + $0xca] sm:$0xff] }
 0x36f   : > { %20275 = vst [vmem:[#allocation87_spill] sm:$0xff] %v18309_v57 }
 0x371   : > { %14520 = vmatmul.mubr.msk.f32.gmra.mrb[76].mxu0 %vm497_vm6, %v18293_v12  ;;  %v18313_v12 = vld [vmem:[#allocation3 + $0xda] sm:$0xff] }
 0x372   : > { %14522 = vmatprep.mubr.msk.f32.mxu0 %vm497_vm6, %v18297_v48  ;;  %20276 = vst [vmem:[#allocation88_spill] sm:$0xff] %v18313_v12  ;;  %v18317_v48 = vld [vmem:[#allocation3 + $0xe2] sm:$0xff] }
 0x373   : > { %20277 = vst [vmem:[#allocation89_spill] sm:$0xff] %v18317_v48 }
 0x375   : > { %14523 = vmatmul.mubr.msk.f32.gmra.mrb[78].mxu0 %vm497_vm6, %v18301_v14  ;;  %v18321_v14 = vld [vmem:[#allocation3 + $0xf2] sm:$0xff] }
 0x376   : > { %14525 = vmatprep.mubr.msk.f32.mxu0 %vm497_vm6, %v18305_v36  ;;  %20278 = vst [vmem:[#allocation90_spill] sm:$0xff] %v18321_v14  ;;  %v18325_v36 = vld [vmem:[#allocation3 + $0xfa] sm:$0xff] }
 0x377   : > { %20279 = vst [vmem:[#allocation91_spill] sm:$0xff] %v18325_v36 }
 0x379   : > { %14526 = vmatmul.mubr.msk.f32.gmra.mrb[80].mxu0 %vm497_vm6, %v18309_v57  ;;  %v18329_v57 = vld [vmem:[#allocation3 + $0x10a] sm:$0xff] }
 0x37a   : > { %14528 = vmatprep.mubr.msk.f32.mxu0 %vm497_vm6, %v18313_v12  ;;  %20280 = vst [vmem:[#allocation92_spill] sm:$0xff] %v18329_v57  ;;  %v18333_v12 = vld [vmem:[#allocation3 + $0x112] sm:$0xff] }
 0x37b   : > { %20281 = vst [vmem:[#allocation93_spill] sm:$0xff] %v18333_v12 }
 0x37d   : > { %14529 = vmatmul.mubr.msk.f32.gmra.mrb[82].mxu0 %vm497_vm6, %v18317_v48  ;;  %v18337_v48 = vld [vmem:[#allocation3 + $0x122] sm:$0xff] }
 0x37e   : > { %14531 = vmatprep.mubr.msk.f32.mxu0 %vm497_vm6, %v18321_v14  ;;  %20282 = vst [vmem:[#allocation94_spill] sm:$0xff] %v18337_v48  ;;  %v18341_v14 = vld [vmem:[#allocation3 + $0x12a] sm:$0xff] }
 0x37f   : > { %20283 = vst [vmem:[#allocation95_spill] sm:$0xff] %v18341_v14 }
 0x381   : > { %14532 = vmatmul.mubr.msk.f32.gmra.mrb[84].mxu0 %vm497_vm6, %v18325_v36  ;;  %v18345_v36 = vld [vmem:[#allocation3 + $0x13a] sm:$0xff] }
 0x382   : > { %14534 = vmatprep.mubr.msk.f32.mxu0 %vm497_vm6, %v18329_v57  ;;  %20284 = vst [vmem:[#allocation96_spill] sm:$0xff] %v18345_v36  ;;  %v18349_v57 = vld [vmem:[#allocation3 + $0x142] sm:$0xff] }
 0x383   : > { %20285 = vst [vmem:[#allocation97_spill] sm:$0xff] %v18349_v57 }
 0x385   : > { %14535 = vmatmul.mubr.msk.f32.gmra.mrb[86].mxu0 %vm497_vm6, %v18333_v12  ;;  %v18353_v12 = vld [vmem:[#allocation3 + $0x152] sm:$0xff] }
 0x386   : > { %14537 = vmatprep.mubr.msk.f32.mxu0 %vm497_vm6, %v18337_v48  ;;  %20286 = vst [vmem:[#allocation98_spill] sm:$0xff] %v18353_v12  ;;  %v18357_v48 = vld [vmem:[#allocation3 + $0x15a] sm:$0xff] }
 0x387   : > { %20287 = vst [vmem:[#allocation99_spill] sm:$0xff] %v18357_v48 }
 0x389   : > { %14538 = vmatmul.mubr.msk.f32.gmra.mrb[88].mxu0 %vm497_vm6, %v18341_v14  ;;  %v18361_v14 = vld [vmem:[#allocation3 + $0x16a] sm:$0xff] }
 0x38a   : > { %14540 = vmatprep.mubr.msk.f32.mxu0 %vm497_vm6, %v18345_v36  ;;  %20288 = vst [vmem:[#allocation100_spill] sm:$0xff] %v18361_v14  ;;  %v18365_v36 = vld [vmem:[#allocation3 + $0x172] sm:$0xff] }
 0x38b   : > { %20289 = vst [vmem:[#allocation101_spill] sm:$0xff] %v18365_v36 }
 0x38d   : > { %14541 = vmatmul.mubr.msk.f32.gmra.mrb[90].mxu0 %vm497_vm6, %v18349_v57  ;;  %v6221_v57 = vld [vmem:[%s19900_s7 + $0x90] sm:$0xff] }
 0x38e   : > { %14543 = vmatprep.mubr.msk.f32.mxu0 %vm497_vm6, %v18353_v12  ;;  %v6222_v12 = vld [vmem:[%s19900_s7 + $0x98] sm:$0xff] }
 0x391   : > { %14544 = vmatmul.mubr.msk.f32.gmra.mrb[92].mxu0 %vm497_vm6, %v18357_v48  ;;  %v15371_v48 = vpack.c.bf16 %v6222_v12, %v6221_v57  ;;  %v6998_v57 = vld [vmem:[%s19900_s7 + $0xc0] sm:$0xff]  ;;  %v6999_v12 = vld [vmem:[%s19900_s7 + $0xc8] sm:$0xff] }
 0x392   : > { %14546 = vmatprep.mubr.msk.f32.mxu0 %vm497_vm6, %v18361_v14  ;;  %v6608_v14 = vld [vmem:[%s19900_s7 + $0xa0] sm:$0xff] }
 0x395   : > { %14547 = vmatmul.mubr.msk.f32.gmra.mrb[94].mxu0 %vm497_vm6, %v18365_v36  ;;  %v15375_v36 = vpack.c.bf16 %v6609_v50, %v6608_v14  ;;  %v6611_v50 = vld [vmem:[%s19900_s7 + $0xb8] sm:$0xff] }
 0x396   : > { %14557 = vmatprep.mubr.msk.f32.mxu0 %vm497_vm6, %v18107_v19  ;;  %v18442_v19 = vld [vmem:[#allocation3 + $0x180] sm:$0xff] }
 0x399   : > { %14558 = vmatmul.mubr.msk.f32.vlgmr.msra.gmra.mrb[64].mxu0 %vm497_vm6, %v18114_v43  ;;  %v18446_v43 = vld [vmem:[#allocation3 + $0x188] sm:$0xff] }
 0x39a   : > { %15370 = vmatpush3.bf16.msra.mxu0 %v18250_v5  ;;  %14560 = vmatprep.mubr.msk.f32.mxu0 %vm497_vm6, %v18118_v3  ;;  %v6610_v5 = vld [vmem:[%s19900_s7 + $0xb0] sm:$0xff] }
 0x39b   : > { %15372 = vmatprep.subr.bf16.mxu0 %v15371_v48  ;;  %v15379_v14 = vpack.c.bf16 %v6611_v50, %v6610_v5  ;;  %v20307_v5 = vld [vmem:[#allocation86_spill] sm:$0xff]  ;;  %v20308_v50 = vld [vmem:[#allocation87_spill] sm:$0xff] }
 0x39d   : > { %14561 = vmatmul.mubr.msk.f32.gmra.mrb[66].mxu0 %vm497_vm6, %v18123_v8 }
 0x39e   : > { %14563 = vmatprep.mubr.msk.f32.mxu0 %vm497_vm6, %v18127_v2  ;;  %15374 = vmatpush3.bf16.msra.mxu0 %v15371_v48  ;;  %v15383_v48 = vpack.c.bf16 %v6999_v12, %v6998_v57  ;;  %v20310_v57 = vld [vmem:[#allocation89_spill] sm:$0xff]  ;;  %v20311_v12 = vld [vmem:[#allocation90_spill] sm:$0xff] }
 0x39f   : > { %15376 = vmatprep.subr.bf16.mxu0 %v15375_v36 }
 0x3a1   : > { %14564 = vmatmul.mubr.msk.f32.gmra.mrb[68].mxu0 %vm497_vm6, %v18131_v60 }
 0x3a2   : > { %14566 = vmatprep.mubr.msk.f32.mxu0 %vm497_vm6, %v18135_v16 }
 0x3a5   : > { %14567 = vmatmul.mubr.msk.f32.gmra.mrb[70].mxu0 %vm497_vm6, %v18139_v56 }
 0x3a6   : > { %14569 = vmatprep.mubr.msk.f32.mxu0 %vm497_vm6, %v18143_v44 }
 0x3a9   : > { %14570 = vmatmul.mubr.msk.f32.gmra.mrb[72].mxu0 %vm497_vm6, %v18147_v23 }
 0x3aa   : > { %14572 = vmatprep.mubr.msk.f32.mxu0 %vm497_vm6, %v18151_v59 }
 0x3ad   : > { %14573 = vmatmul.mubr.msk.f32.gmra.mrb[74].mxu0 %vm497_vm6, %v18155_v46 }
 0x3ae   : > { %14575 = vmatprep.mubr.msk.f32.mxu0 %vm497_vm6, %v18159_v61 }
 0x3b1   : > { %14576 = vmatmul.mubr.msk.f32.gmra.mrb[76].mxu0 %vm497_vm6, %v18163_v10 }
 0x3b2   : > { %14578 = vmatprep.mubr.msk.f32.mxu0 %vm497_vm6, %v18167_v54 }
 0x3b5   : > { %14579 = vmatmul.mubr.msk.f32.gmra.mrb[78].mxu0 %vm497_vm6, %v18171_v38 }
 0x3b6   : > { %14581 = vmatprep.mubr.msk.f32.mxu0 %vm497_vm6, %v18175_v30 }
 0x3b9   : > { %14582 = vmatmul.mubr.msk.f32.gmra.mrb[80].mxu0 %vm497_vm6, %v18179_v21 }
 0x3ba   : > { %14584 = vmatprep.mubr.msk.f32.mxu0 %vm497_vm6, %v18183_v1 }
 0x3bd   : > { %14585 = vmatmul.mubr.msk.f32.gmra.mrb[82].mxu0 %vm497_vm6, %v18187_v39 }
 0x3be   : > { %14587 = vmatprep.mubr.msk.f32.mxu0 %vm497_vm6, %v18191_v52 }
 0x3c1   : > { %14588 = vmatmul.mubr.msk.f32.gmra.mrb[84].mxu0 %vm497_vm6, %v18195_v22 }
 0x3c2   : > { %14590 = vmatprep.mubr.msk.f32.mxu0 %vm497_vm6, %v18199_v42 }
 0x3c5   : > { %14591 = vmatmul.mubr.msk.f32.gmra.mrb[86].mxu0 %vm497_vm6, %v18203_v41 }
 0x3c6   : > { %14593 = vmatprep.mubr.msk.f32.mxu0 %vm497_vm6, %v18207_v20 }
 0x3c9   : > { %14594 = vmatmul.mubr.msk.f32.gmra.mrb[88].mxu0 %vm497_vm6, %v18211_v40 }
 0x3ca   : > { %14596 = vmatprep.mubr.msk.f32.mxu0 %vm497_vm6, %v18215_v17 }
 0x3cd   : > { %14597 = vmatmul.mubr.msk.f32.gmra.mrb[90].mxu0 %vm497_vm6, %v18219_v35 }
 0x3ce   : > { %14599 = vmatprep.mubr.msk.f32.mxu0 %vm497_vm6, %v18223_v29 }
 0x3d1   : > { %14600 = vmatmul.mubr.msk.f32.gmra.mrb[92].mxu0 %vm497_vm6, %v18227_v45 }
 0x3d2   : > { %14602 = vmatprep.mubr.msk.f32.mxu0 %vm497_vm6, %v18442_v19 }
 0x3d5   : > { %14603 = vmatmul.mubr.msk.f32.gmra.mrb[94].mxu0 %vm497_vm6, %v18446_v43 }
 0x3d6   : > { %14613 = vmatprep.mubr.msk.f32.mxu0 %vm497_vm6, %v17793_v9  ;;  %v20290_v9 = vld [vmem:[#allocation67_spill] sm:$0xff] }
 0x3d9   : > { %14614 = vmatmul.mubr.msk.f32.vlgmr.msra.gmra.mrb[64].mxu0 %vm497_vm6, %v17801_v18  ;;  %v20291_v18 = vld [vmem:[#allocation70_spill] sm:$0xff] }
 0x3da   : > { %15378 = vmatpush3.bf16.msra.mxu0 %v15375_v36  ;;  %14616 = vmatprep.mubr.msk.f32.mxu0 %vm497_vm6, %v17815_v27  ;;  %v20292_v27 = vld [vmem:[#allocation71_spill] sm:$0xff]  ;;  %v20306_v36 = vld [vmem:[#allocation85_spill] sm:$0xff] }
 0x3db   : > { %15380 = vmatprep.subr.bf16.mxu0 %v15379_v14 }
 0x3dd   : > { %14617 = vmatmul.mubr.msk.f32.gmra.mrb[66].mxu0 %vm497_vm6, %v17823_v55  ;;  %v20293_v55 = vld [vmem:[#allocation72_spill] sm:$0xff] }
 0x3de   : > { %14619 = vmatprep.mubr.msk.f32.mxu0 %vm497_vm6, %v17837_v13  ;;  %15382 = vmatpush3.bf16.msra.mxu0 %v15379_v14  ;;  %v20294_v13 = vld [vmem:[#allocation73_spill] sm:$0xff]  ;;  %v20309_v14 = vld [vmem:[#allocation88_spill] sm:$0xff] }
 0x3df   : > { %15384 = vmatprep.subr.bf16.mxu0 %v15383_v48 }
 0x3e1   : > { %14620 = vmatmul.mubr.msk.f32.gmra.mrb[68].mxu0 %vm497_vm6, %v17845_v47  ;;  %v18522_v47 = vld [vmem:[#allocation3 + $0x181] sm:$0xff] }
 0x3e2   : > { %14622 = vmatprep.mubr.msk.f32.mxu0 %vm497_vm6, %v17859_v63  ;;  %v18526_v63 = vld [vmem:[#allocation3 + $0x189] sm:$0xff] }
 0x3e5   : > { %14623 = vmatmul.mubr.msk.f32.gmra.mrb[70].mxu0 %vm497_vm6, %v17867_v4  ;;  %v7000_v4 = vld [vmem:[%s19900_s7 + $0xd0] sm:$0xff] }
 0x3e6   : > { %14625 = vmatprep.mubr.msk.f32.mxu0 %vm497_vm6, %v17881_v0  ;;  %v7001_v0 = vld [vmem:[%s19900_s7 + $0xd8] sm:$0xff] }
 0x3e9   : > { %14626 = vmatmul.mubr.msk.f32.gmra.mrb[72].mxu0 %vm497_vm6, %v17889_v28  ;;  %v15387_v28 = vpack.c.bf16 %v7001_v0, %v7000_v4  ;;  %v20313_v4 = vld [vmem:[#allocation92_spill] sm:$0xff]  ;;  %v20314_v0 = vld [vmem:[#allocation93_spill] sm:$0xff] }
 0x3ea   : > { %14628 = vmatprep.mubr.msk.f32.mxu0 %vm497_vm6, %v17903_v51  ;;  %v7387_v51 = vld [vmem:[%s19900_s7 + $0xe0] sm:$0xff] }
 0x3ed   : > { %14629 = vmatmul.mubr.msk.f32.gmra.mrb[74].mxu0 %vm497_vm6, %v17911_v32  ;;  %v7388_v32 = vld [vmem:[%s19900_s7 + $0xe8] sm:$0xff] }
 0x3ee   : > { %14631 = vmatprep.mubr.msk.f32.mxu0 %vm497_vm6, %v17925_v25  ;;  %v20295_v25 = vld [vmem:[#allocation74_spill] sm:$0xff] }
 0x3f1   : > { %14632 = vmatmul.mubr.msk.f32.gmra.mrb[76].mxu0 %vm497_vm6, %v17933_v7  ;;  %v15391_v7 = vpack.c.bf16 %v7388_v32, %v7387_v51  ;;  %v20316_v51 = vld [vmem:[#allocation95_spill] sm:$0xff]  ;;  %v20317_v32 = vld [vmem:[#allocation96_spill] sm:$0xff] }
 0x3f2   : > { %14634 = vmatprep.mubr.msk.f32.mxu0 %vm497_vm6, %v17947_v62  ;;  %v20296_v62 = vld [vmem:[#allocation75_spill] sm:$0xff] }
 0x3f5   : > { %14635 = vmatmul.mubr.msk.f32.gmra.mrb[78].mxu0 %vm497_vm6, %v17955_v31  ;;  %v20297_v31 = vld [vmem:[#allocation76_spill] sm:$0xff] }
 0x3f6   : > { %14637 = vmatprep.mubr.msk.f32.mxu0 %vm497_vm6, %v17969_v58  ;;  %v20298_v58 = vld [vmem:[#allocation77_spill] sm:$0xff] }
 0x3f9   : > { %14638 = vmatmul.mubr.msk.f32.gmra.mrb[80].mxu0 %vm497_vm6, %v17977_v26  ;;  %v20299_v26 = vld [vmem:[#allocation78_spill] sm:$0xff] }
 0x3fa   : > { %14640 = vmatprep.mubr.msk.f32.mxu0 %vm497_vm6, %v17991_v11  ;;  %v20301_v11 = vld [vmem:[#allocation80_spill] sm:$0xff] }
 0x3fd   : > { %14641 = vmatmul.mubr.msk.f32.gmra.mrb[82].mxu0 %vm497_vm6, %v17999_v34  ;;  %v20302_v34 = vld [vmem:[#allocation81_spill] sm:$0xff] }
 0x3fe   : > { %14643 = vmatprep.mubr.msk.f32.mxu0 %vm497_vm6, %v18013_v24  ;;  %v20300_v24 = vld [vmem:[#allocation79_spill] sm:$0xff] }
 0x401   : > { %14644 = vmatmul.mubr.msk.f32.gmra.mrb[84].mxu0 %vm497_vm6, %v18021_v6  ;;  %v20303_v6 = vld [vmem:[#allocation82_spill] sm:$0xff] }
 0x402   : > { %14646 = vmatprep.mubr.msk.f32.mxu0 %vm497_vm6, %v18035_v33 }
 0x405   : > { %14647 = vmatmul.mubr.msk.f32.gmra.mrb[86].mxu0 %vm497_vm6, %v18043_v53 }
 0x406   : > { %14649 = vmatprep.mubr.msk.f32.mxu0 %vm497_vm6, %v18057_v49 }
 0x409   : > { %14650 = vmatmul.mubr.msk.f32.gmra.mrb[88].mxu0 %vm497_vm6, %v20290_v9 }
 0x40a   : > { %14652 = vmatprep.mubr.msk.f32.mxu0 %vm497_vm6, %v20291_v18 }
 0x40d   : > { %14653 = vmatmul.mubr.msk.f32.gmra.mrb[90].mxu0 %vm497_vm6, %v20292_v27 }
 0x40e   : > { %14655 = vmatprep.mubr.msk.f32.mxu0 %vm497_vm6, %v20293_v55 }
 0x411   : > { %14656 = vmatmul.mubr.msk.f32.gmra.mrb[92].mxu0 %vm497_vm6, %v20294_v13 }
 0x412   : > { %14658 = vmatprep.mubr.msk.f32.mxu0 %vm497_vm6, %v18522_v47 }
 0x415   : > { %14659 = vmatmul.mubr.msk.f32.gmra.mrb[94].mxu0 %vm497_vm6, %v18526_v63 }
 0x416   : > { %14669 = vmatprep.mubr.msk.f32.mxu0 %vm497_vm6, %v18245_v15  ;;  %v20304_v15 = vld [vmem:[#allocation83_spill] sm:$0xff] }
 0x419   : > { %14670 = vmatmul.mubr.msk.f32.vlgmr.msra.gmra.mrb[64].mxu0 %vm497_vm6, %v18252_v37  ;;  %v20305_v37 = vld [vmem:[#allocation84_spill] sm:$0xff] }
 0x41a   : > { %15386 = vmatpush3.bf16.msra.mxu0 %v15383_v48  ;;  %14672 = vmatprep.mubr.msk.f32.mxu0 %vm497_vm6, %v20295_v25  ;;  %v20312_v48 = vld [vmem:[#allocation91_spill] sm:$0xff] }
 0x41b   : > { %15388 = vmatprep.subr.bf16.mxu0 %v15387_v28 }
 0x41d   : > { %14673 = vmatmul.mubr.msk.f32.gmra.mrb[66].mxu0 %vm497_vm6, %v20296_v62 }
 0x41e   : > { %14675 = vmatprep.mubr.msk.f32.mxu0 %vm497_vm6, %v20297_v31  ;;  %15390 = vmatpush3.bf16.msra.mxu0 %v15387_v28  ;;  %v20315_v28 = vld [vmem:[#allocation94_spill] sm:$0xff] }
 0x41f   : > { %15392 = vmatprep.subr.bf16.mxu0 %v15391_v7 }
 0x421   : > { %14676 = vmatmul.mubr.msk.f32.gmra.mrb[68].mxu0 %vm497_vm6, %v20298_v58 }
 0x422   : > { %14678 = vmatprep.mubr.msk.f32.mxu0 %vm497_vm6, %v20299_v26 }
 0x425   : > { %14679 = vmatmul.mubr.msk.f32.gmra.mrb[70].mxu0 %vm497_vm6, %v20300_v24 }
 0x426   : > { %14681 = vmatprep.mubr.msk.f32.mxu0 %vm497_vm6, %v20301_v11 }
 0x429   : > { %14682 = vmatmul.mubr.msk.f32.gmra.mrb[72].mxu0 %vm497_vm6, %v20302_v34 }
 0x42a   : > { %14684 = vmatprep.mubr.msk.f32.mxu0 %vm497_vm6, %v20303_v6 }
 0x42d   : > { %14685 = vmatmul.mubr.msk.f32.gmra.mrb[74].mxu0 %vm497_vm6, %v20304_v15 }
 0x42e   : > { %14687 = vmatprep.mubr.msk.f32.mxu0 %vm497_vm6, %v20305_v37 }
 0x431   : > { %14688 = vmatmul.mubr.msk.f32.gmra.mrb[76].mxu0 %vm497_vm6, %v20306_v36 }
 0x432   : > { %14690 = vmatprep.mubr.msk.f32.mxu0 %vm497_vm6, %v20307_v5 }
 0x435   : > { %14691 = vmatmul.mubr.msk.f32.gmra.mrb[78].mxu0 %vm497_vm6, %v20308_v50 }
 0x436   : > { %14693 = vmatprep.mubr.msk.f32.mxu0 %vm497_vm6, %v20309_v14 }
 0x439   : > { %14694 = vmatmul.mubr.msk.f32.gmra.mrb[80].mxu0 %vm497_vm6, %v20310_v57  ;;  %v20318_v57 = vld [vmem:[#allocation97_spill] sm:$0xff] }
 0x43a   : > { %14696 = vmatprep.mubr.msk.f32.mxu0 %vm497_vm6, %v20311_v12  ;;  %v20319_v12 = vld [vmem:[#allocation98_spill] sm:$0xff] }
 0x43d   : > { %14697 = vmatmul.mubr.msk.f32.gmra.mrb[82].mxu0 %vm497_vm6, %v20312_v48  ;;  %v20320_v48 = vld [vmem:[#allocation99_spill] sm:$0xff] }
 0x43e   : > { %14699 = vmatprep.mubr.msk.f32.mxu0 %vm497_vm6, %v20313_v4  ;;  %v20321_v4 = vld [vmem:[#allocation100_spill] sm:$0xff] }
 0x441   : > { %14700 = vmatmul.mubr.msk.f32.gmra.mrb[84].mxu0 %vm497_vm6, %v20314_v0  ;;  %v20322_v0 = vld [vmem:[#allocation101_spill] sm:$0xff] }
 0x442   : > { %14702 = vmatprep.mubr.msk.f32.mxu0 %vm497_vm6, %v20315_v28  ;;  %v18602_v28 = vld [vmem:[#allocation3 + $0x182] sm:$0xff] }
 0x443   : > { %20323 = vst [vmem:[#allocation67_spill] sm:$0xff] %v18602_v28 }
 0x445   : > { %14703 = vmatmul.mubr.msk.f32.gmra.mrb[86].mxu0 %vm497_vm6, %v20316_v51 }
 0x446   : > { %14705 = vmatprep.mubr.msk.f32.mxu0 %vm497_vm6, %v20317_v32  ;;  %v18606_v32 = vld [vmem:[#allocation3 + $0x18a] sm:$0xff] }
 0x447   : > { %20324 = vst [vmem:[#allocation70_spill] sm:$0xff] %v18606_v32 }
 0x449   : > { %14706 = vmatmul.mubr.msk.f32.gmra.mrb[88].mxu0 %vm497_vm6, %v20318_v57 }
 0x44a   : > { %14708 = vmatprep.mubr.msk.f32.mxu0 %vm497_vm6, %v20319_v12  ;;  %v7389_v12 = vld [vmem:[%s19900_s7 + $0xf0] sm:$0xff] }
 0x44d   : > { %14709 = vmatmul.mubr.msk.f32.gmra.mrb[90].mxu0 %vm497_vm6, %v20320_v48  ;;  %v7390_v48 = vld [vmem:[%s19900_s7 + $0xf8] sm:$0xff] }
 0x44e   : > { %14711 = vmatprep.mubr.msk.f32.mxu0 %vm497_vm6, %v20321_v4  ;;  %v7777_v4 = vld [vmem:[%s19900_s7 + $0x108] sm:$0xff] }
 0x451   : > { %14712 = vmatmul.mubr.msk.f32.gmra.mrb[92].mxu0 %vm497_vm6, %v20322_v0  ;;  %v15395_v0 = vpack.c.bf16 %v7390_v48, %v7389_v12 }
 0x452   : > { %14714 = vmatprep.mubr.msk.f32.mxu0 %vm497_vm6, %v18602_v28  ;;  %v7776_v28 = vld [vmem:[%s19900_s7 + $0x100] sm:$0xff] }
 0x455   : > { %14715 = vmatmul.mubr.msk.f32.gmra.mrb[94].mxu0 %vm497_vm6, %v18606_v32  ;;  %v15399_v32 = vpack.c.bf16 %v7777_v4, %v7776_v28  ;;  %v20338_v4 = vld [vmem:[#allocation5_spill] sm:$0xff] }
 0x456   : > { %14725 = vmatprep.mubr.msk.f32.mxu0 %vm497_vm6, %v18118_v3  ;;  %v7371_v3 = vld [vmem:[#allocation3 + $0xf1] sm:$0xff] }
 0x459   : > { %14726 = vmatmul.mubr.msk.f32.vlgmr.msra.gmra.mrb[64].mxu0 %vm497_vm6, %v18123_v8  ;;  %v7372_v8 = vld [vmem:[#allocation3 + $0xf9] sm:$0xff] }
 0x45a   : > { %15394 = vmatpush3.bf16.msra.mxu0 %v15391_v7  ;;  %14728 = vmatprep.mubr.msk.f32.mxu0 %vm497_vm6, %v18127_v2  ;;  %v7373_v2 = vld [vmem:[#allocation3 + $0x109] sm:$0xff] }
 0x45b   : > { %15396 = vmatprep.subr.bf16.mxu0 %v15395_v0  ;;  %v20337_v7 = vld [vmem:[#allocation70_spill] sm:$0xff] }
 0x45d   : > { %14729 = vmatmul.mubr.msk.f32.gmra.mrb[66].mxu0 %vm497_vm6, %v18131_v60  ;;  %v7374_v60 = vld [vmem:[#allocation3 + $0x111] sm:$0xff] }
 0x45e   : > { %14731 = vmatprep.mubr.msk.f32.mxu0 %vm497_vm6, %v18135_v16  ;;  %15398 = vmatpush3.bf16.msra.mxu0 %v15395_v0  ;;  %v20326_v16 = vld [vmem:[#allocation90_spill] sm:$0xff] }
 0x45f   : > { %15400 = vmatprep.subr.bf16.mxu0 %v15399_v32 }
 0x461   : > { %14732 = vmatmul.mubr.msk.f32.gmra.mrb[68].mxu0 %vm497_vm6, %v18139_v56  ;;  %v20327_v56 = vld [vmem:[#allocation91_spill] sm:$0xff] }
 0x462   : > { %14734 = vmatprep.mubr.msk.f32.mxu0 %vm497_vm6, %v18143_v44  ;;  %v7370_v44 = vld [vmem:[#allocation3 + $0xe1] sm:$0xff] }
 0x465   : > { %14735 = vmatmul.mubr.msk.f32.gmra.mrb[70].mxu0 %vm497_vm6, %v18147_v23  ;;  %v7369_v23 = vld [vmem:[#allocation3 + $0xd9] sm:$0xff] }
 0x466   : > { %14737 = vmatprep.mubr.msk.f32.mxu0 %vm497_vm6, %v18151_v59  ;;  %v7368_v59 = vld [vmem:[#allocation3 + $0xc9] sm:$0xff] }
 0x469   : > { %14738 = vmatmul.mubr.msk.f32.gmra.mrb[72].mxu0 %vm497_vm6, %v18155_v46  ;;  %v7367_v46 = vld [vmem:[#allocation3 + $0xc1] sm:$0xff] }
 0x46a   : > { %14740 = vmatprep.mubr.msk.f32.mxu0 %vm497_vm6, %v18159_v61  ;;  %v7366_v61 = vld [vmem:[#allocation3 + $0xb1] sm:$0xff] }
 0x46d   : > { %14741 = vmatmul.mubr.msk.f32.gmra.mrb[74].mxu0 %vm497_vm6, %v18163_v10  ;;  %v7365_v10 = vld [vmem:[#allocation3 + $0xa9] sm:$0xff] }
 0x46e   : > { %14743 = vmatprep.mubr.msk.f32.mxu0 %vm497_vm6, %v18167_v54  ;;  %v7364_v54 = vld [vmem:[#allocation3 + $0x99] sm:$0xff] }
 0x471   : > { %14744 = vmatmul.mubr.msk.f32.gmra.mrb[76].mxu0 %vm497_vm6, %v18171_v38  ;;  %v7363_v38 = vld [vmem:[#allocation3 + $0x91] sm:$0xff] }
 0x472   : > { %14746 = vmatprep.mubr.msk.f32.mxu0 %vm497_vm6, %v18175_v30  ;;  %v7362_v30 = vld [vmem:[#allocation3 + $0x81] sm:$0xff] }
 0x475   : > { %14747 = vmatmul.mubr.msk.f32.gmra.mrb[78].mxu0 %vm497_vm6, %v18179_v21  ;;  %v7361_v21 = vld [vmem:[#allocation3 + $0x79] sm:$0xff] }
 0x476   : > { %14749 = vmatprep.mubr.msk.f32.mxu0 %vm497_vm6, %v18183_v1  ;;  %v7360_v1 = vld [vmem:[#allocation3 + $0x69] sm:$0xff] }
 0x479   : > { %14750 = vmatmul.mubr.msk.f32.gmra.mrb[80].mxu0 %vm497_vm6, %v18187_v39  ;;  %v7359_v39 = vld [vmem:[#allocation3 + $0x61] sm:$0xff] }
 0x47a   : > { %14752 = vmatprep.mubr.msk.f32.mxu0 %vm497_vm6, %v18191_v52  ;;  %v7358_v52 = vld [vmem:[#allocation3 + $0x51] sm:$0xff] }
 0x47d   : > { %14753 = vmatmul.mubr.msk.f32.gmra.mrb[82].mxu0 %vm497_vm6, %v18195_v22  ;;  %v7357_v22 = vld [vmem:[#allocation3 + $0x49] sm:$0xff] }
 0x47e   : > { %14755 = vmatprep.mubr.msk.f32.mxu0 %vm497_vm6, %v18199_v42  ;;  %v7356_v42 = vld [vmem:[#allocation3 + $0x39] sm:$0xff] }
 0x481   : > { %14756 = vmatmul.mubr.msk.f32.gmra.mrb[84].mxu0 %vm497_vm6, %v18203_v41  ;;  %v6996_v41 = vld [vmem:[#allocation3 + $0x198] sm:$0xff] }
 0x482   : > { %14758 = vmatprep.mubr.msk.f32.mxu0 %vm497_vm6, %v18207_v20 }
 0x485   : > { %14759 = vmatmul.mubr.msk.f32.gmra.mrb[86].mxu0 %vm497_vm6, %v18211_v40  ;;  %v6997_v40 = vld [vmem:[#allocation3 + $0x1a0] sm:$0xff] }
 0x486   : > { %14761 = vmatprep.mubr.msk.f32.mxu0 %vm497_vm6, %v18215_v17  ;;  %v8405_v17 = vld [vmem:[%s19903_s10 + $0x8] sm:$0xff] }
 0x487   : > { %14885 = vmatprep.subr.mxu1 %v8405_v17 }
 0x488   : > { %14886 = vmatpush3.msra.mxu1 %v8405_v17 }
 0x489   : > { %14762 = vmatmul.mubr.msk.f32.gmra.mrb[88].mxu0 %vm497_vm6, %v18219_v35  ;;  %v7778_v35 = vld [vmem:[%s19900_s7 + $0x110] sm:$0xff] }
 0x48a   : > { %14764 = vmatprep.mubr.msk.f32.mxu0 %vm497_vm6, %v18223_v29  ;;  %v7779_v29 = vld [vmem:[%s19900_s7 + $0x118] sm:$0xff] }
 0x48b   : > { %v15403_v20 = vpack.c.bf16 %v7779_v29, %v7778_v35 }
 0x48d   : > { %14765 = vmatmul.mubr.msk.f32.gmra.mrb[90].mxu0 %vm497_vm6, %v18227_v45  ;;  %v7355_v45 = vld [vmem:[#allocation3 + $0x31] sm:$0xff] }
 0x48e   : > { %14767 = vmatprep.mubr.msk.f32.mxu0 %vm497_vm6, %v18442_v19  ;;  %v20328_v19 = vld [vmem:[#allocation92_spill] sm:$0xff] }
 0x491   : > { %14768 = vmatmul.mubr.msk.f32.gmra.mrb[92].mxu0 %vm497_vm6, %v18446_v43  ;;  %v20329_v43 = vld [vmem:[#allocation93_spill] sm:$0xff] }
 0x492   : > { %14770 = vmatprep.mubr.msk.f32.mxu0 %vm497_vm6, %v6996_v41 }
 0x495   : > { %14771 = vmatmul.mubr.msk.f32.gmra.mrb[94].mxu0 %vm497_vm6, %v6997_v40 }
 0x496   : > { %14781 = vmatprep.mubr.msk.f32.mxu0 %vm497_vm6, %v7355_v45 }
 0x499   : > { %14782 = vmatmul.mubr.msk.f32.vlgmr.msra.gmra.mrb[64].mxu0 %vm497_vm6, %v7356_v42  ;;  %v20340_v42 = vld [vmem:[#allocation7_spill] sm:$0xff] }
 0x49a   : > { %15402 = vmatpush3.bf16.msra.mxu0 %v15399_v32  ;;  %14784 = vmatprep.mubr.msk.f32.mxu0 %vm497_vm6, %v7357_v22  ;;  %v20339_v32 = vld [vmem:[#allocation6_spill] sm:$0xff] }
 0x49b   : > { %15404 = vmatprep.subr.bf16.mxu0 %v15403_v20 }
 0x49d   : > { %14785 = vmatmul.mubr.msk.f32.gmra.mrb[66].mxu0 %vm497_vm6, %v7358_v52 }
 0x49e   : > { %14787 = vmatprep.mubr.msk.f32.mxu0 %vm497_vm6, %v7359_v39  ;;  %15406 = vmatpush3.bf16.msra.mxu0 %v15403_v20 }
 0x4a1   : > { %14788 = vmatmul.mubr.msk.f32.gmra.mrb[68].mxu0 %vm497_vm6, %v7360_v1  ;;  %v20341_v1 = vld [vmem:[#allocation8_spill] sm:$0xff] }
 0x4a2   : > { %14790 = vmatprep.mubr.msk.f32.mxu0 %vm497_vm6, %v7361_v21 }
 0x4a5   : > { %14791 = vmatmul.mubr.msk.f32.gmra.mrb[70].mxu0 %vm497_vm6, %v7362_v30 }
 0x4a6   : > { %14793 = vmatprep.mubr.msk.f32.mxu0 %vm497_vm6, %v7363_v38 }
 0x4a9   : > { %14794 = vmatmul.mubr.msk.f32.gmra.mrb[72].mxu0 %vm497_vm6, %v7364_v54 }
 0x4aa   : > { %14796 = vmatprep.mubr.msk.f32.mxu0 %vm497_vm6, %v7365_v10 }
 0x4ad   : > { %14797 = vmatmul.mubr.msk.f32.gmra.mrb[74].mxu0 %vm497_vm6, %v7366_v61 }
 0x4ae   : > { %14799 = vmatprep.mubr.msk.f32.mxu0 %vm497_vm6, %v7367_v46 }
 0x4b1   : > { %14800 = vmatmul.mubr.msk.f32.gmra.mrb[76].mxu0 %vm497_vm6, %v7368_v59  ;;  %v20342_v59 = vld [vmem:[#allocation9_spill] sm:$0xff] }
 0x4b2   : > { %14802 = vmatprep.mubr.msk.f32.mxu0 %vm497_vm6, %v7369_v23 }
 0x4b5   : > { %14803 = vmatmul.mubr.msk.f32.gmra.mrb[78].mxu0 %vm497_vm6, %v7370_v44 }
 0x4b6   : > { %14805 = vmatprep.mubr.msk.f32.mxu0 %vm497_vm6, %v7371_v3 }
 0x4b9   : > { %14806 = vmatmul.mubr.msk.f32.gmra.mrb[80].mxu0 %vm497_vm6, %v7372_v8  ;;  %v20343_v8 = vld [vmem:[#allocation10_spill] sm:$0xff] }
 0x4ba   : > { %14808 = vmatprep.mubr.msk.f32.mxu0 %vm497_vm6, %v7373_v2 }
 0x4bd   : > { %14809 = vmatmul.mubr.msk.f32.gmra.mrb[82].mxu0 %vm497_vm6, %v7374_v60 }
 0x4be   : > { %14811 = vmatprep.mubr.msk.f32.mxu0 %vm497_vm6, %v18035_v33  ;;  %v7385_v33 = vld [vmem:[#allocation3 + $0x199] sm:$0xff] }
 0x4c1   : > { %14812 = vmatmul.mubr.msk.f32.gmra.mrb[84].mxu0 %vm497_vm6, %v18043_v53  ;;  %v20325_v53 = vld [vmem:[#allocation89_spill] sm:$0xff] }
 0x4c2   : > { %14814 = vmatprep.mubr.msk.f32.mxu0 %vm497_vm6, %v18057_v49  ;;  %v7386_v49 = vld [vmem:[#allocation3 + $0x1a1] sm:$0xff] }
 0x4c5   : > { %14815 = vmatmul.mubr.msk.f32.gmra.mrb[86].mxu0 %vm497_vm6, %v20290_v9  ;;  %v20330_v9 = vld [vmem:[#allocation94_spill] sm:$0xff] }
 0x4c6   : > { %14817 = vmatprep.mubr.msk.f32.mxu0 %vm497_vm6, %v20291_v18  ;;  %v20331_v18 = vld [vmem:[#allocation96_spill] sm:$0xff] }
 0x4c9   : > { %14818 = vmatmul.mubr.msk.f32.gmra.mrb[88].mxu0 %vm497_vm6, %v20292_v27  ;;  %v20332_v27 = vld [vmem:[#allocation98_spill] sm:$0xff] }
 0x4ca   : > { %14820 = vmatprep.mubr.msk.f32.mxu0 %vm497_vm6, %v20293_v55  ;;  %v20333_v55 = vld [vmem:[#allocation99_spill] sm:$0xff] }
 0x4cd   : > { %14821 = vmatmul.mubr.msk.f32.gmra.mrb[90].mxu0 %vm497_vm6, %v20294_v13  ;;  %v20334_v13 = vld [vmem:[#allocation100_spill] sm:$0xff] }
 0x4ce   : > { %14823 = vmatprep.mubr.msk.f32.mxu0 %vm497_vm6, %v18522_v47  ;;  %v20335_v47 = vld [vmem:[#allocation101_spill] sm:$0xff] }
 0x4d1   : > { %14824 = vmatmul.mubr.msk.f32.gmra.mrb[92].mxu0 %vm497_vm6, %v18526_v63  ;;  %v20336_v63 = vld [vmem:[#allocation67_spill] sm:$0xff] }
 0x4d2   : > { %14826 = vmatprep.mubr.msk.f32.mxu0 %vm497_vm6, %v7385_v33 }
 0x4d5   : > { %14827 = vmatmul.mubr.msk.f32.gmra.mrb[94].mxu0 %vm497_vm6, %v7386_v49 }
 0x4d6   : > { %14837 = vmatprep.mubr.msk.f32.mxu0 %vm497_vm6, %v20295_v25  ;;  %v7774_v25 = vld [vmem:[#allocation3 + $0x19a] sm:$0xff] }
 0x4d9   : > { %14838 = vmatmul.mubr.msk.f32.vlgmr.msra.gmra.mrb[64].mxu0 %vm497_vm6, %v20296_v62  ;;  %v7775_v62 = vld [vmem:[#allocation3 + $0x1a2] sm:$0xff] }
 0x4da   : > { %14840 = vmatprep.mubr.msk.f32.mxu0 %vm497_vm6, %v20297_v31  ;;  %v8373_v31 = vld [vmem:[#allocation4 + $0x1] sm:$0xff] }
 0x4db   : > { %14887 = vmatprep.mubr.msk.f32.mxu1 %vm441_vm1, %v8373_v31 }
 0x4dd   : > { %14841 = vmatmul.mubr.msk.f32.gmra.mrb[66].mxu0 %vm497_vm6, %v20298_v58  ;;  %v8374_v58 = vld [vmem:[#allocation4 + $0x9] sm:$0xff] }
 0x4de   : > { %14843 = vmatprep.mubr.msk.f32.mxu0 %vm497_vm6, %v20299_v26  ;;  %14888 = vmatmul.mubr.msk.f32.vlgmr.msra.gmra.mrb[32].mxu1 %vm441_vm1, %v8374_v58  ;;  %v8372_v26 = vld [vmem:[%s19903_s10] sm:$0xff] }
 0x4df   : > { %14935 = vmatprep.subr.mxu1 %v8372_v26 }
 0x4e0   : > { %14936 = vmatpush3.msra.mxu1 %v8372_v26 }
 0x4e1   : > { %14844 = vmatmul.mubr.msk.f32.gmra.mrb[68].mxu0 %vm497_vm6, %v20300_v24  ;;  %v18805_v24 = vld [vmem:[%s19903_s10 + $0x10] sm:$0xff] }
 0x4e2   : > { %14846 = vmatprep.mubr.msk.f32.mxu0 %vm497_vm6, %v20301_v11  ;;  %14985 = vmatprep.subr.mxu1 %v18805_v24  ;;  %v18811_v11 = vld [vmem:[%s19901_s8] ss:$0 sm:$0xff] }
 0x4e5   : > { %14847 = vmatmul.mubr.msk.f32.gmra.mrb[70].mxu0 %vm497_vm6, %v20302_v34 }
 0x4e6   : > { %14849 = vmatprep.mubr.msk.f32.mxu0 %vm497_vm6, %v20303_v6  ;;  %v18816_v6 = vld [vmem:[%s19902_s9] ss:$0 sm:$0xff] }
 0x4e9   : > { %14850 = vmatmul.mubr.msk.f32.gmra.mrb[72].mxu0 %vm497_vm6, %v20304_v15 }
 0x4ea   : > { %14852 = vmatprep.mubr.msk.f32.mxu0 %vm497_vm6, %v20305_v37 }
 0x4ed   : > { %14853 = vmatmul.mubr.msk.f32.gmra.mrb[74].mxu0 %vm497_vm6, %v20306_v36 }
 0x4ee   : > { %14855 = vmatprep.mubr.msk.f32.mxu0 %vm497_vm6, %v20307_v5 }
 0x4f1   : > { %14856 = vmatmul.mubr.msk.f32.gmra.mrb[76].mxu0 %vm497_vm6, %v20308_v50 }
 0x4f2   : > { %14858 = vmatprep.mubr.msk.f32.mxu0 %vm497_vm6, %v20309_v14 }
 0x4f5   : > { %14859 = vmatmul.mubr.msk.f32.gmra.mrb[78].mxu0 %vm497_vm6, %v20325_v53 }
 0x4f6   : > { %14861 = vmatprep.mubr.msk.f32.mxu0 %vm497_vm6, %v20326_v16 }
 0x4f9   : > { %14862 = vmatmul.mubr.msk.f32.gmra.mrb[80].mxu0 %vm497_vm6, %v20327_v56 }
 0x4fa   : > { %14864 = vmatprep.mubr.msk.f32.mxu0 %vm497_vm6, %v20328_v19 }
 0x4fd   : > { %14865 = vmatmul.mubr.msk.f32.gmra.mrb[82].mxu0 %vm497_vm6, %v20329_v43 }
 0x4fe   : > { %14867 = vmatprep.mubr.msk.f32.mxu0 %vm497_vm6, %v20330_v9  ;;  %v20344_v9 = vld [vmem:[#allocation11_spill] sm:$0xff] }
 0x501   : > { %14868 = vmatmul.mubr.msk.f32.gmra.mrb[84].mxu0 %vm497_vm6, %v20316_v51 }
 0x502   : > { %14870 = vmatprep.mubr.msk.f32.mxu0 %vm497_vm6, %v20331_v18 }
 0x505   : > { %14871 = vmatmul.mubr.msk.f32.gmra.mrb[86].mxu0 %vm497_vm6, %v20318_v57 }
 0x506   : > { %14873 = vmatprep.mubr.msk.f32.mxu0 %vm497_vm6, %v20332_v27 }
 0x509   : > { %14874 = vmatmul.mubr.msk.f32.gmra.mrb[88].mxu0 %vm497_vm6, %v20333_v55 }
 0x50a   : > { %14876 = vmatprep.mubr.msk.f32.mxu0 %vm497_vm6, %v20334_v13  ;;  %v20345_v13 = vld [vmem:[#allocation12_spill] sm:$0xff] }
 0x50d   : > { %14877 = vmatmul.mubr.msk.f32.gmra.mrb[90].mxu0 %vm497_vm6, %v20335_v47 }
 0x50e   : > { %14879 = vmatprep.mubr.msk.f32.mxu0 %vm497_vm6, %v20336_v63 }
 0x511   : > { %14880 = vmatmul.mubr.msk.f32.gmra.mrb[92].mxu0 %vm497_vm6, %v20337_v7 }
 0x512   : > { %14882 = vmatprep.mubr.msk.f32.mxu0 %vm497_vm6, %v7774_v25 }
 0x515   : > { %14883 = vmatmul.mubr.msk.f32.gmra.mrb[94].mxu0 %vm497_vm6, %v7775_v62 }
 0x5ac   : > { %v14839_v34 = vpop.f32.mrb[64].mxu0 }
 0x5ad   : > { %v8141_v15 = vadd.f32 %v14839_v34, %v18811_v11  ;;  %v7942_v37 = vpop.f32.mrb[65].mxu0 }
 0x5ae   : > { %v8140_v36 = vadd.f32 %v18811_v11, %v7942_v37 }
 0x5af   : > { %vm8174_vm12 = vcmp.ge.f32.partialorder %v8141_v15, 0.0  ;;  %v8212_v5 = vmul.f32 %v18816_v6, %v8141_v15 }
 0x5b0   : > { %vm8173_vm13 = vcmp.ge.f32.partialorder %v8140_v36, 0.0  ;;  %v8211_v50 = vmul.f32 %v18816_v6, %v8140_v36  ;;  %v14842_v14 = vpop.f32.mrb[66].mxu0 }
 0x5b1   : > { %v8244_v57 = vsel %vm8174_vm12, %v8141_v15, %v8212_v5  ;;  %v8143_v12 = vadd.f32 %v14842_v14, %v18811_v11  ;;  %v7952_v48 = vpop.f32.mrb[67].mxu0  ;;  %v20346_v15 = vld [vmem:[#allocation13_spill] sm:$0xff] }
 0x5b2   : > { %v8276_v0 = vsub.f32 %v8244_v57, %v20338_v4  ;;  %v8243_v28 = vsel %vm8173_vm13, %v8140_v36, %v8211_v50  ;;  %v8142_v51 = vadd.f32 %v18811_v11, %v7952_v48  ;;  %v20347_v50 = vld [vmem:[#allocation14_spill] sm:$0xff] }
 0x5b3   : > { %v8275_v41 = vsub.f32 %v8243_v28, %v20339_v32  ;;  %vm8176_vm14 = vcmp.ge.f32.partialorder %v8143_v12, 0.0  ;;  %v8214_v40 = vmul.f32 %v18816_v6, %v8143_v12 }
 0x5b4   : > { %8309 = vst.msk [vmem:[#allocation4 + $0x21] sm:$0xff] %vm441_vm1, %v8276_v0  ;;  %vm8175_vm15 = vcmp.ge.f32.partialorder %v8142_v51, 0.0  ;;  %v8213_v35 = vmul.f32 %v18816_v6, %v8142_v51  ;;  %v14845_v29 = vpop.f32.mrb[68].mxu0 }
 0x5b5   : > { %8308 = vst.msk [vmem:[#allocation4 + $0x19] sm:$0xff] %vm441_vm1, %v8275_v41  ;;  %v8246_v45 = vsel %vm8176_vm14, %v8143_v12, %v8214_v40  ;;  %v8145_v17 = vadd.f32 %v14845_v29, %v18811_v11  ;;  %v7962_v20 = vpop.f32.mrb[69].mxu0  ;;  %v20348_v41 = vld [vmem:[#allocation16_spill] sm:$0xff] }
 0x5b6   : > { %v8278_v22 = vsub.f32 %v8246_v45, %v20340_v42  ;;  %v8245_v52 = vsel %vm8175_vm15, %v8142_v51, %v8213_v35  ;;  %v8144_v39 = vadd.f32 %v18811_v11, %v7962_v20  ;;  %v20349_v45 = vld [vmem:[#allocation17_spill] sm:$0xff] }
 0x5b7   : > { %v8277_v21 = vsub.f32 %v8245_v52, %v20341_v1  ;;  %vm8178_vm0 = vcmp.ge.f32.partialorder %v8145_v17, 0.0  ;;  %v8216_v30 = vmul.f32 %v18816_v6, %v8145_v17 }
 0x5b8   : > { %8311 = vst.msk [vmem:[#allocation4 + $0x39] sm:$0xff] %vm441_vm1, %v8278_v22  ;;  %vm8177_vm2 = vcmp.ge.f32.partialorder %v8144_v39, 0.0  ;;  %v8215_v38 = vmul.f32 %v18816_v6, %v8144_v39  ;;  %v14848_v54 = vpop.f32.mrb[70].mxu0 }
 0x5b9   : > { %8310 = vst.msk [vmem:[#allocation4 + $0x31] sm:$0xff] %vm441_vm1, %v8277_v21  ;;  %v8248_v10 = vsel %vm8178_vm0, %v8145_v17, %v8216_v30  ;;  %v8147_v61 = vadd.f32 %v14848_v54, %v18811_v11  ;;  %v7972_v46 = vpop.f32.mrb[71].mxu0 }
 0x5ba   : > { %v8280_v23 = vsub.f32 %v8248_v10, %v20342_v59  ;;  %v8247_v44 = vsel %vm8177_vm2, %v8144_v39, %v8215_v38  ;;  %v8146_v3 = vadd.f32 %v18811_v11, %v7972_v46  ;;  %v20350_v38 = vld [vmem:[#allocation20_spill] sm:$0xff]  ;;  %v20351_v46 = vld [vmem:[#allocation21_spill] sm:$0xff] }
 0x5bb   : > { %v8279_v2 = vsub.f32 %v8247_v44, %v20343_v8  ;;  %vm8180_vm3 = vcmp.ge.f32.partialorder %v8147_v61, 0.0  ;;  %v8218_v60 = vmul.f32 %v18816_v6, %v8147_v61  ;;  %v18851_v43 = vld [vmem:[#allocation4 + $0x21] sm:$0xff] }
 0x5bc   : > { %8313 = vst.msk [vmem:[#allocation4 + $0x51] sm:$0xff] %vm441_vm1, %v8280_v23  ;;  %vm8179_vm4 = vcmp.ge.f32.partialorder %v8146_v3, 0.0  ;;  %v8217_v33 = vmul.f32 %v18816_v6, %v8146_v3  ;;  %v14851_v49 = vpop.f32.mrb[72].mxu0  ;;  %v18845_v53 = vld [vmem:[#allocation4 + $0x19] sm:$0xff] }
 0x5bd   : > { %8312 = vst.msk [vmem:[#allocation4 + $0x49] sm:$0xff] %vm441_vm1, %v8279_v2  ;;  %v8250_v16 = vsel %vm8180_vm3, %v8147_v61, %v8218_v60  ;;  %v8149_v56 = vadd.f32 %v14851_v49, %v18811_v11  ;;  %v7982_v19 = vpop.f32.mrb[73].mxu0  ;;  %14890 = vmatprep.mubr.msk.f32.mxu1 %vm441_vm1, %v18845_v53 }
 0x5be   : > { %v8282_v18 = vsub.f32 %v8250_v16, %v20344_v9  ;;  %v8249_v27 = vsel %vm8179_vm4, %v8146_v3, %v8217_v33  ;;  %v8148_v55 = vadd.f32 %v18811_v11, %v7982_v19  ;;  %14891 = vmatmul.mubr.msk.f32.gmra.mrb[34].mxu1 %vm441_vm1, %v18851_v43  ;;  %v20352_v16 = vld [vmem:[#allocation24_spill] sm:$0xff] }
 0x5bf   : > { %v8281_v47 = vsub.f32 %v8249_v27, %v20345_v13  ;;  %vm8182_vm5 = vcmp.ge.f32.partialorder %v8149_v56, 0.0  ;;  %v8220_v63 = vmul.f32 %v18816_v6, %v8149_v56  ;;  %v18867_v34 = vld [vmem:[#allocation4 + $0x39] sm:$0xff] }
 0x5c0   : > { %8315 = vst.msk [vmem:[#allocation4 + $0x69] sm:$0xff] %vm441_vm1, %v8282_v18  ;;  %vm8181_vm7 = vcmp.ge.f32.partialorder %v8148_v55, 0.0  ;;  %v8219_v25 = vmul.f32 %v18816_v6, %v8148_v55  ;;  %v14854_v7 = vpop.f32.mrb[74].mxu0  ;;  %v18861_v62 = vld [vmem:[#allocation4 + $0x31] sm:$0xff] }
 0x5c1   : > { %8314 = vst.msk [vmem:[#allocation4 + $0x61] sm:$0xff] %vm441_vm1, %v8281_v47  ;;  %v8252_v31 = vsel %vm8182_vm5, %v8149_v56, %v8220_v63  ;;  %v8151_v58 = vadd.f32 %v14854_v7, %v18811_v11  ;;  %v7992_v26 = vpop.f32.mrb[75].mxu0  ;;  %14893 = vmatprep.mubr.msk.f32.mxu1 %vm441_vm1, %v18861_v62  ;;  %v20353_v18 = vld [vmem:[#allocation25_spill] sm:$0xff] }
 0x5c2   : > { %v8284_v37 = vsub.f32 %v8252_v31, %v20346_v15  ;;  %v8251_v36 = vsel %vm8181_vm7, %v8148_v55, %v8219_v25  ;;  %v8150_v5 = vadd.f32 %v18811_v11, %v7992_v26  ;;  %14894 = vmatmul.mubr.msk.f32.gmra.mrb[36].mxu1 %vm441_vm1, %v18867_v34  ;;  %v20354_v26 = vld [vmem:[#allocation28_spill] sm:$0xff] }
 0x5c3   : > { %v8283_v14 = vsub.f32 %v8251_v36, %v20347_v50  ;;  %vm8184_vm8 = vcmp.ge.f32.partialorder %v8151_v58, 0.0  ;;  %v8222_v57 = vmul.f32 %v18816_v6, %v8151_v58  ;;  %v18883_v32 = vld [vmem:[#allocation4 + $0x51] sm:$0xff] }
 0x5c4   : > { %8317 = vst.msk [vmem:[#allocation4 + $0x81] sm:$0xff] %vm441_vm1, %v8284_v37  ;;  %vm8183_vm9 = vcmp.ge.f32.partialorder %v8150_v5, 0.0  ;;  %v8221_v12 = vmul.f32 %v18816_v6, %v8150_v5  ;;  %v14857_v48 = vpop.f32.mrb[76].mxu0  ;;  %v18877_v4 = vld [vmem:[#allocation4 + $0x49] sm:$0xff] }
 0x5c5   : > { %8316 = vst.msk [vmem:[#allocation4 + $0x79] sm:$0xff] %vm441_vm1, %v8283_v14  ;;  %v8254_v0 = vsel %vm8184_vm8, %v8151_v58, %v8222_v57  ;;  %v8153_v28 = vadd.f32 %v14857_v48, %v18811_v11  ;;  %v8002_v51 = vpop.f32.mrb[77].mxu0  ;;  %14896 = vmatprep.mubr.msk.f32.mxu1 %vm441_vm1, %v18877_v4 }
 0x5c6   : > { %v8286_v40 = vsub.f32 %v8254_v0, %v20348_v41  ;;  %v8253_v35 = vsel %vm8183_vm9, %v8150_v5, %v8221_v12  ;;  %v8152_v29 = vadd.f32 %v18811_v11, %v8002_v51  ;;  %14897 = vmatmul.mubr.msk.f32.gmra.mrb[38].mxu1 %vm441_vm1, %v18883_v32  ;;  %v20355_v5 = vld [vmem:[#allocation29_spill] sm:$0xff] }
 0x5c7   : > { %v8285_v17 = vsub.f32 %v8253_v35, %v20349_v45  ;;  %vm8186_vm10 = vcmp.ge.f32.partialorder %v8153_v28, 0.0  ;;  %v8224_v20 = vmul.f32 %v18816_v6, %v8153_v28  ;;  %v18899_v30 = vld [vmem:[#allocation4 + $0x69] sm:$0xff] }
 0x5c8   : > { %8319 = vst.msk [vmem:[#allocation4 + $0x99] sm:$0xff] %vm441_vm1, %v8286_v40  ;;  %vm8185_vm11 = vcmp.ge.f32.partialorder %v8152_v29, 0.0  ;;  %v8223_v42 = vmul.f32 %v18816_v6, %v8152_v29  ;;  %v14860_v22 = vpop.f32.mrb[78].mxu0  ;;  %v18893_v52 = vld [vmem:[#allocation4 + $0x61] sm:$0xff] }
 0x5c9   : > { %8318 = vst.msk [vmem:[#allocation4 + $0x91] sm:$0xff] %vm441_vm1, %v8285_v17  ;;  %v8256_v39 = vsel %vm8186_vm10, %v8153_v28, %v8224_v20  ;;  %v8155_v1 = vadd.f32 %v14860_v22, %v18811_v11  ;;  %v8012_v21 = vpop.f32.mrb[79].mxu0  ;;  %14899 = vmatprep.mubr.msk.f32.mxu1 %vm441_vm1, %v18893_v52  ;;  %v20356_v40 = vld [vmem:[#allocation32_spill] sm:$0xff]  ;;  %v20357_v17 = vld [vmem:[#allocation33_spill] sm:$0xff] }
 0x5ca   : > { %v8288_v54 = vsub.f32 %v8256_v39, %v20350_v38  ;;  %v8255_v10 = vsel %vm8185_vm11, %v8152_v29, %v8223_v42  ;;  %v8154_v61 = vadd.f32 %v18811_v11, %v8012_v21  ;;  %14900 = vmatmul.mubr.msk.f32.gmra.mrb[40].mxu1 %vm441_vm1, %v18899_v30 }
 0x5cb   : > { %v8287_v59 = vsub.f32 %v8255_v10, %v20351_v46  ;;  %vm8188_vm12 = vcmp.ge.f32.partialorder %v8155_v1, 0.0  ;;  %v8226_v23 = vmul.f32 %v18816_v6, %v8155_v1  ;;  %v18915_v49 = vld [vmem:[#allocation4 + $0x81] sm:$0xff] }
 0x5cc   : > { %8321 = vst.msk [vmem:[#allocation4 + $0xb1] sm:$0xff] %vm441_vm1, %v8288_v54  ;;  %vm8187_vm13 = vcmp.ge.f32.partialorder %v8154_v61, 0.0  ;;  %v8225_v44 = vmul.f32 %v18816_v6, %v8154_v61  ;;  %v14863_v3 = vpop.f32.mrb[80].mxu0  ;;  %v18909_v8 = vld [vmem:[#allocation4 + $0x79] sm:$0xff] }
 0x5cd   : > { %8320 = vst.msk [vmem:[#allocation4 + $0xa9] sm:$0xff] %vm441_vm1, %v8287_v59  ;;  %v8258_v2 = vsel %vm8188_vm12, %v8155_v1, %v8226_v23  ;;  %v8157_v60 = vadd.f32 %v14863_v3, %v18811_v11  ;;  %v8022_v33 = vpop.f32.mrb[81].mxu0  ;;  %14902 = vmatprep.mubr.msk.f32.mxu1 %vm441_vm1, %v18909_v8 }
 0x5ce   : > { %v8290_v56 = vsub.f32 %v8258_v2, %v20352_v16  ;;  %v8257_v19 = vsel %vm8187_vm13, %v8154_v61, %v8225_v44  ;;  %v8156_v9 = vadd.f32 %v18811_v11, %v8022_v33  ;;  %14903 = vmatmul.mubr.msk.f32.gmra.mrb[42].mxu1 %vm441_vm1, %v18915_v49  ;;  %v20358_v61 = vld [vmem:[#allocation36_spill] sm:$0xff]  ;;  %v20359_v44 = vld [vmem:[#allocation37_spill] sm:$0xff] }
 0x5cf   : > { %v8289_v27 = vsub.f32 %v8257_v19, %v20353_v18  ;;  %vm8190_vm14 = vcmp.ge.f32.partialorder %v8157_v60, 0.0  ;;  %v8228_v55 = vmul.f32 %v18816_v6, %v8157_v60  ;;  %v18931_v58 = vld [vmem:[#allocation4 + $0x99] sm:$0xff] }
 0x5d0   : > { %8323 = vst.msk [vmem:[#allocation4 + $0xc9] sm:$0xff] %vm441_vm1, %v8290_v56  ;;  %vm8189_vm15 = vcmp.ge.f32.partialorder %v8156_v9, 0.0  ;;  %v8227_v13 = vmul.f32 %v18816_v6, %v8156_v9  ;;  %v14866_v47 = vpop.f32.mrb[82].mxu0  ;;  %v18925_v63 = vld [vmem:[#allocation4 + $0x91] sm:$0xff] }
 0x5d1   : > { %8322 = vst.msk [vmem:[#allocation4 + $0xc1] sm:$0xff] %vm441_vm1, %v8289_v27  ;;  %v8260_v25 = vsel %vm8190_vm14, %v8157_v60, %v8228_v55  ;;  %v8159_v7 = vadd.f32 %v14866_v47, %v18811_v11  ;;  %v8032_v31 = vpop.f32.mrb[83].mxu0  ;;  %14905 = vmatprep.mubr.msk.f32.mxu1 %vm441_vm1, %v18925_v63  ;;  %v20360_v27 = vld [vmem:[#allocation40_spill] sm:$0xff] }
 0x5d2   : > { %v8292_v15 = vsub.f32 %v8260_v25, %v20354_v26  ;;  %v8259_v37 = vsel %vm8189_vm15, %v8156_v9, %v8227_v13  ;;  %v8158_v36 = vadd.f32 %v18811_v11, %v8032_v31  ;;  %14906 = vmatmul.mubr.msk.f32.gmra.mrb[44].mxu1 %vm441_vm1, %v18931_v58  ;;  %v20361_v25 = vld [vmem:[#allocation41_spill] sm:$0xff] }
 0x5d3   : > { %v8291_v50 = vsub.f32 %v8259_v37, %v20355_v5  ;;  %vm8192_vm0 = vcmp.ge.f32.partialorder %v8159_v7, 0.0  ;;  %v8230_v14 = vmul.f32 %v18816_v6, %v8159_v7  ;;  %v18947_v41 = vld [vmem:[#allocation4 + $0xb1] sm:$0xff] }
 0x5d4   : > { %8325 = vst.msk [vmem:[#allocation4 + $0xe1] sm:$0xff] %vm441_vm1, %v8292_v15  ;;  %vm8191_vm2 = vcmp.ge.f32.partialorder %v8158_v36, 0.0  ;;  %v8229_v57 = vmul.f32 %v18816_v6, %v8158_v36  ;;  %v14869_v12 = vpop.f32.mrb[84].mxu0  ;;  %v18941_v48 = vld [vmem:[#allocation4 + $0xa9] sm:$0xff] }
 0x5d5   : > { %8324 = vst.msk [vmem:[#allocation4 + $0xd9] sm:$0xff] %vm441_vm1, %v8291_v50  ;;  %v8262_v0 = vsel %vm8192_vm0, %v8159_v7, %v8230_v14  ;;  %v8161_v28 = vadd.f32 %v14869_v12, %v18811_v11  ;;  %v8042_v51 = vpop.f32.mrb[85].mxu0  ;;  %14908 = vmatprep.mubr.msk.f32.mxu1 %vm441_vm1, %v18941_v48 }
 0x5d6   : > { %v8294_v35 = vsub.f32 %v8262_v0, %v20356_v40  ;;  %v8261_v29 = vsel %vm8191_vm2, %v8158_v36, %v8229_v57  ;;  %v8160_v45 = vadd.f32 %v18811_v11, %v8042_v51  ;;  %14909 = vmatmul.mubr.msk.f32.gmra.mrb[46].mxu1 %vm441_vm1, %v18947_v41  ;;  %v20362_v57 = vld [vmem:[#allocation44_spill] sm:$0xff]  ;;  %v20363_v51 = vld [vmem:[#allocation45_spill] sm:$0xff] }
 0x5d7   : > { %v8293_v20 = vsub.f32 %v8261_v29, %v20357_v17  ;;  %vm8194_vm3 = vcmp.ge.f32.partialorder %v8161_v28, 0.0  ;;  %v8232_v42 = vmul.f32 %v18816_v6, %v8161_v28  ;;  %v18963_v10 = vld [vmem:[#allocation4 + $0xc9] sm:$0xff] }
 0x5d8   : > { %8327 = vst.msk [vmem:[#allocation4 + $0xf9] sm:$0xff] %vm441_vm1, %v8294_v35  ;;  %vm8193_vm4 = vcmp.ge.f32.partialorder %v8160_v45, 0.0  ;;  %v8231_v22 = vmul.f32 %v18816_v6, %v8160_v45  ;;  %v14872_v39 = vpop.f32.mrb[86].mxu0  ;;  %v18957_v1 = vld [vmem:[#allocation4 + $0xc1] sm:$0xff] }
 0x5d9   : > { %8326 = vst.msk [vmem:[#allocation4 + $0xf1] sm:$0xff] %vm441_vm1, %v8293_v20  ;;  %v8264_v21 = vsel %vm8194_vm3, %v8161_v28, %v8232_v42  ;;  %v8163_v38 = vadd.f32 %v14872_v39, %v18811_v11  ;;  %v8052_v54 = vpop.f32.mrb[87].mxu0  ;;  %14911 = vmatprep.mubr.msk.f32.mxu1 %vm441_vm1, %v18957_v1 }
 0x5da   : > { %v8296_v46 = vsub.f32 %v8264_v21, %v20358_v61  ;;  %v8263_v59 = vsel %vm8193_vm4, %v8160_v45, %v8231_v22  ;;  %v8162_v23 = vadd.f32 %v18811_v11, %v8052_v54  ;;  %14912 = vmatmul.mubr.msk.f32.gmra.mrb[48].mxu1 %vm441_vm1, %v18963_v10  ;;  %v20364_v21 = vld [vmem:[#allocation48_spill] sm:$0xff] }
 0x5db   : > { %v8295_v3 = vsub.f32 %v8263_v59, %v20359_v44  ;;  %vm8196_vm5 = vcmp.ge.f32.partialorder %v8163_v38, 0.0  ;;  %v8234_v2 = vmul.f32 %v18816_v6, %v8163_v38  ;;  %v18979_v18 = vld [vmem:[#allocation4 + $0xe1] sm:$0xff] }
 0x5dc   : > { %8329 = vst.msk [vmem:[#allocation4 + $0x111] sm:$0xff] %vm441_vm1, %v8296_v46  ;;  %vm8195_vm7 = vcmp.ge.f32.partialorder %v8162_v23, 0.0  ;;  %v8233_v60 = vmul.f32 %v18816_v6, %v8162_v23  ;;  %v14875_v33 = vpop.f32.mrb[88].mxu0  ;;  %v18973_v16 = vld [vmem:[#allocation4 + $0xd9] sm:$0xff]  ;;  %v20365_v46 = vld [vmem:[#allocation49_spill] sm:$0xff] }
 0x5dd   : > { %8328 = vst.msk [vmem:[#allocation4 + $0x109] sm:$0xff] %vm441_vm1, %v8295_v3  ;;  %v8266_v56 = vsel %vm8196_vm5, %v8163_v38, %v8234_v2  ;;  %v8165_v19 = vadd.f32 %v14875_v33, %v18811_v11  ;;  %v8062_v9 = vpop.f32.mrb[89].mxu0  ;;  %14914 = vmatprep.mubr.msk.f32.mxu1 %vm441_vm1, %v18973_v16 }
 0x5de   : > { %v8298_v55 = vsub.f32 %v8266_v56, %v20360_v27  ;;  %v8265_v13 = vsel %vm8195_vm7, %v8162_v23, %v8233_v60  ;;  %v8164_v47 = vadd.f32 %v18811_v11, %v8062_v9  ;;  %14915 = vmatmul.mubr.msk.f32.gmra.mrb[50].mxu1 %vm441_vm1, %v18979_v18  ;;  %v20366_v9 = vld [vmem:[#allocation52_spill] sm:$0xff] }
 0x5df   : > { %v8297_v7 = vsub.f32 %v8265_v13, %v20361_v25  ;;  %vm8198_vm8 = vcmp.ge.f32.partialorder %v8165_v19, 0.0  ;;  %v8236_v31 = vmul.f32 %v18816_v6, %v8165_v19  ;;  %v18995_v14 = vld [vmem:[#allocation4 + $0xf9] sm:$0xff] }
 0x5e0   : > { %8331 = vst.msk [vmem:[#allocation4 + $0x129] sm:$0xff] %vm441_vm1, %v8298_v55  ;;  %vm8197_vm9 = vcmp.ge.f32.partialorder %v8164_v47, 0.0  ;;  %v8235_v26 = vmul.f32 %v18816_v6, %v8164_v47  ;;  %v14878_v15 = vpop.f32.mrb[90].mxu0  ;;  %v18989_v37 = vld [vmem:[#allocation4 + $0xf1] sm:$0xff] }
 0x5e1   : > { %8330 = vst.msk [vmem:[#allocation4 + $0x121] sm:$0xff] %vm441_vm1, %v8297_v7  ;;  %v8268_v36 = vsel %vm8198_vm8, %v8165_v19, %v8236_v31  ;;  %v8167_v5 = vadd.f32 %v14878_v15, %v18811_v11  ;;  %v8072_v50 = vpop.f32.mrb[91].mxu0  ;;  %14917 = vmatprep.mubr.msk.f32.mxu1 %vm441_vm1, %v18989_v37 }
 0x5e2   : > { %v8300_v12 = vsub.f32 %v8268_v36, %v20362_v57  ;;  %v8267_v0 = vsel %vm8197_vm9, %v8164_v47, %v8235_v26  ;;  %v8166_v28 = vadd.f32 %v18811_v11, %v8072_v50  ;;  %14918 = vmatmul.mubr.msk.f32.gmra.mrb[52].mxu1 %vm441_vm1, %v18995_v14  ;;  %v20367_v47 = vld [vmem:[#allocation53_spill] sm:$0xff]  ;;  %v20368_v36 = vld [vmem:[#allocation56_spill] sm:$0xff] }
 0x5e3   : > { %v8299_v40 = vsub.f32 %v8267_v0, %v20363_v51  ;;  %vm8200_vm10 = vcmp.ge.f32.partialorder %v8167_v5, 0.0  ;;  %v8238_v35 = vmul.f32 %v18816_v6, %v8167_v5  ;;  %v19011_v39 = vld [vmem:[#allocation4 + $0x111] sm:$0xff]  ;;  %v8340_v51 = vld [vmem:[#allocation4] sm:$0xff] }
 0x5e4   : > { %8333 = vst.msk [vmem:[#allocation4 + $0x141] sm:$0xff] %vm441_vm1, %v8300_v12  ;;  %vm8199_vm11 = vcmp.ge.f32.partialorder %v8166_v28, 0.0  ;;  %v8237_v29 = vmul.f32 %v18816_v6, %v8166_v28  ;;  %v14881_v45 = vpop.f32.mrb[92].mxu0  ;;  %v19005_v17 = vld [vmem:[#allocation4 + $0x109] sm:$0xff] }
 0x5e5   : > { %8332 = vst.msk [vmem:[#allocation4 + $0x139] sm:$0xff] %vm441_vm1, %v8299_v40  ;;  %v8270_v20 = vsel %vm8200_vm10, %v8167_v5, %v8238_v35  ;;  %v8169_v42 = vadd.f32 %v14881_v45, %v18811_v11  ;;  %v8082_v22 = vpop.f32.mrb[93].mxu0  ;;  %14920 = vmatprep.mubr.msk.f32.mxu1 %vm441_vm1, %v19005_v17  ;;  %v20369_v57 = vld [vmem:[#allocation57_spill] sm:$0xff]  ;;  %v8341_v35 = vld [vmem:[#allocation4 + $0x8] sm:$0xff]  ;;  %v19073_v45 = vld [vmem:[#allocation4 + $0x18] sm:$0xff] }
 0x5e6   : > { %v8302_v38 = vsub.f32 %v8270_v20, %v20364_v21  ;;  %v8269_v54 = vsel %vm8199_vm11, %v8166_v28, %v8237_v29  ;;  %v8168_v61 = vadd.f32 %v18811_v11, %v8082_v22  ;;  %14921 = vmatmul.mubr.msk.f32.gmra.mrb[54].mxu1 %vm441_vm1, %v19011_v39  ;;  %v19070_v29 = vld [vmem:[%s19903_s10 + $0x18] sm:$0xff]  ;;  %v19079_v20 = vld [vmem:[#allocation4 + $0x20] sm:$0xff]  ;;  %v19095_v21 = vld [vmem:[#allocation4 + $0x50] sm:$0xff] }
 0x5e7   : > { %v8301_v59 = vsub.f32 %v8269_v54, %v20365_v46  ;;  %vm8202_vm12 = vcmp.ge.f32.partialorder %v8169_v42, 0.0  ;;  %v8240_v23 = vmul.f32 %v18816_v6, %v8169_v42  ;;  %v19027_v19 = vld [vmem:[#allocation4 + $0x129] sm:$0xff]  ;;  %v19087_v22 = vld [vmem:[#allocation4 + $0x38] sm:$0xff]  ;;  %v19111_v46 = vld [vmem:[#allocation4 + $0x80] sm:$0xff] }
 0x5e8   : > { %8335 = vst.msk [vmem:[#allocation4 + $0x159] sm:$0xff] %vm441_vm1, %v8302_v38  ;;  %vm8201_vm13 = vcmp.ge.f32.partialorder %v8168_v61, 0.0  ;;  %v8239_v44 = vmul.f32 %v18816_v6, %v8168_v61  ;;  %v14884_v3 = vpop.f32.mrb[94].mxu0  ;;  %v19021_v2 = vld [vmem:[#allocation4 + $0x121] sm:$0xff] }
 0x5e9   : > { %8334 = vst.msk [vmem:[#allocation4 + $0x151] sm:$0xff] %vm441_vm1, %v8301_v59  ;;  %v8272_v60 = vsel %vm8202_vm12, %v8169_v42, %v8240_v23  ;;  %v8171_v33 = vadd.f32 %v14884_v3, %v18811_v11  ;;  %v8092_v56 = vpop.f32.mrb[95].mxu0  ;;  %14923 = vmatprep.mubr.msk.f32.mxu1 %vm441_vm1, %v19021_v2  ;;  %v19083_v42 = vld [vmem:[#allocation4 + $0x30] sm:$0xff]  ;;  %v19099_v38 = vld [vmem:[#allocation4 + $0x60] sm:$0xff]  ;;  %v19103_v54 = vld [vmem:[#allocation4 + $0x68] sm:$0xff] }
 0x5ea   : > { %v8304_v27 = vsub.f32 %v8272_v60, %v20366_v9  ;;  %v8271_v55 = vsel %vm8201_vm13, %v8168_v61, %v8239_v44  ;;  %v8170_v13 = vadd.f32 %v18811_v11, %v8092_v56  ;;  %14924 = vmatmul.mubr.msk.f32.gmra.mrb[56].mxu1 %vm441_vm1, %v19027_v19  ;;  %v19107_v61 = vld [vmem:[#allocation4 + $0x78] sm:$0xff]  ;;  %v19115_v59 = vld [vmem:[#allocation4 + $0x90] sm:$0xff]  ;;  %v19123_v44 = vld [vmem:[#allocation4 + $0xa8] sm:$0xff] }
 0x5eb   : > { %v8303_v25 = vsub.f32 %v8271_v55, %v20367_v47  ;;  %vm8204_vm14 = vcmp.ge.f32.partialorder %v8171_v33, 0.0  ;;  %v8242_v7 = vmul.f32 %v18816_v6, %v8171_v33  ;;  %v19042_v11 = vld [vmem:[#allocation4 + $0x141] sm:$0xff]  ;;  %v19119_v23 = vld [vmem:[#allocation4 + $0x98] sm:$0xff]  ;;  %v19127_v3 = vld [vmem:[#allocation4 + $0xb0] sm:$0xff] }
 0x5ec   : > { %8337 = vst.msk [vmem:[#allocation4 + $0x171] sm:$0xff] %vm441_vm1, %v8304_v27  ;;  %vm8203_vm15 = vcmp.ge.f32.partialorder %v8170_v13, 0.0  ;;  %v8241_v31 = vmul.f32 %v18816_v6, %v8170_v13  ;;  %v19037_v26 = vld [vmem:[#allocation4 + $0x139] sm:$0xff]  ;;  %v19147_v27 = vld [vmem:[#allocation4 + $0xf0] sm:$0xff] }
 0x5ed   : > { %8336 = vst.msk [vmem:[#allocation4 + $0x169] sm:$0xff] %vm441_vm1, %v8303_v25  ;;  %v8274_v15 = vsel %vm8204_vm14, %v8171_v33, %v8242_v7  ;;  %14926 = vmatprep.mubr.msk.f32.mxu1 %vm441_vm1, %v19037_v26  ;;  %v19131_v60 = vld [vmem:[#allocation4 + $0xc0] sm:$0xff]  ;;  %v19135_v33 = vld [vmem:[#allocation4 + $0xc8] sm:$0xff]  ;;  %v19139_v56 = vld [vmem:[#allocation4 + $0xd8] sm:$0xff] }
 0x5ee   : > { %v8306_v5 = vsub.f32 %v8274_v15, %v20368_v36  ;;  %v8273_v50 = vsel %vm8203_vm15, %v8170_v13, %v8241_v31  ;;  %14927 = vmatmul.mubr.msk.f32.gmra.mrb[58].mxu1 %vm441_vm1, %v19042_v11  ;;  %v19143_v9 = vld [vmem:[#allocation4 + $0xe0] sm:$0xff]  ;;  %v19151_v55 = vld [vmem:[#allocation4 + $0xf8] sm:$0xff]  ;;  %v19155_v13 = vld [vmem:[#allocation4 + $0x108] sm:$0xff] }
 0x5ef   : > { %v8305_v12 = vsub.f32 %v8273_v50, %v20369_v57  ;;  %v19054_v0 = vld [vmem:[#allocation4 + $0x159] sm:$0xff]  ;;  %v19159_v47 = vld [vmem:[#allocation4 + $0x110] sm:$0xff]  ;;  %v19167_v7 = vld [vmem:[#allocation4 + $0x128] sm:$0xff] }
 0x5f0   : > { %8339 = vst.msk [vmem:[#allocation4 + $0x189] sm:$0xff] %vm441_vm1, %v8306_v5  ;;  %v19049_v6 = vld [vmem:[#allocation4 + $0x151] sm:$0xff]  ;;  %v19163_v25 = vld [vmem:[#allocation4 + $0x120] sm:$0xff] }
 0x5f1   : > { %8338 = vst.msk [vmem:[#allocation4 + $0x181] sm:$0xff] %vm441_vm1, %v8305_v12  ;;  %14929 = vmatprep.mubr.msk.f32.mxu1 %vm441_vm1, %v19049_v6  ;;  %v19171_v31 = vld [vmem:[#allocation4 + $0x138] sm:$0xff]  ;;  %v19175_v15 = vld [vmem:[#allocation4 + $0x140] sm:$0xff]  ;;  %v19179_v36 = vld [vmem:[#allocation4 + $0x150] sm:$0xff] }
 0x5f2   : > { %14930 = vmatmul.mubr.msk.f32.gmra.mrb[60].mxu1 %vm441_vm1, %v19054_v0  ;;  %v19183_v5 = vld [vmem:[#allocation4 + $0x158] sm:$0xff]  ;;  %v9048_v57 = vld [vmem:[#allocation4 + $0x2] sm:$0xff] }
 0x5f3   : > { %v19062_v40 = vld [vmem:[#allocation4 + $0x171] sm:$0xff] }
 0x5f4   : > { %v19058_v28 = vld [vmem:[#allocation4 + $0x169] sm:$0xff]  ;;  %20371 = vst [vmem:[#allocation72_spill] sm:$0xff] %v19062_v40 }
 0x5f5   : > { %20370 = vst [vmem:[#allocation71_spill] sm:$0xff] %v19058_v28  ;;  %14932 = vmatprep.mubr.msk.f32.mxu1 %vm441_vm1, %v19058_v28  ;;  %v19187_v50 = vld [vmem:[#allocation4 + $0x168] sm:$0xff]  ;;  %v19191_v12 = vld [vmem:[#allocation4 + $0x170] sm:$0xff] }
 0x5f6   : > { %14933 = vmatmul.mubr.msk.f32.gmra.mrb[62].mxu1 %vm441_vm1, %v19062_v40  ;;  %v19202_v40 = vld [vmem:[#allocation4 + $0x1a] sm:$0xff]  ;;  %v19208_v28 = vld [vmem:[#allocation4 + $0x22] sm:$0xff] }
 0x5f7   : > { %14937 = vmatprep.mubr.msk.f32.mxu1 %vm441_vm1, %v8340_v51  ;;  %v9049_v51 = vld [vmem:[#allocation4 + $0xa] sm:$0xff]  ;;  %20372 = vst [vmem:[#allocation73_spill] sm:$0xff] %v19202_v40  ;;  %20373 = vst [vmem:[#allocation74_spill] sm:$0xff] %v19208_v28 }
 0x5fa   : > { %14938 = vmatmul.mubr.msk.f32.vlgmr.msra.gmra.mrb[32].mxu1 %vm441_vm1, %v8341_v35  ;;  %v19199_v35 = vld [vmem:[%s19903_s10 + $0x20] sm:$0xff] }
 0x5fb   : > { %14986 = vmatpush3.msra.mxu1 %v18805_v24  ;;  %14940 = vmatprep.mubr.msk.f32.mxu1 %vm441_vm1, %v19073_v45  ;;  %v19091_v24 = vld [vmem:[#allocation4 + $0x48] sm:$0xff] }
 0x5fc   : > { %15035 = vmatprep.subr.mxu1 %v19070_v29 }
 0x5fe   : > { %14941 = vmatmul.mubr.msk.f32.gmra.mrb[34].mxu1 %vm441_vm1, %v19079_v20 }
 0x5ff   : > { %14943 = vmatprep.mubr.msk.f32.mxu1 %vm441_vm1, %v19083_v42 }
 0x602   : > { %14944 = vmatmul.mubr.msk.f32.gmra.mrb[36].mxu1 %vm441_vm1, %v19087_v22 }
 0x603   : > { %14946 = vmatprep.mubr.msk.f32.mxu1 %vm441_vm1, %v19091_v24 }
 0x606   : > { %14947 = vmatmul.mubr.msk.f32.gmra.mrb[38].mxu1 %vm441_vm1, %v19095_v21 }
 0x607   : > { %14949 = vmatprep.mubr.msk.f32.mxu1 %vm441_vm1, %v19099_v38 }
 0x60a   : > { %14950 = vmatmul.mubr.msk.f32.gmra.mrb[40].mxu1 %vm441_vm1, %v19103_v54 }
 0x60b   : > { %14952 = vmatprep.mubr.msk.f32.mxu1 %vm441_vm1, %v19107_v61 }
 0x60e   : > { %14953 = vmatmul.mubr.msk.f32.gmra.mrb[42].mxu1 %vm441_vm1, %v19111_v46 }
 0x60f   : > { %14955 = vmatprep.mubr.msk.f32.mxu1 %vm441_vm1, %v19115_v59 }
 0x612   : > { %14956 = vmatmul.mubr.msk.f32.gmra.mrb[44].mxu1 %vm441_vm1, %v19119_v23 }
 0x613   : > { %14958 = vmatprep.mubr.msk.f32.mxu1 %vm441_vm1, %v19123_v44 }
 0x616   : > { %14959 = vmatmul.mubr.msk.f32.gmra.mrb[46].mxu1 %vm441_vm1, %v19127_v3 }
 0x617   : > { %14961 = vmatprep.mubr.msk.f32.mxu1 %vm441_vm1, %v19131_v60 }
 0x61a   : > { %14962 = vmatmul.mubr.msk.f32.gmra.mrb[48].mxu1 %vm441_vm1, %v19135_v33 }
 0x61b   : > { %14964 = vmatprep.mubr.msk.f32.mxu1 %vm441_vm1, %v19139_v56 }
 0x61e   : > { %14965 = vmatmul.mubr.msk.f32.gmra.mrb[50].mxu1 %vm441_vm1, %v19143_v9 }
 0x61f   : > { %14967 = vmatprep.mubr.msk.f32.mxu1 %vm441_vm1, %v19147_v27 }
 0x622   : > { %14968 = vmatmul.mubr.msk.f32.gmra.mrb[52].mxu1 %vm441_vm1, %v19151_v55 }
 0x623   : > { %14970 = vmatprep.mubr.msk.f32.mxu1 %vm441_vm1, %v19155_v13 }
 0x626   : > { %14971 = vmatmul.mubr.msk.f32.gmra.mrb[54].mxu1 %vm441_vm1, %v19159_v47 }
 0x627   : > { %14973 = vmatprep.mubr.msk.f32.mxu1 %vm441_vm1, %v19163_v25 }
 0x62a   : > { %14974 = vmatmul.mubr.msk.f32.gmra.mrb[56].mxu1 %vm441_vm1, %v19167_v7 }
 0x62b   : > { %14976 = vmatprep.mubr.msk.f32.mxu1 %vm441_vm1, %v19171_v31 }
 0x62e   : > { %14977 = vmatmul.mubr.msk.f32.gmra.mrb[58].mxu1 %vm441_vm1, %v19175_v15 }
 0x62f   : > { %14979 = vmatprep.mubr.msk.f32.mxu1 %vm441_vm1, %v19179_v36 }
 0x632   : > { %14980 = vmatmul.mubr.msk.f32.gmra.mrb[60].mxu1 %vm441_vm1, %v19183_v5 }
 0x633   : > { %14982 = vmatprep.mubr.msk.f32.mxu1 %vm441_vm1, %v19187_v50 }
 0x636   : > { %14983 = vmatmul.mubr.msk.f32.gmra.mrb[62].mxu1 %vm441_vm1, %v19191_v12 }
 0x637   : > { %14987 = vmatprep.mubr.msk.f32.mxu1 %vm441_vm1, %v9048_v57  ;;  %v19212_v57 = vld [vmem:[#allocation4 + $0x32] sm:$0xff] }
 0x638   : > { %20374 = vst [vmem:[#allocation75_spill] sm:$0xff] %v19212_v57 }
 0x63a   : > { %14988 = vmatmul.mubr.msk.f32.vlgmr.msra.gmra.mrb[32].mxu1 %vm441_vm1, %v9049_v51  ;;  %v19216_v51 = vld [vmem:[#allocation4 + $0x3a] sm:$0xff] }
 0x63b   : > { %15036 = vmatpush3.msra.mxu1 %v19070_v29  ;;  %14990 = vmatprep.mubr.msk.f32.mxu1 %vm441_vm1, %v19202_v40  ;;  %20375 = vst [vmem:[#allocation76_spill] sm:$0xff] %v19216_v51  ;;  %v19220_v29 = vld [vmem:[#allocation4 + $0x4a] sm:$0xff]  ;;  %v19224_v40 = vld [vmem:[#allocation4 + $0x52] sm:$0xff] }
 0x63c   : > { %15085 = vmatprep.subr.mxu1 %v19199_v35  ;;  %20376 = vst [vmem:[#allocation77_spill] sm:$0xff] %v19220_v29  ;;  %20377 = vst [vmem:[#allocation78_spill] sm:$0xff] %v19224_v40 }
 0x63e   : > { %14991 = vmatmul.mubr.msk.f32.gmra.mrb[34].mxu1 %vm441_vm1, %v19208_v28  ;;  %v19228_v28 = vld [vmem:[#allocation4 + $0x62] sm:$0xff] }
 0x63f   : > { %14993 = vmatprep.mubr.msk.f32.mxu1 %vm441_vm1, %v19212_v57  ;;  %20378 = vst [vmem:[#allocation79_spill] sm:$0xff] %v19228_v28  ;;  %v19232_v57 = vld [vmem:[#allocation4 + $0x6a] sm:$0xff] }
 0x640   : > { %20379 = vst [vmem:[#allocation80_spill] sm:$0xff] %v19232_v57 }
 0x642   : > { %14994 = vmatmul.mubr.msk.f32.gmra.mrb[36].mxu1 %vm441_vm1, %v19216_v51  ;;  %v19236_v51 = vld [vmem:[#allocation4 + $0x7a] sm:$0xff] }
 0x643   : > { %14996 = vmatprep.mubr.msk.f32.mxu1 %vm441_vm1, %v19220_v29  ;;  %20380 = vst [vmem:[#allocation81_spill] sm:$0xff] %v19236_v51  ;;  %v19240_v29 = vld [vmem:[#allocation4 + $0x82] sm:$0xff] }
 0x644   : > { %20381 = vst [vmem:[#allocation82_spill] sm:$0xff] %v19240_v29 }
 0x646   : > { %14997 = vmatmul.mubr.msk.f32.gmra.mrb[38].mxu1 %vm441_vm1, %v19224_v40  ;;  %v19244_v40 = vld [vmem:[#allocation4 + $0x92] sm:$0xff] }
 0x647   : > { %14999 = vmatprep.mubr.msk.f32.mxu1 %vm441_vm1, %v19228_v28  ;;  %20382 = vst [vmem:[#allocation83_spill] sm:$0xff] %v19244_v40  ;;  %v19248_v28 = vld [vmem:[#allocation4 + $0x9a] sm:$0xff] }
 0x648   : > { %20383 = vst [vmem:[#allocation84_spill] sm:$0xff] %v19248_v28 }
 0x64a   : > { %15000 = vmatmul.mubr.msk.f32.gmra.mrb[40].mxu1 %vm441_vm1, %v19232_v57  ;;  %v19252_v57 = vld [vmem:[#allocation4 + $0xaa] sm:$0xff] }
 0x64b   : > { %15002 = vmatprep.mubr.msk.f32.mxu1 %vm441_vm1, %v19236_v51  ;;  %20384 = vst [vmem:[#allocation85_spill] sm:$0xff] %v19252_v57  ;;  %v19256_v51 = vld [vmem:[#allocation4 + $0xb2] sm:$0xff] }
 0x64c   : > { %20385 = vst [vmem:[#allocation86_spill] sm:$0xff] %v19256_v51 }
 0x64e   : > { %15003 = vmatmul.mubr.msk.f32.gmra.mrb[42].mxu1 %vm441_vm1, %v19240_v29  ;;  %v19260_v29 = vld [vmem:[#allocation4 + $0xc2] sm:$0xff] }
 0x64f   : > { %15005 = vmatprep.mubr.msk.f32.mxu1 %vm441_vm1, %v19244_v40  ;;  %20386 = vst [vmem:[#allocation87_spill] sm:$0xff] %v19260_v29  ;;  %v19264_v40 = vld [vmem:[#allocation4 + $0xca] sm:$0xff] }
 0x650   : > { %20387 = vst [vmem:[#allocation88_spill] sm:$0xff] %v19264_v40 }
 0x652   : > { %15006 = vmatmul.mubr.msk.f32.gmra.mrb[44].mxu1 %vm441_vm1, %v19248_v28  ;;  %v19268_v28 = vld [vmem:[#allocation4 + $0xda] sm:$0xff] }
 0x653   : > { %15008 = vmatprep.mubr.msk.f32.mxu1 %vm441_vm1, %v19252_v57  ;;  %20388 = vst [vmem:[#allocation95_spill] sm:$0xff] %v19268_v28  ;;  %v19272_v57 = vld [vmem:[#allocation4 + $0xe2] sm:$0xff] }
 0x654   : > { %20389 = vst [vmem:[#allocation97_spill] sm:$0xff] %v19272_v57 }
 0x656   : > { %15009 = vmatmul.mubr.msk.f32.gmra.mrb[46].mxu1 %vm441_vm1, %v19256_v51  ;;  %v19276_v51 = vld [vmem:[#allocation4 + $0xf2] sm:$0xff] }
 0x657   : > { %15011 = vmatprep.mubr.msk.f32.mxu1 %vm441_vm1, %v19260_v29  ;;  %20390 = vst [vmem:[#allocation89_spill] sm:$0xff] %v19276_v51  ;;  %v19280_v29 = vld [vmem:[#allocation4 + $0xfa] sm:$0xff] }
 0x658   : > { %20391 = vst [vmem:[#allocation90_spill] sm:$0xff] %v19280_v29 }
 0x65a   : > { %15012 = vmatmul.mubr.msk.f32.gmra.mrb[48].mxu1 %vm441_vm1, %v19264_v40  ;;  %v19284_v40 = vld [vmem:[#allocation4 + $0x10a] sm:$0xff] }
 0x65b   : > { %15014 = vmatprep.mubr.msk.f32.mxu1 %vm441_vm1, %v19268_v28  ;;  %20392 = vst [vmem:[#allocation91_spill] sm:$0xff] %v19284_v40  ;;  %v19288_v28 = vld [vmem:[#allocation4 + $0x112] sm:$0xff] }
 0x65c   : > { %20393 = vst [vmem:[#allocation92_spill] sm:$0xff] %v19288_v28 }
 0x65e   : > { %15015 = vmatmul.mubr.msk.f32.gmra.mrb[50].mxu1 %vm441_vm1, %v19272_v57  ;;  %v19292_v57 = vld [vmem:[#allocation4 + $0x122] sm:$0xff] }
 0x65f   : > { %15017 = vmatprep.mubr.msk.f32.mxu1 %vm441_vm1, %v19276_v51  ;;  %20394 = vst [vmem:[#allocation93_spill] sm:$0xff] %v19292_v57  ;;  %v19296_v51 = vld [vmem:[#allocation4 + $0x12a] sm:$0xff] }
 0x660   : > { %20395 = vst [vmem:[#allocation94_spill] sm:$0xff] %v19296_v51 }
 0x662   : > { %15018 = vmatmul.mubr.msk.f32.gmra.mrb[52].mxu1 %vm441_vm1, %v19280_v29  ;;  %v19300_v29 = vld [vmem:[#allocation4 + $0x13a] sm:$0xff] }
 0x663   : > { %15020 = vmatprep.mubr.msk.f32.mxu1 %vm441_vm1, %v19284_v40  ;;  %20396 = vst [vmem:[#allocation96_spill] sm:$0xff] %v19300_v29  ;;  %v19304_v40 = vld [vmem:[#allocation4 + $0x142] sm:$0xff] }
 0x666   : > { %15021 = vmatmul.mubr.msk.f32.gmra.mrb[54].mxu1 %vm441_vm1, %v19288_v28  ;;  %v19308_v28 = vld [vmem:[#allocation4 + $0x152] sm:$0xff] }
 0x667   : > { %15023 = vmatprep.mubr.msk.f32.mxu1 %vm441_vm1, %v19292_v57  ;;  %20397 = vst [vmem:[#allocation98_spill] sm:$0xff] %v19308_v28  ;;  %v19312_v57 = vld [vmem:[#allocation4 + $0x15a] sm:$0xff] }
 0x66a   : > { %15024 = vmatmul.mubr.msk.f32.gmra.mrb[56].mxu1 %vm441_vm1, %v19296_v51  ;;  %v19316_v51 = vld [vmem:[#allocation4 + $0x16a] sm:$0xff] }
 0x66b   : > { %15026 = vmatprep.mubr.msk.f32.mxu1 %vm441_vm1, %v19300_v29  ;;  %20398 = vst [vmem:[#allocation99_spill] sm:$0xff] %v19316_v51  ;;  %v19320_v29 = vld [vmem:[#allocation4 + $0x172] sm:$0xff] }
 0x66e   : > { %15027 = vmatmul.mubr.msk.f32.gmra.mrb[58].mxu1 %vm441_vm1, %v19304_v40 }
 0x66f   : > { %15029 = vmatprep.mubr.msk.f32.mxu1 %vm441_vm1, %v19308_v28  ;;  %v10238_v28 = vld [vmem:[%s19903_s10 + $0x28] sm:$0xff] }
 0x672   : > { %15030 = vmatmul.mubr.msk.f32.gmra.mrb[60].mxu1 %vm441_vm1, %v19312_v57 }
 0x673   : > { %15032 = vmatprep.mubr.msk.f32.mxu1 %vm441_vm1, %v19316_v51 }
 0x676   : > { %15033 = vmatmul.mubr.msk.f32.gmra.mrb[62].mxu1 %vm441_vm1, %v19320_v29 }
 0x677   : > { %15037 = vmatprep.mubr.msk.f32.mxu1 %vm441_vm1, %v19073_v45  ;;  %v19388_v45 = vld [vmem:[#allocation4 + $0x180] sm:$0xff] }
 0x67a   : > { %15038 = vmatmul.mubr.msk.f32.vlgmr.msra.gmra.mrb[32].mxu1 %vm441_vm1, %v19079_v20  ;;  %v19392_v20 = vld [vmem:[#allocation4 + $0x188] sm:$0xff] }
 0x67b   : > { %15086 = vmatpush3.msra.mxu1 %v19199_v35  ;;  %15040 = vmatprep.mubr.msk.f32.mxu1 %vm441_vm1, %v19083_v42  ;;  %v10625_v35 = vld [vmem:[%s19903_s10 + $0x30] sm:$0xff] }
 0x67c   : > { %15135 = vmatprep.subr.mxu1 %v10238_v28 }
 0x67e   : > { %15041 = vmatmul.mubr.msk.f32.gmra.mrb[34].mxu1 %vm441_vm1, %v19087_v22 }
 0x67f   : > { %15043 = vmatprep.mubr.msk.f32.mxu1 %vm441_vm1, %v19091_v24 }
 0x682   : > { %15044 = vmatmul.mubr.msk.f32.gmra.mrb[36].mxu1 %vm441_vm1, %v19095_v21 }
 0x683   : > { %15046 = vmatprep.mubr.msk.f32.mxu1 %vm441_vm1, %v19099_v38 }
 0x686   : > { %15047 = vmatmul.mubr.msk.f32.gmra.mrb[38].mxu1 %vm441_vm1, %v19103_v54 }
 0x687   : > { %15049 = vmatprep.mubr.msk.f32.mxu1 %vm441_vm1, %v19107_v61 }
 0x68a   : > { %15050 = vmatmul.mubr.msk.f32.gmra.mrb[40].mxu1 %vm441_vm1, %v19111_v46 }
 0x68b   : > { %15052 = vmatprep.mubr.msk.f32.mxu1 %vm441_vm1, %v19115_v59 }
 0x68e   : > { %15053 = vmatmul.mubr.msk.f32.gmra.mrb[42].mxu1 %vm441_vm1, %v19119_v23 }
 0x68f   : > { %15055 = vmatprep.mubr.msk.f32.mxu1 %vm441_vm1, %v19123_v44 }
 0x692   : > { %15056 = vmatmul.mubr.msk.f32.gmra.mrb[44].mxu1 %vm441_vm1, %v19127_v3 }
 0x693   : > { %15058 = vmatprep.mubr.msk.f32.mxu1 %vm441_vm1, %v19131_v60 }
 0x696   : > { %15059 = vmatmul.mubr.msk.f32.gmra.mrb[46].mxu1 %vm441_vm1, %v19135_v33 }
 0x697   : > { %15061 = vmatprep.mubr.msk.f32.mxu1 %vm441_vm1, %v19139_v56 }
 0x69a   : > { %15062 = vmatmul.mubr.msk.f32.gmra.mrb[48].mxu1 %vm441_vm1, %v19143_v9 }
 0x69b   : > { %15064 = vmatprep.mubr.msk.f32.mxu1 %vm441_vm1, %v19147_v27 }
 0x69e   : > { %15065 = vmatmul.mubr.msk.f32.gmra.mrb[50].mxu1 %vm441_vm1, %v19151_v55 }
 0x69f   : > { %15067 = vmatprep.mubr.msk.f32.mxu1 %vm441_vm1, %v19155_v13 }
 0x6a2   : > { %15068 = vmatmul.mubr.msk.f32.gmra.mrb[52].mxu1 %vm441_vm1, %v19159_v47 }
 0x6a3   : > { %15070 = vmatprep.mubr.msk.f32.mxu1 %vm441_vm1, %v19163_v25 }
 0x6a6   : > { %15071 = vmatmul.mubr.msk.f32.gmra.mrb[54].mxu1 %vm441_vm1, %v19167_v7 }
 0x6a7   : > { %15073 = vmatprep.mubr.msk.f32.mxu1 %vm441_vm1, %v19171_v31 }
 0x6aa   : > { %15074 = vmatmul.mubr.msk.f32.gmra.mrb[56].mxu1 %vm441_vm1, %v19175_v15 }
 0x6ab   : > { %15076 = vmatprep.mubr.msk.f32.mxu1 %vm441_vm1, %v19179_v36 }
 0x6ae   : > { %15077 = vmatmul.mubr.msk.f32.gmra.mrb[58].mxu1 %vm441_vm1, %v19183_v5 }
 0x6af   : > { %15079 = vmatprep.mubr.msk.f32.mxu1 %vm441_vm1, %v19187_v50 }
 0x6b2   : > { %15080 = vmatmul.mubr.msk.f32.gmra.mrb[60].mxu1 %vm441_vm1, %v19191_v12 }
 0x6b3   : > { %15082 = vmatprep.mubr.msk.f32.mxu1 %vm441_vm1, %v19388_v45 }
 0x6b6   : > { %15083 = vmatmul.mubr.msk.f32.gmra.mrb[62].mxu1 %vm441_vm1, %v19392_v20 }
 0x6b7   : > { %15087 = vmatprep.mubr.msk.f32.mxu1 %vm441_vm1, %v18845_v53  ;;  %v20399_v53 = vld [vmem:[#allocation71_spill] sm:$0xff] }
 0x6ba   : > { %15088 = vmatmul.mubr.msk.f32.vlgmr.msra.gmra.mrb[32].mxu1 %vm441_vm1, %v18851_v43  ;;  %v20400_v43 = vld [vmem:[#allocation72_spill] sm:$0xff] }
 0x6bb   : > { %15136 = vmatpush3.msra.mxu1 %v10238_v28  ;;  %15090 = vmatprep.mubr.msk.f32.mxu1 %vm441_vm1, %v18861_v62  ;;  %v19459_v62 = vld [vmem:[#allocation4 + $0x181] sm:$0xff] }
 0x6bc   : > { %15185 = vmatprep.subr.mxu1 %v10625_v35  ;;  %v20412_v28 = vld [vmem:[#allocation84_spill] sm:$0xff] }
 0x6be   : > { %15091 = vmatmul.mubr.msk.f32.gmra.mrb[34].mxu1 %vm441_vm1, %v18867_v34  ;;  %v19463_v34 = vld [vmem:[#allocation4 + $0x189] sm:$0xff] }
 0x6bf   : > { %15093 = vmatprep.mubr.msk.f32.mxu1 %vm441_vm1, %v18877_v4  ;;  %v20401_v4 = vld [vmem:[#allocation73_spill] sm:$0xff] }
 0x6c2   : > { %15094 = vmatmul.mubr.msk.f32.gmra.mrb[36].mxu1 %vm441_vm1, %v18883_v32  ;;  %v11011_v32 = vld [vmem:[%s19903_s10 + $0x38] sm:$0xff] }
 0x6c3   : > { %15096 = vmatprep.mubr.msk.f32.mxu1 %vm441_vm1, %v18893_v52  ;;  %v20402_v52 = vld [vmem:[#allocation74_spill] sm:$0xff] }
 0x6c6   : > { %15097 = vmatmul.mubr.msk.f32.gmra.mrb[38].mxu1 %vm441_vm1, %v18899_v30  ;;  %v20403_v30 = vld [vmem:[#allocation75_spill] sm:$0xff] }
 0x6c7   : > { %15099 = vmatprep.mubr.msk.f32.mxu1 %vm441_vm1, %v18909_v8  ;;  %v20404_v8 = vld [vmem:[#allocation76_spill] sm:$0xff] }
 0x6ca   : > { %15100 = vmatmul.mubr.msk.f32.gmra.mrb[40].mxu1 %vm441_vm1, %v18915_v49  ;;  %v20405_v49 = vld [vmem:[#allocation77_spill] sm:$0xff] }
 0x6cb   : > { %15102 = vmatprep.mubr.msk.f32.mxu1 %vm441_vm1, %v18925_v63  ;;  %v20406_v63 = vld [vmem:[#allocation78_spill] sm:$0xff] }
 0x6ce   : > { %15103 = vmatmul.mubr.msk.f32.gmra.mrb[42].mxu1 %vm441_vm1, %v18931_v58  ;;  %v20407_v58 = vld [vmem:[#allocation79_spill] sm:$0xff] }
 0x6cf   : > { %15105 = vmatprep.mubr.msk.f32.mxu1 %vm441_vm1, %v18941_v48  ;;  %v20408_v48 = vld [vmem:[#allocation80_spill] sm:$0xff] }
 0x6d2   : > { %15106 = vmatmul.mubr.msk.f32.gmra.mrb[44].mxu1 %vm441_vm1, %v18947_v41  ;;  %v20409_v41 = vld [vmem:[#allocation81_spill] sm:$0xff] }
 0x6d3   : > { %15108 = vmatprep.mubr.msk.f32.mxu1 %vm441_vm1, %v18957_v1  ;;  %v20410_v1 = vld [vmem:[#allocation82_spill] sm:$0xff] }
 0x6d6   : > { %15109 = vmatmul.mubr.msk.f32.gmra.mrb[46].mxu1 %vm441_vm1, %v18963_v10  ;;  %v20411_v10 = vld [vmem:[#allocation83_spill] sm:$0xff] }
 0x6d7   : > { %15111 = vmatprep.mubr.msk.f32.mxu1 %vm441_vm1, %v18973_v16 }
 0x6da   : > { %15112 = vmatmul.mubr.msk.f32.gmra.mrb[48].mxu1 %vm441_vm1, %v18979_v18 }
 0x6db   : > { %15114 = vmatprep.mubr.msk.f32.mxu1 %vm441_vm1, %v18989_v37 }
 0x6de   : > { %15115 = vmatmul.mubr.msk.f32.gmra.mrb[50].mxu1 %vm441_vm1, %v18995_v14 }
 0x6df   : > { %15117 = vmatprep.mubr.msk.f32.mxu1 %vm441_vm1, %v19005_v17 }
 0x6e2   : > { %15118 = vmatmul.mubr.msk.f32.gmra.mrb[52].mxu1 %vm441_vm1, %v19011_v39 }
 0x6e3   : > { %15120 = vmatprep.mubr.msk.f32.mxu1 %vm441_vm1, %v19021_v2 }
 0x6e6   : > { %15121 = vmatmul.mubr.msk.f32.gmra.mrb[54].mxu1 %vm441_vm1, %v19027_v19 }
 0x6e7   : > { %15123 = vmatprep.mubr.msk.f32.mxu1 %vm441_vm1, %v19037_v26 }
 0x6ea   : > { %15124 = vmatmul.mubr.msk.f32.gmra.mrb[56].mxu1 %vm441_vm1, %v19042_v11 }
 0x6eb   : > { %15126 = vmatprep.mubr.msk.f32.mxu1 %vm441_vm1, %v19049_v6 }
 0x6ee   : > { %15127 = vmatmul.mubr.msk.f32.gmra.mrb[58].mxu1 %vm441_vm1, %v19054_v0 }
 0x6ef   : > { %15129 = vmatprep.mubr.msk.f32.mxu1 %vm441_vm1, %v20399_v53 }
 0x6f2   : > { %15130 = vmatmul.mubr.msk.f32.gmra.mrb[60].mxu1 %vm441_vm1, %v20400_v43 }
 0x6f3   : > { %15132 = vmatprep.mubr.msk.f32.mxu1 %vm441_vm1, %v19459_v62 }
 0x6f6   : > { %15133 = vmatmul.mubr.msk.f32.gmra.mrb[62].mxu1 %vm441_vm1, %v19463_v34 }
 0x6f7   : > { %15137 = vmatprep.mubr.msk.f32.mxu1 %vm441_vm1, %v20401_v4  ;;  %v20414_v4 = vld [vmem:[#allocation86_spill] sm:$0xff] }
 0x6fa   : > { %15138 = vmatmul.mubr.msk.f32.vlgmr.msra.gmra.mrb[32].mxu1 %vm441_vm1, %v20402_v52  ;;  %v20415_v52 = vld [vmem:[#allocation87_spill] sm:$0xff] }
 0x6fb   : > { %15186 = vmatpush3.msra.mxu1 %v10625_v35  ;;  %15140 = vmatprep.mubr.msk.f32.mxu1 %vm441_vm1, %v20403_v30  ;;  %v20413_v35 = vld [vmem:[#allocation85_spill] sm:$0xff] }
 0x6fc   : > { %15235 = vmatprep.subr.mxu1 %v11011_v32 }
 0x6fe   : > { %15141 = vmatmul.mubr.msk.f32.gmra.mrb[34].mxu1 %vm441_vm1, %v20404_v8 }
 0x6ff   : > { %15143 = vmatprep.mubr.msk.f32.mxu1 %vm441_vm1, %v20405_v49 }
 0x702   : > { %15144 = vmatmul.mubr.msk.f32.gmra.mrb[36].mxu1 %vm441_vm1, %v20406_v63 }
 0x703   : > { %15146 = vmatprep.mubr.msk.f32.mxu1 %vm441_vm1, %v20407_v58 }
 0x706   : > { %15147 = vmatmul.mubr.msk.f32.gmra.mrb[38].mxu1 %vm441_vm1, %v20408_v48  ;;  %v20416_v48 = vld [vmem:[#allocation88_spill] sm:$0xff] }
 0x707   : > { %15149 = vmatprep.mubr.msk.f32.mxu1 %vm441_vm1, %v20409_v41  ;;  %v20417_v41 = vld [vmem:[#allocation95_spill] sm:$0xff] }
 0x70a   : > { %15150 = vmatmul.mubr.msk.f32.gmra.mrb[40].mxu1 %vm441_vm1, %v20410_v1  ;;  %v20418_v1 = vld [vmem:[#allocation97_spill] sm:$0xff] }
 0x70b   : > { %15152 = vmatprep.mubr.msk.f32.mxu1 %vm441_vm1, %v20411_v10  ;;  %v20419_v10 = vld [vmem:[#allocation89_spill] sm:$0xff] }
 0x70e   : > { %15153 = vmatmul.mubr.msk.f32.gmra.mrb[42].mxu1 %vm441_vm1, %v20412_v28  ;;  %v20420_v28 = vld [vmem:[#allocation90_spill] sm:$0xff] }
 0x70f   : > { %15155 = vmatprep.mubr.msk.f32.mxu1 %vm441_vm1, %v20413_v35  ;;  %v20421_v35 = vld [vmem:[#allocation91_spill] sm:$0xff] }
 0x712   : > { %15156 = vmatmul.mubr.msk.f32.gmra.mrb[44].mxu1 %vm441_vm1, %v20414_v4  ;;  %v20422_v4 = vld [vmem:[#allocation92_spill] sm:$0xff] }
 0x713   : > { %15158 = vmatprep.mubr.msk.f32.mxu1 %vm441_vm1, %v20415_v52  ;;  %v20423_v52 = vld [vmem:[#allocation93_spill] sm:$0xff] }
 0x716   : > { %15159 = vmatmul.mubr.msk.f32.gmra.mrb[46].mxu1 %vm441_vm1, %v20416_v48  ;;  %v20424_v48 = vld [vmem:[#allocation94_spill] sm:$0xff] }
 0x717   : > { %15161 = vmatprep.mubr.msk.f32.mxu1 %vm441_vm1, %v20417_v41  ;;  %v20425_v41 = vld [vmem:[#allocation96_spill] sm:$0xff] }
 0x71a   : > { %15162 = vmatmul.mubr.msk.f32.gmra.mrb[48].mxu1 %vm441_vm1, %v20418_v1 }
 0x71b   : > { %15164 = vmatprep.mubr.msk.f32.mxu1 %vm441_vm1, %v20419_v10  ;;  %v20426_v10 = vld [vmem:[#allocation98_spill] sm:$0xff] }
 0x71e   : > { %15165 = vmatmul.mubr.msk.f32.gmra.mrb[50].mxu1 %vm441_vm1, %v20420_v28 }
 0x71f   : > { %15167 = vmatprep.mubr.msk.f32.mxu1 %vm441_vm1, %v20421_v35 }
 0x722   : > { %15168 = vmatmul.mubr.msk.f32.gmra.mrb[52].mxu1 %vm441_vm1, %v20422_v4 }
 0x723   : > { %15170 = vmatprep.mubr.msk.f32.mxu1 %vm441_vm1, %v20423_v52  ;;  %v19530_v52 = vld [vmem:[#allocation4 + $0x182] sm:$0xff] }
 0x726   : > { %15171 = vmatmul.mubr.msk.f32.gmra.mrb[54].mxu1 %vm441_vm1, %v20424_v48 }
 0x727   : > { %15173 = vmatprep.mubr.msk.f32.mxu1 %vm441_vm1, %v20425_v41  ;;  %v19534_v41 = vld [vmem:[#allocation4 + $0x18a] sm:$0xff] }
 0x72a   : > { %15174 = vmatmul.mubr.msk.f32.gmra.mrb[56].mxu1 %vm441_vm1, %v19304_v40 }
 0x72b   : > { %15176 = vmatprep.mubr.msk.f32.mxu1 %vm441_vm1, %v20426_v10 }
 0x72e   : > { %15177 = vmatmul.mubr.msk.f32.gmra.mrb[58].mxu1 %vm441_vm1, %v19312_v57 }
 0x72f   : > { %15179 = vmatprep.mubr.msk.f32.mxu1 %vm441_vm1, %v19316_v51  ;;  %v11397_v51 = vld [vmem:[%s19903_s10 + $0x40] sm:$0xff] }
 0x732   : > { %15180 = vmatmul.mubr.msk.f32.gmra.mrb[60].mxu1 %vm441_vm1, %v19320_v29 }
 0x733   : > { %15182 = vmatprep.mubr.msk.f32.mxu1 %vm441_vm1, %v19530_v52 }
 0x736   : > { %15183 = vmatmul.mubr.msk.f32.gmra.mrb[62].mxu1 %vm441_vm1, %v19534_v41 }
 0x737   : > { %15187 = vmatprep.mubr.msk.f32.mxu1 %vm441_vm1, %v19083_v42  ;;  %v10623_v42 = vld [vmem:[#allocation4 + $0x198] sm:$0xff] }
 0x73a   : > { %15188 = vmatmul.mubr.msk.f32.vlgmr.msra.gmra.mrb[32].mxu1 %vm441_vm1, %v19087_v22  ;;  %v10624_v22 = vld [vmem:[#allocation4 + $0x1a0] sm:$0xff] }
 0x73b   : > { %15236 = vmatpush3.msra.mxu1 %v11011_v32  ;;  %15190 = vmatprep.mubr.msk.f32.mxu1 %vm441_vm1, %v19091_v24  ;;  %v10979_v24 = vld [vmem:[#allocation4 + $0x31] sm:$0xff] }
 0x73c   : > { %15285 = vmatprep.subr.mxu1 %v11397_v51  ;;  %v20442_v32 = vld [vmem:[#allocation65_spill] sm:$0xff] }
 0x73e   : > { %15191 = vmatmul.mubr.msk.f32.gmra.mrb[34].mxu1 %vm441_vm1, %v19095_v21  ;;  %v10980_v21 = vld [vmem:[#allocation4 + $0x39] sm:$0xff] }
 0x73f   : > { %15193 = vmatprep.mubr.msk.f32.mxu1 %vm441_vm1, %v19099_v38  ;;  %v10981_v38 = vld [vmem:[#allocation4 + $0x49] sm:$0xff] }
 0x742   : > { %15194 = vmatmul.mubr.msk.f32.gmra.mrb[36].mxu1 %vm441_vm1, %v19103_v54  ;;  %v10982_v54 = vld [vmem:[#allocation4 + $0x51] sm:$0xff] }
 0x743   : > { %15196 = vmatprep.mubr.msk.f32.mxu1 %vm441_vm1, %v19107_v61  ;;  %v10983_v61 = vld [vmem:[#allocation4 + $0x61] sm:$0xff] }
 0x746   : > { %15197 = vmatmul.mubr.msk.f32.gmra.mrb[38].mxu1 %vm441_vm1, %v19111_v46  ;;  %v10984_v46 = vld [vmem:[#allocation4 + $0x69] sm:$0xff] }
 0x747   : > { %15199 = vmatprep.mubr.msk.f32.mxu1 %vm441_vm1, %v19115_v59  ;;  %v10985_v59 = vld [vmem:[#allocation4 + $0x79] sm:$0xff] }
 0x74a   : > { %15200 = vmatmul.mubr.msk.f32.gmra.mrb[40].mxu1 %vm441_vm1, %v19119_v23  ;;  %v10986_v23 = vld [vmem:[#allocation4 + $0x81] sm:$0xff] }
 0x74b   : > { %15202 = vmatprep.mubr.msk.f32.mxu1 %vm441_vm1, %v19123_v44  ;;  %v10987_v44 = vld [vmem:[#allocation4 + $0x91] sm:$0xff] }
 0x74e   : > { %15203 = vmatmul.mubr.msk.f32.gmra.mrb[42].mxu1 %vm441_vm1, %v19127_v3  ;;  %v10988_v3 = vld [vmem:[#allocation4 + $0x99] sm:$0xff] }
 0x74f   : > { %15205 = vmatprep.mubr.msk.f32.mxu1 %vm441_vm1, %v19131_v60  ;;  %v10989_v60 = vld [vmem:[#allocation4 + $0xa9] sm:$0xff] }
 0x752   : > { %15206 = vmatmul.mubr.msk.f32.gmra.mrb[44].mxu1 %vm441_vm1, %v19135_v33  ;;  %v10990_v33 = vld [vmem:[#allocation4 + $0xb1] sm:$0xff] }
 0x753   : > { %15208 = vmatprep.mubr.msk.f32.mxu1 %vm441_vm1, %v19139_v56  ;;  %v10991_v56 = vld [vmem:[#allocation4 + $0xc1] sm:$0xff] }
 0x756   : > { %15209 = vmatmul.mubr.msk.f32.gmra.mrb[46].mxu1 %vm441_vm1, %v19143_v9  ;;  %v10992_v9 = vld [vmem:[#allocation4 + $0xc9] sm:$0xff] }
 0x757   : > { %15211 = vmatprep.mubr.msk.f32.mxu1 %vm441_vm1, %v19147_v27  ;;  %v20437_v27 = vld [vmem:[#allocation89_spill] sm:$0xff] }
 0x75a   : > { %15212 = vmatmul.mubr.msk.f32.gmra.mrb[48].mxu1 %vm441_vm1, %v19151_v55  ;;  %v20438_v55 = vld [vmem:[#allocation93_spill] sm:$0xff] }
 0x75b   : > { %15214 = vmatprep.mubr.msk.f32.mxu1 %vm441_vm1, %v19155_v13  ;;  %v20439_v13 = vld [vmem:[#allocation96_spill] sm:$0xff] }
 0x75e   : > { %15215 = vmatmul.mubr.msk.f32.gmra.mrb[50].mxu1 %vm441_vm1, %v19159_v47  ;;  %v20440_v47 = vld [vmem:[#allocation99_spill] sm:$0xff] }
 0x75f   : > { %15217 = vmatprep.mubr.msk.f32.mxu1 %vm441_vm1, %v19163_v25  ;;  %v11395_v25 = vld [vmem:[#allocation4 + $0x19a] sm:$0xff] }
 0x762   : > { %15218 = vmatmul.mubr.msk.f32.gmra.mrb[52].mxu1 %vm441_vm1, %v19167_v7  ;;  %v19716_v7 = vld [vmem:[%s19904_s11] ss:$0 sm:$0xff] }
 0x763   : > { %15220 = vmatprep.mubr.msk.f32.mxu1 %vm441_vm1, %v19171_v31 }
 0x766   : > { %15221 = vmatmul.mubr.msk.f32.gmra.mrb[54].mxu1 %vm441_vm1, %v19175_v15  ;;  %v19721_v15 = vld [vmem:[%s19905_s12] ss:$0 sm:$0xff] }
 0x767   : > { %15223 = vmatprep.mubr.msk.f32.mxu1 %vm441_vm1, %v19179_v36 }
 0x76a   : > { %15224 = vmatmul.mubr.msk.f32.gmra.mrb[56].mxu1 %vm441_vm1, %v19183_v5 }
 0x76b   : > { %15226 = vmatprep.mubr.msk.f32.mxu1 %vm441_vm1, %v19187_v50 }
 0x76e   : > { %15227 = vmatmul.mubr.msk.f32.gmra.mrb[58].mxu1 %vm441_vm1, %v19191_v12 }
 0x76f   : > { %15229 = vmatprep.mubr.msk.f32.mxu1 %vm441_vm1, %v19388_v45 }
 0x772   : > { %15230 = vmatmul.mubr.msk.f32.gmra.mrb[60].mxu1 %vm441_vm1, %v19392_v20 }
 0x773   : > { %15232 = vmatprep.mubr.msk.f32.mxu1 %vm441_vm1, %v10623_v42 }
 0x776   : > { %15233 = vmatmul.mubr.msk.f32.gmra.mrb[62].mxu1 %vm441_vm1, %v10624_v22 }
 0x777   : > { %15237 = vmatprep.mubr.msk.f32.mxu1 %vm441_vm1, %v10979_v24 }
 0x77a   : > { %15238 = vmatmul.mubr.msk.f32.vlgmr.msra.gmra.mrb[32].mxu1 %vm441_vm1, %v10980_v21 }
 0x77b   : > { %15286 = vmatpush3.msra.mxu1 %v11397_v51  ;;  %15240 = vmatprep.mubr.msk.f32.mxu1 %vm441_vm1, %v10981_v38 }
 0x77e   : > { %15241 = vmatmul.mubr.msk.f32.gmra.mrb[34].mxu1 %vm441_vm1, %v10982_v54 }
 0x77f   : > { %15243 = vmatprep.mubr.msk.f32.mxu1 %vm441_vm1, %v10983_v61  ;;  %v20445_v61 = vld [vmem:[#allocation19_spill] sm:$0xff] }
 0x782   : > { %15244 = vmatmul.mubr.msk.f32.gmra.mrb[36].mxu1 %vm441_vm1, %v10984_v46 }
 0x783   : > { %15246 = vmatprep.mubr.msk.f32.mxu1 %vm441_vm1, %v10985_v59 }
 0x786   : > { %15247 = vmatmul.mubr.msk.f32.gmra.mrb[38].mxu1 %vm441_vm1, %v10986_v23 }
 0x787   : > { %15249 = vmatprep.mubr.msk.f32.mxu1 %vm441_vm1, %v10987_v44  ;;  %v20446_v44 = vld [vmem:[#allocation22_spill] sm:$0xff] }
 0x78a   : > { %15250 = vmatmul.mubr.msk.f32.gmra.mrb[40].mxu1 %vm441_vm1, %v10988_v3 }
 0x78b   : > { %15252 = vmatprep.mubr.msk.f32.mxu1 %vm441_vm1, %v10989_v60 }
 0x78e   : > { %15253 = vmatmul.mubr.msk.f32.gmra.mrb[42].mxu1 %vm441_vm1, %v10990_v33 }
 0x78f   : > { %15255 = vmatprep.mubr.msk.f32.mxu1 %vm441_vm1, %v10991_v56 }
 0x792   : > { %15256 = vmatmul.mubr.msk.f32.gmra.mrb[44].mxu1 %vm441_vm1, %v10992_v9 }
 0x793   : > { %15258 = vmatprep.mubr.msk.f32.mxu1 %vm441_vm1, %v18973_v16  ;;  %v11009_v16 = vld [vmem:[#allocation4 + $0x199] sm:$0xff] }
 0x796   : > { %15259 = vmatmul.mubr.msk.f32.gmra.mrb[46].mxu1 %vm441_vm1, %v18979_v18  ;;  %v11010_v18 = vld [vmem:[#allocation4 + $0x1a1] sm:$0xff] }
 0x797   : > { %15261 = vmatprep.mubr.msk.f32.mxu1 %vm441_vm1, %v18989_v37  ;;  %v20427_v37 = vld [vmem:[#allocation80_spill] sm:$0xff] }
 0x79a   : > { %15262 = vmatmul.mubr.msk.f32.gmra.mrb[48].mxu1 %vm441_vm1, %v18995_v14  ;;  %v20428_v14 = vld [vmem:[#allocation81_spill] sm:$0xff] }
 0x79b   : > { %15264 = vmatprep.mubr.msk.f32.mxu1 %vm441_vm1, %v19005_v17  ;;  %v20429_v17 = vld [vmem:[#allocation82_spill] sm:$0xff] }
 0x79e   : > { %15265 = vmatmul.mubr.msk.f32.gmra.mrb[50].mxu1 %vm441_vm1, %v19011_v39  ;;  %v20430_v39 = vld [vmem:[#allocation83_spill] sm:$0xff] }
 0x79f   : > { %15267 = vmatprep.mubr.msk.f32.mxu1 %vm441_vm1, %v19021_v2  ;;  %v20431_v2 = vld [vmem:[#allocation84_spill] sm:$0xff] }
 0x7a2   : > { %15268 = vmatmul.mubr.msk.f32.gmra.mrb[52].mxu1 %vm441_vm1, %v19027_v19  ;;  %v20432_v19 = vld [vmem:[#allocation85_spill] sm:$0xff] }
 0x7a3   : > { %15270 = vmatprep.mubr.msk.f32.mxu1 %vm441_vm1, %v19037_v26  ;;  %v20433_v26 = vld [vmem:[#allocation86_spill] sm:$0xff] }
 0x7a6   : > { %15271 = vmatmul.mubr.msk.f32.gmra.mrb[54].mxu1 %vm441_vm1, %v19042_v11  ;;  %v20434_v11 = vld [vmem:[#allocation87_spill] sm:$0xff] }
 0x7a7   : > { %15273 = vmatprep.mubr.msk.f32.mxu1 %vm441_vm1, %v19049_v6  ;;  %v20435_v6 = vld [vmem:[#allocation88_spill] sm:$0xff] }
 0x7aa   : > { %15274 = vmatmul.mubr.msk.f32.gmra.mrb[56].mxu1 %vm441_vm1, %v19054_v0  ;;  %v20436_v0 = vld [vmem:[#allocation95_spill] sm:$0xff] }
 0x7ab   : > { %15276 = vmatprep.mubr.msk.f32.mxu1 %vm441_vm1, %v20399_v53  ;;  %v20441_v53 = vld [vmem:[#allocation64_spill] sm:$0xff] }
 0x7ae   : > { %15277 = vmatmul.mubr.msk.f32.gmra.mrb[58].mxu1 %vm441_vm1, %v20400_v43 }
 0x7af   : > { %15279 = vmatprep.mubr.msk.f32.mxu1 %vm441_vm1, %v19459_v62 }
 0x7b2   : > { %15280 = vmatmul.mubr.msk.f32.gmra.mrb[60].mxu1 %vm441_vm1, %v19463_v34 }
 0x7b3   : > { %15282 = vmatprep.mubr.msk.f32.mxu1 %vm441_vm1, %v11009_v16 }
 0x7b6   : > { %15283 = vmatmul.mubr.msk.f32.gmra.mrb[62].mxu1 %vm441_vm1, %v11010_v18 }
 0x7b7   : > { %15287 = vmatprep.mubr.msk.f32.mxu1 %vm441_vm1, %v20403_v30 }
 0x7ba   : > { %15288 = vmatmul.mubr.msk.f32.vlgmr.msra.gmra.mrb[32].mxu1 %vm441_vm1, %v20404_v8 }
 0x7bb   : > { %15290 = vmatprep.mubr.msk.f32.mxu1 %vm441_vm1, %v20405_v49 }
 0x7be   : > { %15291 = vmatmul.mubr.msk.f32.gmra.mrb[34].mxu1 %vm441_vm1, %v20406_v63 }
 0x7bf   : > { %15293 = vmatprep.mubr.msk.f32.mxu1 %vm441_vm1, %v20407_v58 }
 0x7c2   : > { %15294 = vmatmul.mubr.msk.f32.gmra.mrb[36].mxu1 %vm441_vm1, %v20427_v37  ;;  %v20447_v37 = vld [vmem:[#allocation23_spill] sm:$0xff] }
 0x7c3   : > { %15296 = vmatprep.mubr.msk.f32.mxu1 %vm441_vm1, %v20428_v14 }
 0x7c6   : > { %15297 = vmatmul.mubr.msk.f32.gmra.mrb[38].mxu1 %vm441_vm1, %v20429_v17 }
 0x7c7   : > { %15299 = vmatprep.mubr.msk.f32.mxu1 %vm441_vm1, %v20430_v39 }
 0x7ca   : > { %15300 = vmatmul.mubr.msk.f32.gmra.mrb[40].mxu1 %vm441_vm1, %v20431_v2  ;;  %v20448_v2 = vld [vmem:[#allocation26_spill] sm:$0xff] }
 0x7cb   : > { %15302 = vmatprep.mubr.msk.f32.mxu1 %vm441_vm1, %v20432_v19 }
 0x7ce   : > { %15303 = vmatmul.mubr.msk.f32.gmra.mrb[42].mxu1 %vm441_vm1, %v20433_v26 }
 0x7cf   : > { %15305 = vmatprep.mubr.msk.f32.mxu1 %vm441_vm1, %v20434_v11 }
 0x7d2   : > { %15306 = vmatmul.mubr.msk.f32.gmra.mrb[44].mxu1 %vm441_vm1, %v20435_v6 }
 0x7d3   : > { %15308 = vmatprep.mubr.msk.f32.mxu1 %vm441_vm1, %v20436_v0 }
 0x7d6   : > { %15309 = vmatmul.mubr.msk.f32.gmra.mrb[46].mxu1 %vm441_vm1, %v20418_v1  ;;  %v20443_v1 = vld [vmem:[#allocation15_spill] sm:$0xff] }
 0x7d7   : > { %15311 = vmatprep.mubr.msk.f32.mxu1 %vm441_vm1, %v20437_v27 }
 0x7da   : > { %15312 = vmatmul.mubr.msk.f32.gmra.mrb[48].mxu1 %vm441_vm1, %v20420_v28 }
 0x7db   : > { %15314 = vmatprep.mubr.msk.f32.mxu1 %vm441_vm1, %v20421_v35 }
 0x7de   : > { %15315 = vmatmul.mubr.msk.f32.gmra.mrb[50].mxu1 %vm441_vm1, %v20422_v4  ;;  %v20444_v4 = vld [vmem:[#allocation18_spill] sm:$0xff] }
 0x7df   : > { %15317 = vmatprep.mubr.msk.f32.mxu1 %vm441_vm1, %v20438_v55 }
 0x7e2   : > { %15318 = vmatmul.mubr.msk.f32.gmra.mrb[52].mxu1 %vm441_vm1, %v20424_v48 }
 0x7e3   : > { %15320 = vmatprep.mubr.msk.f32.mxu1 %vm441_vm1, %v20439_v13  ;;  %v20449_v13 = vld [vmem:[#allocation27_spill] sm:$0xff] }
 0x7e6   : > { %15321 = vmatmul.mubr.msk.f32.gmra.mrb[54].mxu1 %vm441_vm1, %v19304_v40  ;;  %v11396_v40 = vld [vmem:[#allocation4 + $0x1a2] sm:$0xff] }
 0x7e7   : > { %15323 = vmatprep.mubr.msk.f32.mxu1 %vm441_vm1, %v20426_v10 }
 0x7ea   : > { %15324 = vmatmul.mubr.msk.f32.gmra.mrb[56].mxu1 %vm441_vm1, %v19312_v57 }
 0x7eb   : > { %15326 = vmatprep.mubr.msk.f32.mxu1 %vm441_vm1, %v20440_v47 }
 0x7ee   : > { %15327 = vmatmul.mubr.msk.f32.gmra.mrb[58].mxu1 %vm441_vm1, %v19320_v29 }
 0x7ef   : > { %15329 = vmatprep.mubr.msk.f32.mxu1 %vm441_vm1, %v19530_v52 }
 0x7f2   : > { %15330 = vmatmul.mubr.msk.f32.gmra.mrb[60].mxu1 %vm441_vm1, %v19534_v41 }
 0x7f3   : > { %15332 = vmatprep.mubr.msk.f32.mxu1 %vm441_vm1, %v11395_v25 }
 0x7f6   : > { %15333 = vmatmul.mubr.msk.f32.gmra.mrb[62].mxu1 %vm441_vm1, %v11396_v40 }
 0x88d   : > { %v15289_v31 = vpop.f32.mrb[32].mxu1 }
 0x88e   : > { %v11759_v36 = vadd.f32 %v15289_v31, %v19716_v7  ;;  %v11560_v5 = vpop.f32.mrb[33].mxu1  ;;  %v20450_v31 = vld [vmem:[#allocation30_spill] sm:$0xff] }
 0x88f   : > { %v11758_v50 = vadd.f32 %v19716_v7, %v11560_v5 }
 0x890   : > { %vm11792_vm0 = vcmp.ge.f32.partialorder %v11759_v36, 0.0  ;;  %v11830_v12 = vmul.f32 %v19721_v15, %v11759_v36 }
 0x891   : > { %vm11791_vm1 = vcmp.ge.f32.partialorder %v11758_v50, 0.0  ;;  %v11829_v57 = vmul.f32 %v19721_v15, %v11758_v50  ;;  %v15292_v51 = vpop.f32.mrb[34].mxu1 }
 0x892   : > { %v11862_v29 = vsel %vm11792_vm0, %v11759_v36, %v11830_v12  ;;  %v11761_v45 = vadd.f32 %v15292_v51, %v19716_v7  ;;  %v11570_v20 = vpop.f32.mrb[35].mxu1 }
 0x893   : > { %v11894_v43 = vadd.f32 %v11862_v29, %v20441_v53  ;;  %v11861_v62 = vsel %vm11791_vm1, %v11758_v50, %v11829_v57  ;;  %v11760_v34 = vadd.f32 %v19716_v7, %v11570_v20 }
 0x894   : > { %v11893_v30 = vadd.f32 %v11861_v62, %v20442_v32  ;;  %vm11794_vm2 = vcmp.ge.f32.partialorder %v11761_v45, 0.0  ;;  %v11832_v8 = vmul.f32 %v19721_v15, %v11761_v45  ;;  %v20452_v62 = vld [vmem:[#allocation34_spill] sm:$0xff] }
 0x895   : > { %11926 = vst.msk [vmem:[%s19732_s16 + $0x8] sm:$0xff] %vm497_vm6, %v11894_v43  ;;  %vm11793_vm3 = vcmp.ge.f32.partialorder %v11760_v34, 0.0  ;;  %v11831_v49 = vmul.f32 %v19721_v15, %v11760_v34  ;;  %v15295_v63 = vpop.f32.mrb[36].mxu1 }
 0x896   : > { %11925 = vst.msk [vmem:[%s19732_s16] sm:$0xff] %vm497_vm6, %v11893_v30  ;;  %v11864_v58 = vsel %vm11794_vm2, %v11761_v45, %v11832_v8  ;;  %v11763_v48 = vadd.f32 %v15295_v63, %v19716_v7  ;;  %v11580_v41 = vpop.f32.mrb[37].mxu1  ;;  %v20451_v45 = vld [vmem:[#allocation31_spill] sm:$0xff] }
 0x897   : > { %v11896_v10 = vadd.f32 %v11864_v58, %v20443_v1  ;;  %v11863_v28 = vsel %vm11793_vm3, %v11760_v34, %v11831_v49  ;;  %v11762_v35 = vadd.f32 %v19716_v7, %v11580_v41 }
 0x898   : > { %v11895_v52 = vadd.f32 %v11863_v28, %v20444_v4  ;;  %vm11796_vm4 = vcmp.ge.f32.partialorder %v11763_v48, 0.0  ;;  %v11834_v42 = vmul.f32 %v19721_v15, %v11763_v48  ;;  %v20454_v28 = vld [vmem:[#allocation38_spill] sm:$0xff] }
 0x899   : > { %11928 = vst.msk [vmem:[%s19732_s16 + $0x18] sm:$0xff] %vm497_vm6, %v11896_v10  ;;  %vm11795_vm5 = vcmp.ge.f32.partialorder %v11762_v35, 0.0  ;;  %v11833_v22 = vmul.f32 %v19721_v15, %v11762_v35  ;;  %v15298_v24 = vpop.f32.mrb[38].mxu1 }
 0x89a   : > { %11927 = vst.msk [vmem:[%s19732_s16 + $0x10] sm:$0xff] %vm497_vm6, %v11895_v52  ;;  %v11866_v21 = vsel %vm11796_vm4, %v11763_v48, %v11834_v42  ;;  %v11765_v38 = vadd.f32 %v15298_v24, %v19716_v7  ;;  %v11590_v54 = vpop.f32.mrb[39].mxu1  ;;  %v20453_v48 = vld [vmem:[#allocation35_spill] sm:$0xff] }
 0x89b   : > { %v11898_v46 = vadd.f32 %v11866_v21, %v20445_v61  ;;  %v11865_v59 = vsel %vm11795_vm5, %v11762_v35, %v11833_v22  ;;  %v11764_v23 = vadd.f32 %v19716_v7, %v11590_v54 }
 0x89c   : > { %v11897_v3 = vadd.f32 %v11865_v59, %v20446_v44  ;;  %vm11798_vm7 = vcmp.ge.f32.partialorder %v11765_v38, 0.0  ;;  %v11836_v60 = vmul.f32 %v19721_v15, %v11765_v38  ;;  %v20456_v59 = vld [vmem:[#allocation42_spill] sm:$0xff] }
 0x89d   : > { %11930 = vst.msk [vmem:[%s19732_s16 + $0x28] sm:$0xff] %vm497_vm6, %v11898_v46  ;;  %vm11797_vm8 = vcmp.ge.f32.partialorder %v11764_v23, 0.0  ;;  %v11835_v33 = vmul.f32 %v19721_v15, %v11764_v23  ;;  %v15301_v56 = vpop.f32.mrb[40].mxu1 }
 0x89e   : > { %11929 = vst.msk [vmem:[%s19732_s16 + $0x20] sm:$0xff] %vm497_vm6, %v11897_v3  ;;  %v11868_v9 = vsel %vm11798_vm7, %v11765_v38, %v11836_v60  ;;  %v11767_v16 = vadd.f32 %v15301_v56, %v19716_v7  ;;  %v11600_v18 = vpop.f32.mrb[41].mxu1  ;;  %v20455_v38 = vld [vmem:[#allocation39_spill] sm:$0xff] }
 0x89f   : > { %v11900_v14 = vadd.f32 %v11868_v9, %v20447_v37  ;;  %v11867_v17 = vsel %vm11797_vm8, %v11764_v23, %v11835_v33  ;;  %v11766_v39 = vadd.f32 %v19716_v7, %v11600_v18 }
 0x8a0   : > { %v11899_v19 = vadd.f32 %v11867_v17, %v20448_v2  ;;  %vm11800_vm9 = vcmp.ge.f32.partialorder %v11767_v16, 0.0  ;;  %v11838_v26 = vmul.f32 %v19721_v15, %v11767_v16  ;;  %v20458_v17 = vld [vmem:[#allocation46_spill] sm:$0xff] }
 0x8a1   : > { %11932 = vst.msk [vmem:[%s19732_s16 + $0x38] sm:$0xff] %vm497_vm6, %v11900_v14  ;;  %vm11799_vm10 = vcmp.ge.f32.partialorder %v11766_v39, 0.0  ;;  %v11837_v11 = vmul.f32 %v19721_v15, %v11766_v39  ;;  %v15304_v6 = vpop.f32.mrb[42].mxu1 }
 0x8a2   : > { %11931 = vst.msk [vmem:[%s19732_s16 + $0x30] sm:$0xff] %vm497_vm6, %v11899_v19  ;;  %v11870_v0 = vsel %vm11800_vm9, %v11767_v16, %v11838_v26  ;;  %v11769_v27 = vadd.f32 %v15304_v6, %v19716_v7  ;;  %v11610_v55 = vpop.f32.mrb[43].mxu1  ;;  %v20457_v16 = vld [vmem:[#allocation43_spill] sm:$0xff] }
 0x8a3   : > { %v11902_v47 = vadd.f32 %v11870_v0, %v20449_v13  ;;  %v11869_v25 = vsel %vm11799_vm10, %v11766_v39, %v11837_v11  ;;  %v11768_v40 = vadd.f32 %v19716_v7, %v11610_v55 }
 0x8a4   : > { %v11901_v36 = vadd.f32 %v11869_v25, %v20450_v31  ;;  %vm11802_vm11 = vcmp.ge.f32.partialorder %v11769_v27, 0.0  ;;  %v11840_v5 = vmul.f32 %v19721_v15, %v11769_v27  ;;  %v20460_v25 = vld [vmem:[#allocation50_spill] sm:$0xff] }
 0x8a5   : > { %11934 = vst.msk [vmem:[%s19732_s16 + $0x48] sm:$0xff] %vm497_vm6, %v11902_v47  ;;  %vm11801_vm12 = vcmp.ge.f32.partialorder %v11768_v40, 0.0  ;;  %v11839_v50 = vmul.f32 %v19721_v15, %v11768_v40  ;;  %v15307_v12 = vpop.f32.mrb[44].mxu1 }
 0x8a6   : > { %11933 = vst.msk [vmem:[%s19732_s16 + $0x40] sm:$0xff] %vm497_vm6, %v11901_v36  ;;  %v11872_v57 = vsel %vm11802_vm11, %v11769_v27, %v11840_v5  ;;  %v11771_v51 = vadd.f32 %v15307_v12, %v19716_v7  ;;  %v11620_v29 = vpop.f32.mrb[45].mxu1  ;;  %v20459_v27 = vld [vmem:[#allocation47_spill] sm:$0xff] }
 0x8a7   : > { %v11904_v20 = vadd.f32 %v11872_v57, %v20451_v45  ;;  %v11871_v53 = vsel %vm11801_vm12, %v11768_v40, %v11839_v50  ;;  %v11770_v43 = vadd.f32 %v19716_v7, %v11620_v29 }
 0x8a8   : > { %v11903_v34 = vadd.f32 %v11871_v53, %v20452_v62  ;;  %vm11804_vm13 = vcmp.ge.f32.partialorder %v11771_v51, 0.0  ;;  %v11842_v32 = vmul.f32 %v19721_v15, %v11771_v51  ;;  %v20462_v53 = vld [vmem:[#allocation54_spill] sm:$0xff] }
 0x8a9   : > { %11936 = vst.msk [vmem:[%s19732_s16 + $0x58] sm:$0xff] %vm497_vm6, %v11904_v20  ;;  %vm11803_vm14 = vcmp.ge.f32.partialorder %v11770_v43, 0.0  ;;  %v11841_v30 = vmul.f32 %v19721_v15, %v11770_v43  ;;  %v15310_v8 = vpop.f32.mrb[46].mxu1 }
 0x8aa   : > { %11935 = vst.msk [vmem:[%s19732_s16 + $0x50] sm:$0xff] %vm497_vm6, %v11903_v34  ;;  %v11874_v49 = vsel %vm11804_vm13, %v11771_v51, %v11842_v32  ;;  %v11773_v63 = vadd.f32 %v15310_v8, %v19716_v7  ;;  %v11630_v58 = vpop.f32.mrb[47].mxu1  ;;  %v20461_v51 = vld [vmem:[#allocation51_spill] sm:$0xff] }
 0x8ab   : > { %v11906_v41 = vadd.f32 %v11874_v49, %v20453_v48  ;;  %v11873_v1 = vsel %vm11803_vm14, %v11770_v43, %v11841_v30  ;;  %v11772_v10 = vadd.f32 %v19716_v7, %v11630_v58 }
 0x8ac   : > { %v11905_v35 = vadd.f32 %v11873_v1, %v20454_v28  ;;  %vm11806_vm15 = vcmp.ge.f32.partialorder %v11773_v63, 0.0  ;;  %v11844_v4 = vmul.f32 %v19721_v15, %v11773_v63  ;;  %v20464_v1 = vld [vmem:[#allocation58_spill] sm:$0xff] }
 0x8ad   : > { %11938 = vst.msk [vmem:[%s19732_s16 + $0x68] sm:$0xff] %vm497_vm6, %v11906_v41  ;;  %vm11805_vm0 = vcmp.ge.f32.partialorder %v11772_v10, 0.0  ;;  %v11843_v52 = vmul.f32 %v19721_v15, %v11772_v10  ;;  %v15313_v42 = vpop.f32.mrb[48].mxu1 }
 0x8ae   : > { %11937 = vst.msk [vmem:[%s19732_s16 + $0x60] sm:$0xff] %vm497_vm6, %v11905_v35  ;;  %v11876_v22 = vsel %vm11806_vm15, %v11773_v63, %v11844_v4  ;;  %v11775_v24 = vadd.f32 %v15313_v42, %v19716_v7  ;;  %v11640_v21 = vpop.f32.mrb[49].mxu1  ;;  %v20463_v63 = vld [vmem:[#allocation55_spill] sm:$0xff] }
 0x8af   : > { %v11908_v54 = vadd.f32 %v11876_v22, %v20455_v38  ;;  %v11875_v61 = vsel %vm11805_vm0, %v11772_v10, %v11843_v52  ;;  %v11774_v46 = vadd.f32 %v19716_v7, %v11640_v21 }
 0x8b0   : > { %v11907_v23 = vadd.f32 %v11875_v61, %v20456_v59  ;;  %vm11808_vm1 = vcmp.ge.f32.partialorder %v11775_v24, 0.0  ;;  %v11846_v44 = vmul.f32 %v19721_v15, %v11775_v24  ;;  %v20466_v61 = vld [vmem:[#allocation60_spill] sm:$0xff] }
 0x8b1   : > { %11940 = vst.msk [vmem:[%s19732_s16 + $0x78] sm:$0xff] %vm497_vm6, %v11908_v54  ;;  %vm11807_vm2 = vcmp.ge.f32.partialorder %v11774_v46, 0.0  ;;  %v11845_v3 = vmul.f32 %v19721_v15, %v11774_v46  ;;  %v15316_v60 = vpop.f32.mrb[50].mxu1 }
 0x8b2   : > { %11939 = vst.msk [vmem:[%s19732_s16 + $0x70] sm:$0xff] %vm497_vm6, %v11907_v23  ;;  %v11878_v33 = vsel %vm11808_vm1, %v11775_v24, %v11846_v44  ;;  %v11777_v56 = vadd.f32 %v15316_v60, %v19716_v7  ;;  %v11650_v9 = vpop.f32.mrb[51].mxu1  ;;  %v20465_v24 = vld [vmem:[#allocation59_spill] sm:$0xff] }
 0x8b3   : > { %v11910_v18 = vadd.f32 %v11878_v33, %v20457_v16  ;;  %v11877_v37 = vsel %vm11807_vm2, %v11774_v46, %v11845_v3  ;;  %v11776_v14 = vadd.f32 %v19716_v7, %v11650_v9 }
 0x8b4   : > { %v11909_v39 = vadd.f32 %v11877_v37, %v20458_v17  ;;  %vm11810_vm3 = vcmp.ge.f32.partialorder %v11777_v56, 0.0  ;;  %v11848_v2 = vmul.f32 %v19721_v15, %v11777_v56  ;;  %v20468_v37 = vld [vmem:[#allocation62_spill] sm:$0xff] }
 0x8b5   : > { %11942 = vst.msk [vmem:[%s19732_s16 + $0x88] sm:$0xff] %vm497_vm6, %v11910_v18  ;;  %vm11809_vm4 = vcmp.ge.f32.partialorder %v11776_v14, 0.0  ;;  %v11847_v19 = vmul.f32 %v19721_v15, %v11776_v14  ;;  %v15319_v26 = vpop.f32.mrb[52].mxu1 }
 0x8b6   : > { %11941 = vst.msk [vmem:[%s19732_s16 + $0x80] sm:$0xff] %vm497_vm6, %v11909_v39  ;;  %v11880_v11 = vsel %vm11810_vm3, %v11777_v56, %v11848_v2  ;;  %v11779_v6 = vadd.f32 %v15319_v26, %v19716_v7  ;;  %v11660_v0 = vpop.f32.mrb[53].mxu1  ;;  %v20467_v56 = vld [vmem:[#allocation61_spill] sm:$0xff] }
 0x8b7   : > { %v11912_v55 = vadd.f32 %v11880_v11, %v20459_v27  ;;  %v11879_v13 = vsel %vm11809_vm4, %v11776_v14, %v11847_v19  ;;  %v11778_v47 = vadd.f32 %v19716_v7, %v11660_v0 }
 0x8b8   : > { %v11911_v40 = vadd.f32 %v11879_v13, %v20460_v25  ;;  %vm11812_vm5 = vcmp.ge.f32.partialorder %v11779_v6, 0.0  ;;  %v11850_v31 = vmul.f32 %v19721_v15, %v11779_v6  ;;  %v20470_v13 = vld [vmem:[#allocation66_spill] sm:$0xff] }
 0x8b9   : > { %11944 = vst.msk [vmem:[%s19732_s16 + $0x98] sm:$0xff] %vm497_vm6, %v11912_v55  ;;  %vm11811_vm7 = vcmp.ge.f32.partialorder %v11778_v47, 0.0  ;;  %v11849_v36 = vmul.f32 %v19721_v15, %v11778_v47  ;;  %v15322_v5 = vpop.f32.mrb[54].mxu1 }
 0x8ba   : > { %11943 = vst.msk [vmem:[%s19732_s16 + $0x90] sm:$0xff] %vm497_vm6, %v11911_v40  ;;  %v11882_v50 = vsel %vm11812_vm5, %v11779_v6, %v11850_v31  ;;  %v11781_v12 = vadd.f32 %v15322_v5, %v19716_v7  ;;  %v11670_v57 = vpop.f32.mrb[55].mxu1  ;;  %v20469_v6 = vld [vmem:[#allocation63_spill] sm:$0xff] }
 0x8bb   : > { %v11914_v29 = vadd.f32 %v11882_v50, %v20461_v51  ;;  %v11881_v45 = vsel %vm11811_vm7, %v11778_v47, %v11849_v36  ;;  %v11780_v20 = vadd.f32 %v19716_v7, %v11670_v57  ;;  %v20471_v36 = vld [vmem:[#allocation68_spill] sm:$0xff] }
 0x8bc   : > { %v11913_v43 = vadd.f32 %v11881_v45, %v20462_v53  ;;  %vm11814_vm8 = vcmp.ge.f32.partialorder %v11781_v12, 0.0  ;;  %v11852_v62 = vmul.f32 %v19721_v15, %v11781_v12 }
 0x8bd   : > { %11946 = vst.msk [vmem:[%s19732_s16 + $0xa8] sm:$0xff] %vm497_vm6, %v11914_v29  ;;  %vm11813_vm9 = vcmp.ge.f32.partialorder %v11780_v20, 0.0  ;;  %v11851_v34 = vmul.f32 %v19721_v15, %v11780_v20  ;;  %v15325_v32 = vpop.f32.mrb[56].mxu1 }
 0x8be   : > { %11945 = vst.msk [vmem:[%s19732_s16 + $0xa0] sm:$0xff] %vm497_vm6, %v11913_v43  ;;  %v11884_v30 = vsel %vm11814_vm8, %v11781_v12, %v11852_v62  ;;  %v11783_v8 = vadd.f32 %v15325_v32, %v19716_v7  ;;  %v11680_v49 = vpop.f32.mrb[57].mxu1  ;;  %v20472_v12 = vld [vmem:[#allocation69_spill] sm:$0xff] }
 0x8bf   : > { %v11916_v58 = vadd.f32 %v11884_v30, %v20463_v63  ;;  %v11883_v48 = vsel %vm11813_vm9, %v11780_v20, %v11851_v34  ;;  %v11782_v41 = vadd.f32 %v19716_v7, %v11680_v49 }
 0x8c0   : > { %v11915_v10 = vadd.f32 %v11883_v48, %v20464_v1  ;;  %vm11816_vm10 = vcmp.ge.f32.partialorder %v11783_v8, 0.0  ;;  %v11854_v28 = vmul.f32 %v19721_v15, %v11783_v8 }
 0x8c1   : > { %11948 = vst.msk [vmem:[%s19732_s16 + $0xb8] sm:$0xff] %vm497_vm6, %v11916_v58  ;;  %vm11815_vm11 = vcmp.ge.f32.partialorder %v11782_v41, 0.0  ;;  %v11853_v35 = vmul.f32 %v19721_v15, %v11782_v41  ;;  %v15328_v4 = vpop.f32.mrb[58].mxu1 }
 0x8c2   : > { %11947 = vst.msk [vmem:[%s19732_s16 + $0xb0] sm:$0xff] %vm497_vm6, %v11915_v10  ;;  %v11886_v52 = vsel %vm11816_vm10, %v11783_v8, %v11854_v28  ;;  %v11785_v42 = vadd.f32 %v15328_v4, %v19716_v7  ;;  %v11690_v22 = vpop.f32.mrb[59].mxu1 }
 0x8c3   : > { %v11918_v21 = vadd.f32 %v11886_v52, %v20465_v24  ;;  %v11885_v38 = vsel %vm11815_vm11, %v11782_v41, %v11853_v35  ;;  %v11784_v54 = vadd.f32 %v19716_v7, %v11690_v22 }
 0x8c4   : > { %v11917_v46 = vadd.f32 %v11885_v38, %v20466_v61  ;;  %vm11818_vm12 = vcmp.ge.f32.partialorder %v11785_v42, 0.0  ;;  %v11856_v59 = vmul.f32 %v19721_v15, %v11785_v42 }
 0x8c5   : > { %11950 = vst.msk [vmem:[%s19732_s16 + $0xc8] sm:$0xff] %vm497_vm6, %v11918_v21  ;;  %vm11817_vm13 = vcmp.ge.f32.partialorder %v11784_v54, 0.0  ;;  %v11855_v23 = vmul.f32 %v19721_v15, %v11784_v54  ;;  %v15331_v44 = vpop.f32.mrb[60].mxu1 }
 0x8c6   : > { %11949 = vst.msk [vmem:[%s19732_s16 + $0xc0] sm:$0xff] %vm497_vm6, %v11917_v46  ;;  %v11888_v3 = vsel %vm11818_vm12, %v11785_v42, %v11856_v59  ;;  %v11787_v60 = vadd.f32 %v15331_v44, %v19716_v7  ;;  %v11700_v33 = vpop.f32.mrb[61].mxu1 }
 0x8c7   : > { %v11920_v9 = vadd.f32 %v11888_v3, %v20467_v56  ;;  %v11887_v16 = vsel %vm11817_vm13, %v11784_v54, %v11855_v23  ;;  %v11786_v18 = vadd.f32 %v19716_v7, %v11700_v33 }
 0x8c8   : > { %v11919_v14 = vadd.f32 %v11887_v16, %v20468_v37  ;;  %vm11820_vm14 = vcmp.ge.f32.partialorder %v11787_v60, 0.0  ;;  %v11858_v17 = vmul.f32 %v19721_v15, %v11787_v60 }
 0x8c9   : > { %11952 = vst.msk [vmem:[%s19732_s16 + $0xd8] sm:$0xff] %vm497_vm6, %v11920_v9  ;;  %vm11819_vm15 = vcmp.ge.f32.partialorder %v11786_v18, 0.0  ;;  %v11857_v39 = vmul.f32 %v19721_v15, %v11786_v18  ;;  %v15334_v2 = vpop.f32.mrb[62].mxu1 }
 0x8ca   : > { %11951 = vst.msk [vmem:[%s19732_s16 + $0xd0] sm:$0xff] %vm497_vm6, %v11919_v14  ;;  %v11890_v19 = vsel %vm11820_vm14, %v11787_v60, %v11858_v17  ;;  %v11789_v26 = vadd.f32 %v15334_v2, %v19716_v7  ;;  %v11710_v11 = vpop.f32.mrb[63].mxu1 }
 0x8cb   : > { %v11922_v0 = vadd.f32 %v11890_v19, %v20469_v6  ;;  %v11889_v27 = vsel %vm11819_vm15, %v11786_v18, %v11857_v39  ;;  %v11788_v55 = vadd.f32 %v19716_v7, %v11710_v11 }
 0x8cc   : > { %v11921_v47 = vadd.f32 %v11889_v27, %v20470_v13  ;;  %vm11822_vm0 = vcmp.ge.f32.partialorder %v11789_v26, 0.0  ;;  %v11860_v25 = vmul.f32 %v19721_v15, %v11789_v26 }
 0x8cd   : > { %11954 = vst.msk [vmem:[%s19732_s16 + $0xe8] sm:$0xff] %vm497_vm6, %v11922_v0  ;;  %vm11821_vm1 = vcmp.ge.f32.partialorder %v11788_v55, 0.0  ;;  %v11859_v40 = vmul.f32 %v19721_v15, %v11788_v55 }
 0x8ce   : > { %11953 = vst.msk [vmem:[%s19732_s16 + $0xe0] sm:$0xff] %vm497_vm6, %v11921_v47  ;;  %v11892_v31 = vsel %vm11822_vm0, %v11789_v26, %v11860_v25 }
 0x8cf   : > { %v11924_v5 = vadd.f32 %v11892_v31, %v20471_v36  ;;  %v11891_v50 = vsel %vm11821_vm1, %v11788_v55, %v11859_v40 }
 0x8d0   : > { %v11923_v57 = vadd.f32 %v11891_v50, %v20472_v12 }
 0x8d1   : > { %11956 = vst.msk [vmem:[%s19732_s16 + $0xf8] sm:$0xff] %vm497_vm6, %v11924_v5 }
 0x8d2   : > { %11955 = vst.msk [vmem:[%s19732_s16 + $0xf0] sm:$0xff] %vm497_vm6, %v11923_v57 }
 0x8d3 PF: > { %s23_s25 = sadd.s32 1, %s16190_s25  }
 0x8d4   : > { %p20_p4 = scmp.ge.s32.totalorder %s23_s25, 4  }
 0x8d6   :  { %22 = sbr.rel (!%p20_p4) target bundleno = 1 (0x1), region = 108 }

</bundles_post_ra>
